<compile_context>
chip_gen: v7x
topology: tpu7x:2x2x1
jax: 0.10.0
libtpu: 0.0.40
codegen_flags: <defaults>
</compile_context>

<pallas_src>
import math

import jax
import jax.numpy as jnp
from jax.experimental import pallas as pl
from jax.experimental.pallas import tpu as pltpu


def _round_up(x, m):
    return ((x + m - 1) // m) * m


def graphsage_mean_kernel(adj_ref, hk_ref, hi_ref, w_ref, b_ref, o_ref,
                          acc_ref, deg_ref):
    """One (row-tile i, reduction-tile k) grid step.

    adj_ref: (tm, tk)  bf16   adjacency tile, adj[v,u]=1 for edge u->v
    hk_ref : (tk, Fin) bf16   source-node features (matmul RHS, k-indexed)
    hi_ref : (tm, Fin) bf16   destination-node self features (i-indexed)
    w_ref  : (Fin, Fout) f32  linear.weight.T (VMEM-resident)
    b_ref  : (1, Fout)  f32   bias
    o_ref  : (tm, Fout) f32   output tile
    acc_ref: (tm, Fin)  f32   neighbor-sum accumulator scratch
    deg_ref: (tm, 1)    f32   in-degree accumulator scratch
    """
    k = pl.program_id(1)

    @pl.when(k == 0)
    def _():
        acc_ref[...] = jnp.zeros_like(acc_ref)
        deg_ref[...] = jnp.zeros_like(deg_ref)

    adj = adj_ref[...]                                         # (tm, tk) bf16
    # neighbor message partial sum on the MXU, f32 accumulation
    acc_ref[...] += jnp.dot(adj, hk_ref[...],
                            preferred_element_type=jnp.float32)
    # partial in-degree (row sum of this adj tile); XLU slot, off critical path
    deg_ref[...] += jnp.sum(adj.astype(jnp.float32), axis=1, keepdims=True)

    @pl.when(k == pl.num_programs(1) - 1)
    def _():
        # guard padded / isolated rows against divide-by-zero
        deg = jnp.maximum(deg_ref[...], 1.0)                   # (tm, 1)
        inv_deg = pl.reciprocal(deg, approx=True)              # EUP
        agg = (acc_ref[...] + hi_ref[...].astype(jnp.float32)) * inv_deg
        z = jnp.dot(agg, w_ref[...],
                    preferred_element_type=jnp.float32) + b_ref[...]
        o_ref[...] = jnp.maximum(z, 0.0)                       # relu


def graphsage_layer(adj, h, w_t, b, *, tm=256, tk=512):
    """adj: (N,N) 0/1 float, h: (N,Fin), w_t: (Fin,Fout) = linear.weight.T, b: (1,Fout)."""
    N, f_in = h.shape
    f_out = w_t.shape[1]

    # lane-dense feature dims
    f_in_p = _round_up(f_in, 128)
    f_out_p = _round_up(f_out, 128)

    # tile / node-padding choice (single padded N must divide by both tm and tk)
    if N <= 256:
        tm = tk = max(128, _round_up(N, 128))
        n_pad = tm
    else:
        n_pad = _round_up(N, math.lcm(tm, tk))

    # pad + cast inputs (adj entries are exactly 0/1 -> bf16 cast is lossless)
    adj_p = jnp.zeros((n_pad, n_pad), jnp.bfloat16).at[:N, :N].set(
        adj.astype(jnp.bfloat16))
    h_p = jnp.zeros((n_pad, f_in_p), jnp.bfloat16).at[:N, :f_in].set(
        h.astype(jnp.bfloat16))
    w_p = jnp.zeros((f_in_p, f_out_p), jnp.float32).at[:f_in, :f_out].set(
        w_t.astype(jnp.float32))
    b_p = jnp.zeros((1, f_out_p), jnp.float32).at[:, :f_out].set(
        b.astype(jnp.float32))

    grid = (n_pad // tm, n_pad // tk)   # (row tiles, reduction tiles) — k last

    out_p = pl.pallas_call(
        graphsage_mean_kernel,
        out_shape=jax.ShapeDtypeStruct((n_pad, f_out_p), jnp.float32),
        grid_spec=pltpu.PrefetchScalarGridSpec(
            num_scalar_prefetch=0,
            grid=grid,
            in_specs=[
                pl.BlockSpec((tm, tk), lambda i, k: (i, k)),          # adj tile
                pl.BlockSpec((tk, f_in_p), lambda i, k: (k, 0)),      # h, matmul RHS
                pl.BlockSpec((tm, f_in_p), lambda i, k: (i, 0)),      # h, self term
                pl.BlockSpec((f_in_p, f_out_p), lambda i, k: (0, 0)), # W^T (resident)
                pl.BlockSpec((1, f_out_p), lambda i, k: (0, 0)),      # bias (resident)
            ],
            out_specs=pl.BlockSpec((tm, f_out_p), lambda i, k: (i, 0)),
            scratch_shapes=[
                pltpu.VMEM((tm, f_in_p), jnp.float32),   # neighbor-sum accumulator
                pltpu.VMEM((tm, 1), jnp.float32),        # in-degree accumulator
            ],
        ),
        compiler_params=pltpu.CompilerParams(
            dimension_semantics=("parallel", "arbitrary"),
            vmem_limit_bytes=32 * 1024 * 1024,
        ),
    )(adj_p, h_p, h_p, w_p, b_p)

    return out_p[:N, :f_out]


def _reference(adj, h, w_t, b):
    # mirrors the kernel's bf16 streaming of adj/h (f32 accumulation) exactly
    adj32 = adj.astype(jnp.bfloat16).astype(jnp.float32)
    h32 = h.astype(jnp.bfloat16).astype(jnp.float32)
    deg = jnp.maximum(jnp.sum(adj32, axis=1, keepdims=True), 1.0)
    agg = (adj32 @ h32 + h32) / deg
    return jnp.maximum(agg @ w_t + b, 0.0)


if __name__ == "__main__":
    key = jax.random.PRNGKey(0)
    # Modest shapes, but large enough that the grid is non-trivial:
    # n_pad = 1024, tm=256, tk=512 -> grid (4, 2) exercises both axes + padding.
    N, in_feats, out_feats = 600, 64, 48
    k_adj, k_h, k_w, k_b = jax.random.split(key, 4)

    # Random directed graph; zero the diagonal and add a ring edge so every
    # node has in-degree >= 1 (DGL only reduces over nodes with mailboxes).
    adj = (jax.random.uniform(k_adj, (N, N)) < 0.05).astype(jnp.float32)
    adj = adj * (1.0 - jnp.eye(N, dtype=jnp.float32))
    ring = jnp.roll(jnp.eye(N, dtype=jnp.float32), shift=1, axis=1)
    adj = jnp.maximum(adj, ring)

    # Node features (dropout is eval-mode identity here).
    h = jax.random.normal(k_h, (N, in_feats), dtype=jnp.float32)

    # nn.Linear(in_feats, out_feats) params:
    #   weight: xavier_uniform_ with gain = calculate_gain('relu') = sqrt(2)
    #   bias:   default uniform(-1/sqrt(in_feats), 1/sqrt(in_feats))
    gain = jnp.sqrt(2.0)
    limit = gain * jnp.sqrt(6.0 / (in_feats + out_feats))
    w_pt = jax.random.uniform(k_w, (out_feats, in_feats),
                              minval=-limit, maxval=limit, dtype=jnp.float32)
    w_t = w_pt.T                                          # (F_in, F_out)
    b_bound = 1.0 / jnp.sqrt(jnp.float32(in_feats))
    b = jax.random.uniform(k_b, (1, out_feats),
                           minval=-b_bound, maxval=b_bound, dtype=jnp.float32)

    out = graphsage_layer(adj, h, w_t, b)
    out = jax.block_until_ready(out)

    ref = _reference(adj, h, w_t, b)
    assert out.shape == (N, out_feats)
    # bf16 inputs + approx reciprocal -> modest tolerance vs the f32 reference
    assert jnp.allclose(out, ref, atol=1e-2, rtol=1e-2), (
        float(jnp.max(jnp.abs(out - ref))))

    print("KERNEL_OK")
</pallas_src>

<mosaic_0001>
module attributes {stable_mosaic.version = 11 : i64} {
  func.func @graphsage_mean_kernel(%arg0: i32, %arg1: i32, %arg2: memref<256x512xbf16, #tpu.memory_space<vmem>>, %arg3: memref<512x128xbf16, #tpu.memory_space<vmem>>, %arg4: memref<256x128xbf16, #tpu.memory_space<vmem>>, %arg5: memref<128x128xf32, #tpu.memory_space<vmem>>, %arg6: memref<1x128xf32, #tpu.memory_space<vmem>>, %arg7: memref<256x128xf32, #tpu.memory_space<vmem>>, %arg8: memref<256x128xf32, #tpu.memory_space<vmem>>, %arg9: memref<256x1xf32, #tpu.memory_space<vmem>>) attributes {dimension_semantics = [#tpu.dimension_semantics<parallel>, #tpu.dimension_semantics<arbitrary>], iteration_bounds = array<i64: 4, 2>, scalar_prefetch = 0 : i64, scratch_operands = 2 : i64, tpu.core_type = #tpu.core_type<tc>, window_params = [{transform_indices = @transform_0, window_bounds = array<i64: 256, 512>}, {transform_indices = @transform_1, window_bounds = array<i64: 512, 128>}, {transform_indices = @transform_2, window_bounds = array<i64: 256, 128>}, {pipeline_mode = #tpu.pipeline_mode<synchronous>, transform_indices = @transform_3, window_bounds = array<i64: 128, 128>}, {pipeline_mode = #tpu.pipeline_mode<synchronous>, transform_indices = @transform_4, window_bounds = array<i64: 1, 128>}, {transform_indices = @transform_5, window_bounds = array<i64: 256, 128>}]} {
    %c0_i32 = arith.constant 0 : i32
    %0 = arith.cmpi eq, %arg1, %c0_i32 : i32
    %1 = arith.extui %0 : i1 to i32
    %c0_i32_0 = arith.constant 0 : i32
    %2 = arith.cmpi ne, %1, %c0_i32_0 : i32
    scf.if %2 {
      %cst_14 = arith.constant 0.000000e+00 : f32
      %18 = vector.broadcast %cst_14 : f32 to vector<256x128xf32>
      %c0_15 = arith.constant 0 : index
      %c0_16 = arith.constant 0 : index
      %19 = vector.load %arg8[%c0_15, %c0_16] : memref<256x128xf32, #tpu.memory_space<vmem>>, vector<256x128xf32>
      tpu.vector_store %arg8[%c0_15, %c0_16], %18 {strides = array<i32>} : memref<256x128xf32, #tpu.memory_space<vmem>>, vector<256x128xf32>,
      %cst_17 = arith.constant 0.000000e+00 : f32
      %20 = vector.broadcast %cst_17 : f32 to vector<256x1xf32>
      %c0_18 = arith.constant 0 : index
      %c0_19 = arith.constant 0 : index
      %21 = vector.load %arg9[%c0_18, %c0_19] : memref<256x1xf32, #tpu.memory_space<vmem>>, vector<256x1xf32>
      tpu.vector_store %arg9[%c0_18, %c0_19], %20 {strides = array<i32>} : memref<256x1xf32, #tpu.memory_space<vmem>>, vector<256x1xf32>,
    } else {
    }
    %c0 = arith.constant 0 : index
    %c0_1 = arith.constant 0 : index
    %3 = vector.load %arg2[%c0, %c0_1] : memref<256x512xbf16, #tpu.memory_space<vmem>>, vector<256x512xbf16>
    %c0_2 = arith.constant 0 : index
    %c0_3 = arith.constant 0 : index
    %4 = vector.load %arg8[%c0_2, %c0_3] : memref<256x128xf32, #tpu.memory_space<vmem>>, vector<256x128xf32>
    %c0_4 = arith.constant 0 : index
    %c0_5 = arith.constant 0 : index
    %5 = vector.load %arg3[%c0_4, %c0_5] : memref<512x128xbf16, #tpu.memory_space<vmem>>, vector<512x128xbf16>
    %cst = arith.constant dense<0.000000e+00> : vector<256x128xf32>
    %6 = tpu.matmul %3, %5, %cst {dimension_numbers = #tpu.dot_dimension_numbers<[1], [0], [0], [1], [0, 0, 1, 1], [], []>} : vector<256x512xbf16>, vector<512x128xbf16>, vector<256x128xf32> -> vector<256x128xf32>
    %7 = arith.addf %4, %6 : vector<256x128xf32>
    %c0_6 = arith.constant 0 : index
    %c0_7 = arith.constant 0 : index
    %8 = vector.load %arg8[%c0_6, %c0_7] : memref<256x128xf32, #tpu.memory_space<vmem>>, vector<256x128xf32>
    tpu.vector_store %arg8[%c0_6, %c0_7], %7 {strides = array<i32>} : memref<256x128xf32, #tpu.memory_space<vmem>>, vector<256x128xf32>,
    %c0_8 = arith.constant 0 : index
    %c0_9 = arith.constant 0 : index
    %9 = vector.load %arg9[%c0_8, %c0_9] : memref<256x1xf32, #tpu.memory_space<vmem>>, vector<256x1xf32>
    %10 = arith.extf %3 : vector<256x512xbf16> to vector<256x512xf32>
    %cst_10 = arith.constant dense<0.000000e+00> : vector<256xf32>
    %11 = vector.multi_reduction <add>, %10, %cst_10 [1] : vector<256x512xf32> to vector<256xf32>
    %12 = vector.shape_cast %11 : vector<256xf32> to vector<256x1xf32>
    %13 = arith.addf %9, %12 : vector<256x1xf32>
    %c0_11 = arith.constant 0 : index
    %c0_12 = arith.constant 0 : index
    %14 = vector.load %arg9[%c0_11, %c0_12] : memref<256x1xf32, #tpu.memory_space<vmem>>, vector<256x1xf32>
    tpu.vector_store %arg9[%c0_11, %c0_12], %13 {strides = array<i32>} : memref<256x1xf32, #tpu.memory_space<vmem>>, vector<256x1xf32>,
    %c1_i32 = arith.constant 1 : i32
    %15 = arith.cmpi eq, %arg1, %c1_i32 : i32
    %16 = arith.extui %15 : i1 to i32
    %c0_i32_13 = arith.constant 0 : i32
    %17 = arith.cmpi ne, %16, %c0_i32_13 : i32
    scf.if %17 {
      %c0_14 = arith.constant 0 : index
      %c0_15 = arith.constant 0 : index
      %18 = vector.load %arg9[%c0_14, %c0_15] : memref<256x1xf32, #tpu.memory_space<vmem>>, vector<256x1xf32>
      %cst_16 = arith.constant 1.000000e+00 : f32
      %19 = vector.broadcast %cst_16 : f32 to vector<256x1xf32>
      %20 = arith.maximumf %18, %19 : vector<256x1xf32>
      %21 = tpu.reciprocal %20 {approx = true} : vector<256x1xf32> -> vector<256x1xf32>
      %c0_17 = arith.constant 0 : index
      %c0_18 = arith.constant 0 : index
      %22 = vector.load %arg8[%c0_17, %c0_18] : memref<256x128xf32, #tpu.memory_space<vmem>>, vector<256x128xf32>
      %c0_19 = arith.constant 0 : index
      %c0_20 = arith.constant 0 : index
      %23 = vector.load %arg4[%c0_19, %c0_20] : memref<256x128xbf16, #tpu.memory_space<vmem>>, vector<256x128xbf16>
      %24 = arith.extf %23 : vector<256x128xbf16> to vector<256x128xf32>
      %25 = arith.addf %22, %24 : vector<256x128xf32>
      %26 = vector.broadcast %21 : vector<256x1xf32> to vector<256x128xf32>
      %27 = arith.mulf %25, %26 : vector<256x128xf32>
      %c0_21 = arith.constant 0 : index
      %c0_22 = arith.constant 0 : index
      %28 = vector.load %arg5[%c0_21, %c0_22] : memref<128x128xf32, #tpu.memory_space<vmem>>, vector<128x128xf32>
      %cst_23 = arith.constant dense<0.000000e+00> : vector<256x128xf32>
      %29 = tpu.matmul %27, %28, %cst_23 {dimension_numbers = #tpu.dot_dimension_numbers<[1], [0], [0], [1], [0, 0, 1, 1], [], []>} : vector<256x128xf32>, vector<128x128xf32>, vector<256x128xf32> -> vector<256x128xf32>
      %c0_24 = arith.constant 0 : index
      %c0_25 = arith.constant 0 : index
      %30 = vector.load %arg6[%c0_24, %c0_25] : memref<1x128xf32, #tpu.memory_space<vmem>>, vector<1x128xf32>
      %31 = vector.broadcast %30 : vector<1x128xf32> to vector<256x128xf32>
      %32 = arith.addf %29, %31 : vector<256x128xf32>
      %cst_26 = arith.constant 0.000000e+00 : f32
      %33 = vector.broadcast %cst_26 : f32 to vector<256x128xf32>
      %34 = arith.maximumf %32, %33 : vector<256x128xf32>
      %c0_27 = arith.constant 0 : index
      %c0_28 = arith.constant 0 : index
      %35 = vector.load %arg7[%c0_27, %c0_28] : memref<256x128xf32, #tpu.memory_space<vmem>>, vector<256x128xf32>
      tpu.vector_store %arg7[%c0_27, %c0_28], %34 {strides = array<i32>} : memref<256x128xf32, #tpu.memory_space<vmem>>, vector<256x128xf32>,
    } else {
    }
    return
  }
  func.func @transform_0(%arg0: i32, %arg1: i32) -> (i32, i32) {
    %c0_i32 = arith.constant 0 : i32
    return %arg0, %arg1 : i32, i32
  }
  func.func @transform_1(%arg0: i32, %arg1: i32) -> (i32, i32) {
    %c0_i32 = arith.constant 0 : i32
    %c0_i32_0 = arith.constant 0 : i32
    return %arg1, %c0_i32 : i32, i32
  }
  func.func @transform_2(%arg0: i32, %arg1: i32) -> (i32, i32) {
    %c0_i32 = arith.constant 0 : i32
    %c0_i32_0 = arith.constant 0 : i32
    return %arg0, %c0_i32 : i32, i32
  }
  func.func @transform_3(%arg0: i32, %arg1: i32) -> (i32, i32) {
    %c0_i32 = arith.constant 0 : i32
    %c0_i32_0 = arith.constant 0 : i32
    %c0_i32_1 = arith.constant 0 : i32
    return %c0_i32, %c0_i32_0 : i32, i32
  }
  func.func @transform_4(%arg0: i32, %arg1: i32) -> (i32, i32) {
    %c0_i32 = arith.constant 0 : i32
    %c0_i32_0 = arith.constant 0 : i32
    %c0_i32_1 = arith.constant 0 : i32
    return %c0_i32, %c0_i32_0 : i32, i32
  }
  func.func @transform_5(%arg0: i32, %arg1: i32) -> (i32, i32) {
    %c0_i32 = arith.constant 0 : i32
    %c0_i32_0 = arith.constant 0 : i32
    return %arg0, %c0_i32 : i32, i32
  }
}

</mosaic_0001>

<bundles_post_ra>
// kernel: tpu_custom_call.1
= control target key start
LH: loop header
LB: loop body
LE: loop exit
PB: predicated region body
PF: predicated region fallthrough
CT: control target
= control target key end

     0   :  { %s5259_s0 = inlined_call_operand.hbm [shape: bf16[1024,1024], index: 0, kind: input, shape index: {}]   ;;  %s5260_s1 = inlined_call_operand.hbm [shape: bf16[1024,128], index: 1, kind: input, shape index: {}]   ;;  %s5261_s2 = inlined_call_operand.hbm [shape: bf16[1024,128], index: 2, kind: input, shape index: {}]   ;;  %s5262_s3 = inlined_call_operand.hbm [shape: f32[128,128], index: 3, kind: input, shape index: {}]   ;;  %s5263_s4 = inlined_call_operand.hbm [shape: f32[1,128], index: 4, kind: input, shape index: {}]   ;;  %s5264_s5 = inlined_call_operand.hbm [shape: f32[1024,128], index: 5, kind: output, shape index: {}]  }
   0x1   :  { %5281 = sst [smem:[#allocation27_spill]] %s5260_s1 }
   0x2   :  { %5282 = sst [smem:[#allocation28_spill]] %s5262_s3 }
   0x3   :  { %5283 = sst [smem:[#allocation29_spill]] %s5264_s5 }
   0x4   :  { %10 = vsyncpa [#allocation5], 0 }
   0x5   :  { %12 = vsyncpa [#allocation5 + $0x1], 0 }
   0x6   :  { %13 = vsyncpa [#allocation8], 0 }
   0x7   :  { %15 = vsyncpa [#allocation8 + $0x1], 0 }
   0x8   :  { %16 = vsyncpa [#allocation11], 0 }
   0x9   :  { %17 = vsyncpa [#allocation6], 0 }
   0xa   :  { %19 = vsyncpa [#allocation6 + $0x1], 0  ;;  %s4071_s18 = smov 0   ;;  %s4073_s19 = smov 0  }
   0xb   :  { %s4075_s20 = smov 0   ;;  %s4077_s21 = smov 0  }
   0xc   :  { %s4079_s22 = smov 0   ;;  %s4081_s23 = smov 0  }
   0xd   :  { %s4083_s24 = smov 0   ;;  %s4085_s25 = smov 0  }
   0xe   :  { %s4087_s26 = smov 0   ;;  %s4089_s27 = smov 0  }
   0xf   :  { %s4091_s28 = smov 0   ;;  %s4093_s29 = smov 0  }
  0x10   :  { %s4095_s30 = smov 0   ;;  %s4097_s6 = smov 0  }
  0x11 LB: > { %5284 = sst [smem:[#allocation19_spill]] %s3986_s22  ;;  %s4142_s7 = sadd.s32 4294967295, %s4022_s6   ;;  %s4022_s6 = sphi %s4097_s6, %s25_s6   ;;  %s4018_s30 = sphi %s4095_s30, %s5348_s30   ;;  %s4014_s29 = sphi %s4093_s29, %s5347_s29   ;;  %s4010_s28 = sphi %s4091_s28, %s5346_s28   ;;  %s4006_s27 = sphi %s4089_s27, %s5345_s27   ;;  %s4002_s26 = sphi %s4087_s26, %s5344_s26   ;;  %s3998_s25 = sphi %s4085_s25, %s5343_s25   ;;  %s3994_s24 = sphi %s4083_s24, %s5342_s24   ;;  %s3990_s23 = sphi %s4081_s23, %s5335_s23   ;;  %s3986_s22 = sphi %s4079_s22, %s5341_s22   ;;  %s3982_s21 = sphi %s4077_s21, %s5333_s21   ;;  %s3978_s20 = sphi %s4075_s20, %s5340_s20   ;;  %s3974_s19 = sphi %s4073_s19, %s5339_s19   ;;  %s3970_s18 = sphi %s4071_s18, %s5338_s18  }
  0x12   : > { %5285 = sst [smem:[#allocation20_spill]] %s3990_s23  ;;  %p2779_p0 = scmp.ge.s32.totalorder %s4022_s6, 1 }
  0x13   : > { %5286 = sst [smem:[#allocation21_spill]] %s4006_s27  ;;  %p5265_p1 = scmp.eq.s32.totalorder %s4142_s7, 0 }
  0x14   : > { %5287 = sst [smem:[#allocation22_spill]] %s4010_s28  ;;  %p190_p3 = scmp.lt.s32.totalorder %s4022_s6, 9 }
  0x15   : > { %s4024_s9 = smov [#allocation10]   ;;  %s5290_s3 = sld [smem:[#allocation28_spill]] }
  0x16   : > { %p4148_p4 = pnand %p2779_p0, %p190_p3  ;;  %s202_s10 = sshll.u32 %s4024_s9, 4  ;;  %s203_s10 = int_to_ptr.vmem [resolvable:$true] %s202_s10 }
  0x18   : > { %s5288_s8 = scalar_select %p4148_p4, 1, 0 }
  0x19   : > { %p3404_p5 = pneg %p4148_p4 }
  0x1b   : > { %p4156_p6 = pnand %p3404_p5, %p5265_p1  ;;  %s3718_s14 = scalar_lea.hbm %s5290_s3, 2048 }
  0x1c   : > { %p3719_p7 = scmp.ne.s32.totalorder %s5290_s3, %s3718_s14  ;;  %p3725_p11 = scmp.lt.u32.totalorder %s3718_s14, %s5290_s3 }
  0x1d   : > { %p5274_p8 = pneg %p4156_p6 }
  0x1f   : > { %p3721_p9 = pnand %p5274_p8, %p3719_p7 }
  0x21   : > { %p3722_p10 = pneg %p3721_p9 }
  0x23   : > { %p3727_p12 = pnand %p3725_p11, %p3722_p10 }
  0x25   : > { %3730 = shalt.err (!%p3727_p12)
}
  0x26   : > { %s3731_s12 = scalar_lea.vmem %s203_s10, 2048  ;;  %p3739_p5 = scmp.lt.s32.totalorder %s203_s10, %s203_s10 }
  0x27   : > { %p3732_p13 = scmp.ne.s32.totalorder %s203_s10, %s3731_s12  ;;  %p3740_p2 = scmp.lt.s32.totalorder %s3731_s12, %s3731_s12 }
  0x29   : > { %p3734_p0 = pnand %p3732_p13, %p5274_p8  ;;  %p3741_p1 = por %p3740_p2, %p3739_p5 }
  0x2b   : > { %p3735_p3 = pneg %p3734_p0 }
  0x2d   : > { %p3742_p4 = pnand %p3741_p1, %p3735_p3 }
  0x2f   : > { %3745 = shalt.err (!%p3742_p4)
}
  0x30   : > { %s4025_s13 = smov 128   ;;  %s4026_s14 = smov 8  }
  0x31   : > { %3407 = dma.hbm_to_vmem [thread:$0]  (!%p4156_p6), %s5290_s3, 2048, %s203_s10, [#allocation11], %s4025_s13, %s4025_s13, %s4026_s14  }
  0x32   : > { %s34_s17 = sadd.s32 1, %s4014_s29  ;;  %s37_s9 = sadd.s32 1, %s4018_s30 }
  0x33   : > { %p35_p1 = scmp.ge.s32.totalorder %s34_s17, 2  ;;  %p5273_p2 = scmp.eq.s32.totalorder %s4022_s6, 0 }
  0x34   : > { %s72_s12 = sadd.s32 1, %s3990_s23  ;;  %p79_p4 = scmp.ne.s32.totalorder %s3990_s23, %s3986_s22 }
  0x35   : > { %s5350_s17 = smov (%p35_p1, %s34_s17), 0  ;;  %s5352_s9 = smov (!%p35_p1, %s37_s9), %s4018_s30 }
  0x36   : > { %5291 = sst [smem:[#allocation23_spill]] %s5350_s17  ;;  %s42_s5 = ssub.s32 %s4014_s29, %s5350_s17 }
  0x37   : > { %p4195_p7 = por %p79_p4, %p5273_p2  ;;  %p39_p9 = scmp.ge.s32.totalorder %s5352_s9, 4 }
  0x38   : > { %p70_p10 = scmp.eq.s32.totalorder %s42_s5, 0  ;;  %p85_p11 = scmp.ne.s32.totalorder %s3986_s22, %s3982_s21 }
  0x39   : > { %p5272_p12 = scmp.lt.s32.totalorder %s4022_s6, 8  ;;  %s5354_s9 = smov (%p39_p9, %s5352_s9), 0 }
  0x3a   : > { %5293 = sst [smem:[#allocation24_spill]] %s5354_s9  ;;  %s4209_s14 = ssub.s32 %s4018_s30, %s5354_s9 }
  0x3b   : > { %s4205_s13 = scalar_select %p70_p10, %s3990_s23, %s72_s12  }
  0x3c   : > { %p5295_p13 = scmp.eq.s32.totalorder %s4142_s7, 0  ;;  %s43_s16 = sor.u32 %s42_s5, %s4209_s14 }
  0x3d   : > { %5294 = sst [smem:[#allocation25_spill]] %s4205_s13  ;;  %p4219_p5 = scmp.eq.s32.totalorder %s43_s16, 0 }
  0x3e   : > { %p4213_p0 = por %p85_p11, %p5295_p13  ;;  %s251_s3 = sand.u32 1, %s4022_s6  }
  0x3f   : > { %s5298_s21 = scalar_select %p4219_p5, 1, 0 }
  0x40   : > { %s5296_s15 = scalar_select %p4213_p0, 1, 0 }
  0x41   : > { %s253_s17 = sand.u32 1, %s3990_s23   ;;  %s2906_s12 = sshll.u32 %s4014_s29, 12 }
  0x42   : > { %5297 = sst [smem:[#allocation26_spill]] %s5296_s15  ;;  %s2788_s28 = sshll.u32 %s253_s17, 8 }
  0x43   : > { %s5299_s1 = sld [smem:[#allocation27_spill]]  ;;  %s255_s15 = scalar_lea.vmem [#allocation7], %s2788_s28 }
  0x44   : > { %s262_s5 = sshll.u32 %s255_s15, 4  ;;  %p4235_p1 = pnand %p5272_p12, %p4195_p7  ;;  %s4239_s5 = int_to_ptr.vmem [resolvable:$true] %s262_s5 }
  0x45   : > { %s4241_s17 = scalar_lea.sflag [#allocation8], %s251_s3 }
  0x46   : > { %p3748_p9 = pneg %p4235_p1 }
  0x49   : > { %s4229_s27 = scalar_lea.hbm %s5299_s1, %s2906_s12  ;;  %s3751_s13 = scalar_lea.hbm %s5299_s1, 8192 }
  0x4a   : > { %s3746_s9 = scalar_lea.hbm %s4229_s27, 4096  ;;  %p3752_p7 = scmp.lt.u32.totalorder %s4229_s27, %s5299_s1 }
  0x4b   : > { %p3747_p4 = scmp.ne.s32.totalorder %s4229_s27, %s3746_s9  ;;  %p3753_p13 = scmp.lt.u32.totalorder %s3751_s13, %s3746_s9 }
  0x4c   : > { %p3755_p12 = scmp.lt.u32.totalorder %s3746_s9, %s4229_s27 }
  0x4d   : > { %p3749_p10 = pnand %p3748_p9, %p3747_p4  ;;  %p3754_p3 = por %p3753_p13, %p3752_p7 }
  0x4f   : > { %p3750_p11 = pneg %p3749_p10  ;;  %p3756_p2 = por %p3755_p12, %p3754_p3 }
  0x51   : > { %p3757_p8 = pnand %p3756_p2, %p3750_p11 }
  0x53   : > { %3760 = shalt.err (!%p3757_p8)
}
  0x54   : > { %s3761_s3 = scalar_lea.vmem %s4239_s5, 4096  ;;  %s4027_s28 = smov [#allocation7]  }
  0x55   : > { %p3762_p4 = scmp.ne.s32.totalorder %s4239_s5, %s3761_s3  ;;  %s3766_s10 = sshll.u32 %s4027_s28, 4  ;;  %s3767_s10 = int_to_ptr.vmem [resolvable:$false] %s3766_s10 }
  0x56   : > { %s3768_s15 = scalar_lea.vmem %s3767_s10, 8192  ;;  %p3769_p5 = scmp.lt.s32.totalorder %s4239_s5, %s3767_s10 }
  0x57   : > { %p3764_p10 = pnand %p3762_p4, %p3748_p9  ;;  %p3770_p7 = scmp.lt.s32.totalorder %s3768_s15, %s3761_s3 }
  0x59   : > { %p3765_p0 = pneg %p3764_p10  ;;  %p3771_p13 = por %p3770_p7, %p3769_p5 }
  0x5b   : > { %p3772_p12 = pnand %p3771_p13, %p3765_p0 }
  0x5d   : > { %3775 = shalt.err (!%p3772_p12)
}
  0x5e   : > { %s5278_s9 = smov 64   ;;  %s4029_s13 = smov 4  }
  0x5f   : > { %3417 = dma.hbm_to_vmem [thread:$0]  (!%p4235_p1), %s4229_s27, 4096, %s4239_s5, %s4241_s17, %s5278_s9, %s5278_s9, %s4029_s13  }
  0x60   : > { %s4030_s12 = smov [#allocation12]   ;;  %s3776_s15 = scalar_lea.hbm %s5263_s4, 16 }
  0x61   : > { %s216_s28 = sshll.u32 %s4030_s12, 4  ;;  %p3777_p8 = scmp.ne.s32.totalorder %s5263_s4, %s3776_s15  ;;  %s217_s28 = int_to_ptr.vmem [resolvable:$true] %s216_s28 }
  0x62   : > { %p5301_p2 = pneg %p4156_p6  ;;  %p3783_p5 = scmp.lt.u32.totalorder %s3776_s15, %s5263_s4 }
  0x64   : > { %p3779_p0 = pnand %p3777_p8, %p5301_p2 }
  0x66   : > { %p3780_p3 = pneg %p3779_p0 }
  0x68   : > { %p3785_p1 = pnand %p3783_p5, %p3780_p3 }
  0x6a   : > { %3788 = shalt.err (!%p3785_p1)
}
  0x6b   : > { %s3789_s27 = scalar_lea.vmem %s217_s28, 16  ;;  %p5302_p11 = pmov %p5301_p2 }
  0x6c   : > { %p3790_p9 = scmp.ne.s32.totalorder %s217_s28, %s3789_s27  ;;  %s3796_s5 = scalar_lea.vmem %s217_s28, 32 }
  0x6d   : > { %p3797_p7 = scmp.lt.s32.totalorder %s217_s28, %s217_s28  ;;  %p3798_p13 = scmp.lt.s32.totalorder %s3796_s5, %s3789_s27 }
  0x6e   : > { %p3792_p4 = pnand %p3790_p9, %p5302_p11 }
  0x6f   : > { %p3799_p12 = por %p3798_p13, %p3797_p7 }
  0x70   : > { %p3793_p10 = pneg %p3792_p4 }
  0x72   : > { %p3800_p2 = pnand %p3799_p12, %p3793_p10 }
  0x74   : > { %3803 = shalt.err (!%p3800_p2)
}
  0x75   : > { %3410 = dma.hbm_to_vmem [thread:$0]  (!%p4156_p6), %s5263_s4, 16, %s217_s28, [#allocation11]  }
  0x76   : > { %s46_s23 = sadd.s32 1, %s4002_s26  ;;  %p5303_p8 = scmp.ne.s32.totalorder %s5298_s21, 0 }
  0x77   : > { %p53_p0 = scmp.ne.s32.totalorder %s4002_s26, %s3998_s25  ;;  %p59_p3 = scmp.ne.s32.totalorder %s3998_s25, %s3994_s24 }
  0x78   : > { %s4296_s11 = scalar_select %p5303_p8, %s4002_s26, %s46_s23  }
  0x79   : > { %s227_s12 = sand.u32 1, %s4002_s26   ;;  %s2785_s10 = sshll.u32 %s4014_s29, 2 }
  0x7a   : > { %p5304_p5 = scmp.eq.s32.totalorder %s4022_s6, 0  ;;  %p5305_p9 = scmp.eq.s32.totalorder %s4142_s7, 0 }
  0x7b   : > { %s2783_s15 = sshll.u32 %s227_s12, 9  ;;  %s2905_s16 = sshll.u32 %s4018_s30, 8 }
  0x7c   : > { %p55_p1 = por %p5304_p5, %p53_p0  ;;  %p4308_p11 = por %p5305_p9, %p59_p3 }
  0x7d   : > { %s238_s27 = sadd.s32 %s2905_s16, %s2785_s10  ;;  %s231_s28 = scalar_lea.vmem [#allocation4], %s2783_s15 }
  0x7e   : > { %s241_s5 = sshll.u32 %s231_s28, 4  ;;  %s2787_s21 = sshll.u32 %s238_s27, 6  ;;  %s4313_s5 = int_to_ptr.vmem [resolvable:$true] %s241_s5 }
  0x7f   : > { %s4318_s24 = scalar_lea.hbm %s5259_s0, %s2787_s21  ;;  %p5307_p6 = scmp.lt.s32.totalorder %s4022_s6, 8 }
  0x80   : > { %s4326_s10 = scalar_lea.sflag [#allocation5], %s227_s12  ;;  %s3804_s15 = scalar_lea.hbm %s4318_s24, 8192 }
  0x81   : > { %p4322_p4 = pnand %p5307_p6, %p55_p1  ;;  %p3805_p10 = scmp.ne.s32.totalorder %s4318_s24, %s3804_s15 }
  0x82   : > { %s3809_s28 = scalar_lea.hbm %s5259_s0, 65536  ;;  %p3810_p2 = scmp.lt.u32.totalorder %s4318_s24, %s5259_s0 }
  0x83   : > { %p3806_p7 = pneg %p4322_p4  ;;  %p3811_p8 = scmp.lt.u32.totalorder %s3809_s28, %s3804_s15 }
  0x84   : > { %p3813_p3 = scmp.lt.u32.totalorder %s3804_s15, %s4318_s24 }
  0x85   : > { %p3807_p13 = pnand %p3806_p7, %p3805_p10  ;;  %p3812_p0 = por %p3811_p8, %p3810_p2 }
  0x87   : > { %p3808_p12 = pneg %p3807_p13  ;;  %p3814_p5 = por %p3813_p3, %p3812_p0 }
  0x89   : > { %p3815_p1 = pnand %p3814_p5, %p3808_p12 }
  0x8b   : > { %3818 = shalt.err (!%p3815_p1)
}
  0x8c   : > { %s3819_s12 = scalar_lea.vmem %s4313_s5, 8192  ;;  %s4031_s22 = smov [#allocation4]  }
  0x8d   : > { %p3820_p9 = scmp.ne.s32.totalorder %s4313_s5, %s3819_s12  ;;  %s3824_s16 = sshll.u32 %s4031_s22, 4  ;;  %s3825_s16 = int_to_ptr.vmem [resolvable:$false] %s3824_s16 }
  0x8e   : > { %s3826_s27 = scalar_lea.vmem %s3825_s16, 16384  ;;  %p3827_p13 = scmp.lt.s32.totalorder %s4313_s5, %s3825_s16 }
  0x8f   : > { %p3822_p6 = pnand %p3820_p9, %p3806_p7  ;;  %p3828_p2 = scmp.lt.s32.totalorder %s3826_s27, %s3819_s12 }
  0x91   : > { %p3823_p10 = pneg %p3822_p6  ;;  %p3829_p8 = por %p3828_p2, %p3827_p13 }
  0x93   : > { %p3830_p0 = pnand %p3829_p8, %p3823_p10 }
  0x95   : > { %3833 = shalt.err (!%p3830_p0)
}
  0x96   : > { %s4032_s15 = smov 512   ;;  %s4033_s28 = smov 256  }
  0x97   : > { %s4034_s21 = smov 16   ;;  %s2778_s1 = sadd.s32 4294967294, %s4022_s6  }
  0x98   : > { %3414 = dma.hbm_to_vmem [thread:$0]  (!%p4322_p4), %s4318_s24, 8192, %s4313_s5, %s4326_s10, %s4032_s15, %s4033_s28, %s4034_s21  }
  0x99   : > { %s98_s12 = sadd.s32 1, %s3978_s20  ;;  %p5309_p7 = scmp.eq.s32.totalorder %s4209_s14, 0 }
  0x9a   : > { %p105_p12 = scmp.ne.s32.totalorder %s3978_s20, %s3974_s19  ;;  %p111_p3 = scmp.ne.s32.totalorder %s3974_s19, %s3970_s18 }
  0x9b   : > { %s4359_s22 = scalar_select %p5309_p7, %s3978_s20, %s98_s12  }
  0x9c   : > { %p183_p5 = scmp.eq.s32.totalorder %s2778_s1, 7  ;;  %s274_s16 = sand.u32 1, %s3978_s20  }
  0x9d   : > { %p5310_p1 = scmp.eq.s32.totalorder %s4022_s6, 0  ;;  %p5311_p6 = scmp.eq.s32.totalorder %s4142_s7, 0 }
  0x9e   : > { %p5313_p13 = scmp.eq.s32.totalorder %s4142_s7, 7  ;;  %p4380_p4 = por %p183_p5, %p111_p3 }
  0x9f   : > { %p107_p9 = por %p105_p12, %p5310_p1  ;;  %p4370_p10 = por %p111_p3, %p5311_p6 }
  0xa0   : > { %p4376_p2 = por %p5313_p13, %p105_p12  ;;  %s2791_s24 = sshll.u32 %s274_s16, 7 }
  0xa1   : > { %s5312_s27 = scalar_select %p4370_p10, 1, 0 }
  0xa2   : > { %s5314_s5 = scalar_select %p4376_p2, 1, 0 }
  0xa3   : > { %s5315_s14 = scalar_select %p4380_p4, 1, 0 }
  0xa4   : > { %s2907_s23 = sshll.u32 %s4018_s30, 11  ;;  %s276_s21 = scalar_lea.vmem [#allocation9], %s2791_s24 }
  0xa5   : > { %s4388_s28 = scalar_lea.hbm %s5261_s2, %s2907_s23  ;;  %s283_s1 = sshll.u32 %s276_s21, 4  ;;  %s4396_s1 = int_to_ptr.vmem [resolvable:$true] %s283_s1 }
  0xa6   : > { %p5316_p8 = scmp.lt.s32.totalorder %s4022_s6, 8  ;;  %s3834_s16 = scalar_lea.hbm %s4388_s28, 2048 }
  0xa7   : > { %p3835_p7 = scmp.ne.s32.totalorder %s4388_s28, %s3834_s16  ;;  %s3839_s10 = scalar_lea.hbm %s5261_s2, 8192 }
  0xa8   : > { %p4392_p0 = pnand %p5316_p8, %p107_p9  ;;  %p3840_p1 = scmp.lt.u32.totalorder %s4388_s28, %s5261_s2 }
  0xa9   : > { %p3841_p9 = scmp.lt.u32.totalorder %s3839_s10, %s3834_s16  ;;  %p3843_p13 = scmp.lt.u32.totalorder %s3834_s16, %s4388_s28 }
  0xaa   : > { %p3836_p12 = pneg %p4392_p0 }
  0xab   : > { %p3842_p6 = por %p3841_p9, %p3840_p1 }
  0xac   : > { %p3837_p3 = pnand %p3836_p12, %p3835_p7 }
  0xad   : > { %p3844_p8 = por %p3843_p13, %p3842_p6 }
  0xae   : > { %p3838_p5 = pneg %p3837_p3 }
  0xb0   : > { %p3845_p4 = pnand %p3844_p8, %p3838_p5 }
  0xb2   : > { %3848 = shalt.err (!%p3845_p4)
}
  0xb3   : > { %s3849_s9 = scalar_lea.vmem %s4396_s1, 2048  ;;  %s4035_s23 = smov [#allocation9]  }
  0xb4   : > { %p3850_p7 = scmp.ne.s32.totalorder %s4396_s1, %s3849_s9  ;;  %s3854_s24 = sshll.u32 %s4035_s23, 4  ;;  %s3855_s24 = int_to_ptr.vmem [resolvable:$false] %s3854_s24 }
  0xb5   : > { %s3856_s15 = scalar_lea.vmem %s3855_s24, 4096  ;;  %p3857_p10 = scmp.lt.s32.totalorder %s4396_s1, %s3855_s24 }
  0xb6   : > { %p3852_p3 = pnand %p3850_p7, %p3836_p12  ;;  %p3858_p1 = scmp.lt.s32.totalorder %s3856_s15, %s3849_s9 }
  0xb8   : > { %p3853_p2 = pneg %p3852_p3  ;;  %p3859_p9 = por %p3858_p1, %p3857_p10 }
  0xba   : > { %p3860_p6 = pnand %p3859_p9, %p3853_p2 }
  0xbc   : > { %3863 = shalt.err (!%p3860_p6)
}
  0xbd   : > { %s5318_s16 = smov 64   ;;  %p5319_p4 = scmp.ne.s32.totalorder %s5288_s8, 0 }
  0xbe   : > { %3420 = dma.hbm_to_vmem [thread:$0]  (!%p4392_p0), %s4388_s28, 2048, %s4396_s1, %s4241_s17, %s5318_s16, %s5318_s16, %s4029_s13  }
  0xbf   : > { %295 = sbr.rel (%p5319_p4) target bundleno = 1055 (0x41f), region = 40  ;;  %s297_s10 = sand.u32 (!%p5319_p4), 1, %s3998_s25  }
  0xc0   : > { %s2795_s21 = sshll.u32 (!%p5319_p4), %s297_s10, 9  ;;  %s298_s9 = scalar_lea.sflag (!%p5319_p4), [#allocation5], %s297_s10 }
  0xc1   : > { %s4430_s23 = scalar_lea.vmem (!%p5319_p4), [#allocation4], %s2795_s21 }
  0xc6   : > { %3949 = dma.done.wait (%p4308_p11), %s298_s9, 8192  }
  0xc7   : > { %3951 = vsyncadd (%p4308_p11), %s298_s9, 4294959104  ;;  %s5320_s12 = sld [smem:[#allocation19_spill]]  ;;  %s5321_s24 = sld [smem:[#allocation26_spill]] }
  0xc8   : > { %s306_s15 = sand.u32 1, %s4142_s7  }
  0xc9   : > { %s307_s8 = scalar_lea.sflag [#allocation8], %s306_s15 }
  0xcd   : > { %s308_s17 = sand.u32 1, %s5320_s12   ;;  %p5322_p10 = scmp.ne.s32.totalorder %s5321_s24, 0 }
  0xce   : > { %s2796_s13 = sshll.u32 %s308_s17, 8 }
  0xcf   : > { %s4438_s28 = scalar_lea.vmem [#allocation7], %s2796_s13 }
  0xd0   : > { %3953 = dma.done.wait (%p5322_p10), %s307_s8, 4096  }
  0xd1   : > { %3955 = vsyncadd (%p5322_p10), %s307_s8, 4294963200  ;;  %s4445_s1 = sand.u32 1, %s3974_s19   ;;  %p5323_p11 = scmp.ne.s32.totalorder %s5312_s27, 0 }
  0xd2   : > { %s2797_s3 = sshll.u32 %s4445_s1, 7 }
  0xd3   : > { %s4448_s16 = scalar_lea.vmem [#allocation9], %s2797_s3 }
  0xd4   : > { %3957 = dma.done.wait (%p5323_p11), %s307_s8, 2048  }
  0xd5   : > { %3959 = vsyncadd (%p5323_p11), %s307_s8, 4294965248  ;;  %p5324_p2 = scmp.eq.s32.totalorder %s4142_s7, 0 }
  0xd7   : > { %3961 = dma.done.wait (%p5324_p2), [#allocation11], 2064   ;;  %p5325_p0 = pmov %p5324_p2 }
  0xd8   : > { %s2800_s10 = sshll.u32 %s4445_s1, 8  ;;  %s5326_s9 = sld [smem:[#allocation21_spill]] }
  0xd9   : > { %3963 = vsyncadd (%p5325_p0), [#allocation11], 4294965232  ;;  %s4459_s21 = scalar_lea.vmem [#allocation13], %s2800_s10 }
  0xde   : > { %p2801_p12 = scmp.ne.s32.totalorder %s5326_s9, 0 }
  0xdf   : > { %vm406_vm0 = vcmask (!%p2801_p12), 7168   ;;  %v4036_v0 = vmov (!%p2801_p12), 0.0  }
  0xe0   : > { %373 = sbr.rel (%p2801_p12) target bundleno = 256 (0x100), region = 64  ;;  %374 = vst [vmem:[#allocation2] sm:$0xff] (!%p2801_p12), %v4036_v0  ;;  %375 = vst [vmem:[#allocation2 + $0x8] sm:$0xff] (!%p2801_p12), %v4036_v0 }
  0xe1   : > { %376 = vst [vmem:[#allocation2 + $0x10] sm:$0xff] (!%p2801_p12), %v4036_v0  ;;  %377 = vst [vmem:[#allocation2 + $0x18] sm:$0xff] (!%p2801_p12), %v4036_v0 }
  0xe2   : > { %378 = vst [vmem:[#allocation2 + $0x20] sm:$0xff] (!%p2801_p12), %v4036_v0  ;;  %379 = vst [vmem:[#allocation2 + $0x28] sm:$0xff] (!%p2801_p12), %v4036_v0 }
  0xe3   : > { %380 = vst [vmem:[#allocation2 + $0x30] sm:$0xff] (!%p2801_p12), %v4036_v0  ;;  %381 = vst [vmem:[#allocation2 + $0x38] sm:$0xff] (!%p2801_p12), %v4036_v0 }
  0xe4   : > { %382 = vst [vmem:[#allocation2 + $0x40] sm:$0xff] (!%p2801_p12), %v4036_v0  ;;  %383 = vst [vmem:[#allocation2 + $0x48] sm:$0xff] (!%p2801_p12), %v4036_v0 }
  0xe5   : > { %384 = vst [vmem:[#allocation2 + $0x50] sm:$0xff] (!%p2801_p12), %v4036_v0  ;;  %385 = vst [vmem:[#allocation2 + $0x58] sm:$0xff] (!%p2801_p12), %v4036_v0 }
  0xe6   : > { %386 = vst [vmem:[#allocation2 + $0x60] sm:$0xff] (!%p2801_p12), %v4036_v0  ;;  %387 = vst [vmem:[#allocation2 + $0x68] sm:$0xff] (!%p2801_p12), %v4036_v0 }
  0xe7   : > { %388 = vst [vmem:[#allocation2 + $0x70] sm:$0xff] %v4036_v0  ;;  %389 = vst [vmem:[#allocation2 + $0x78] sm:$0xff] %v4036_v0 }
  0xe8   : > { %390 = vst [vmem:[#allocation2 + $0x80] sm:$0xff] %v4036_v0  ;;  %391 = vst [vmem:[#allocation2 + $0x88] sm:$0xff] %v4036_v0 }
  0xe9   : > { %392 = vst [vmem:[#allocation2 + $0x90] sm:$0xff] %v4036_v0  ;;  %393 = vst [vmem:[#allocation2 + $0x98] sm:$0xff] %v4036_v0 }
  0xea   : > { %394 = vst [vmem:[#allocation2 + $0xa0] sm:$0xff] %v4036_v0  ;;  %395 = vst [vmem:[#allocation2 + $0xa8] sm:$0xff] %v4036_v0 }
  0xeb   : > { %396 = vst [vmem:[#allocation2 + $0xb0] sm:$0xff] %v4036_v0  ;;  %397 = vst [vmem:[#allocation2 + $0xb8] sm:$0xff] %v4036_v0 }
  0xec   : > { %398 = vst [vmem:[#allocation2 + $0xc0] sm:$0xff] %v4036_v0  ;;  %399 = vst [vmem:[#allocation2 + $0xc8] sm:$0xff] %v4036_v0 }
  0xed   : > { %400 = vst [vmem:[#allocation2 + $0xd0] sm:$0xff] %v4036_v0  ;;  %401 = vst [vmem:[#allocation2 + $0xd8] sm:$0xff] %v4036_v0 }
  0xee   : > { %402 = vst [vmem:[#allocation2 + $0xe0] sm:$0xff] %v4036_v0  ;;  %403 = vst [vmem:[#allocation2 + $0xe8] sm:$0xff] %v4036_v0 }
  0xef   : > { %404 = vst [vmem:[#allocation2 + $0xf0] sm:$0xff] %v4036_v0  ;;  %405 = vst [vmem:[#allocation2 + $0xf8] sm:$0xff] %v4036_v0 }
  0xf0   : > { %407 = vst.msk [vmem:[#allocation3] sm:$0xff] %vm406_vm0, %v4036_v0  ;;  %408 = vst.msk [vmem:[#allocation3 + $0x8] sm:$0xff] %vm406_vm0, %v4036_v0 }
  0xf1   : > { %409 = vst.msk [vmem:[#allocation3 + $0x10] sm:$0xff] %vm406_vm0, %v4036_v0  ;;  %410 = vst.msk [vmem:[#allocation3 + $0x18] sm:$0xff] %vm406_vm0, %v4036_v0 }
  0xf2   : > { %411 = vst.msk [vmem:[#allocation3 + $0x20] sm:$0xff] %vm406_vm0, %v4036_v0  ;;  %412 = vst.msk [vmem:[#allocation3 + $0x28] sm:$0xff] %vm406_vm0, %v4036_v0 }
  0xf3   : > { %413 = vst.msk [vmem:[#allocation3 + $0x30] sm:$0xff] %vm406_vm0, %v4036_v0  ;;  %414 = vst.msk [vmem:[#allocation3 + $0x38] sm:$0xff] %vm406_vm0, %v4036_v0 }
  0xf4   : > { %415 = vst.msk [vmem:[#allocation3 + $0x40] sm:$0xff] %vm406_vm0, %v4036_v0  ;;  %416 = vst.msk [vmem:[#allocation3 + $0x48] sm:$0xff] %vm406_vm0, %v4036_v0 }
  0xf5   : > { %417 = vst.msk [vmem:[#allocation3 + $0x50] sm:$0xff] %vm406_vm0, %v4036_v0  ;;  %418 = vst.msk [vmem:[#allocation3 + $0x58] sm:$0xff] %vm406_vm0, %v4036_v0 }
  0xf6   : > { %419 = vst.msk [vmem:[#allocation3 + $0x60] sm:$0xff] %vm406_vm0, %v4036_v0  ;;  %420 = vst.msk [vmem:[#allocation3 + $0x68] sm:$0xff] %vm406_vm0, %v4036_v0 }
  0xf7   : > { %421 = vst.msk [vmem:[#allocation3 + $0x70] sm:$0xff] %vm406_vm0, %v4036_v0  ;;  %422 = vst.msk [vmem:[#allocation3 + $0x78] sm:$0xff] %vm406_vm0, %v4036_v0 }
  0xf8   : > { %423 = vst.msk [vmem:[#allocation3 + $0x80] sm:$0xff] %vm406_vm0, %v4036_v0  ;;  %424 = vst.msk [vmem:[#allocation3 + $0x88] sm:$0xff] %vm406_vm0, %v4036_v0 }
  0xf9   : > { %425 = vst.msk [vmem:[#allocation3 + $0x90] sm:$0xff] %vm406_vm0, %v4036_v0  ;;  %426 = vst.msk [vmem:[#allocation3 + $0x98] sm:$0xff] %vm406_vm0, %v4036_v0 }
  0xfa   : > { %427 = vst.msk [vmem:[#allocation3 + $0xa0] sm:$0xff] %vm406_vm0, %v4036_v0  ;;  %428 = vst.msk [vmem:[#allocation3 + $0xa8] sm:$0xff] %vm406_vm0, %v4036_v0 }
  0xfb   : > { %429 = vst.msk [vmem:[#allocation3 + $0xb0] sm:$0xff] %vm406_vm0, %v4036_v0  ;;  %430 = vst.msk [vmem:[#allocation3 + $0xb8] sm:$0xff] %vm406_vm0, %v4036_v0 }
  0xfc   : > { %431 = vst.msk [vmem:[#allocation3 + $0xc0] sm:$0xff] %vm406_vm0, %v4036_v0  ;;  %432 = vst.msk [vmem:[#allocation3 + $0xc8] sm:$0xff] %vm406_vm0, %v4036_v0 }
  0xfd   : > { %433 = vst.msk [vmem:[#allocation3 + $0xd0] sm:$0xff] %vm406_vm0, %v4036_v0  ;;  %434 = vst.msk [vmem:[#allocation3 + $0xd8] sm:$0xff] %vm406_vm0, %v4036_v0 }
  0xfe   : > { %435 = vst.msk [vmem:[#allocation3 + $0xe0] sm:$0xff] %vm406_vm0, %v4036_v0  ;;  %436 = vst.msk [vmem:[#allocation3 + $0xe8] sm:$0xff] %vm406_vm0, %v4036_v0 }
  0xff   : > { %437 = vst.msk [vmem:[#allocation3 + $0xf0] sm:$0xff] %vm406_vm0, %v4036_v0  ;;  %438 = vst.msk [vmem:[#allocation3 + $0xf8] sm:$0xff] %vm406_vm0, %v4036_v0 }
 0x100 PF: > { %v3556_v1 = vld [vmem:[%s4438_s28 + $0x40] sm:$0xff]   ;;  %v3560_v5 = vld [vmem:[%s4438_s28 + $0x48] sm:$0xff]   ;;  %v3564_v9 = vld [vmem:[%s4438_s28 + $0x50] sm:$0xff]   ;;  %vm1849_vm1 = vcmask 7168   ;;  %s5327_s7 = sld [smem:[#allocation21_spill]] }
 0x101   : > { %v3557_v2 = vld [vmem:[%s4438_s28 + $0xc0] sm:$0xff]   ;;  %2988 = vmatprep.subr.bf16.mxu0 %v3556_v1  ;;  %v3561_v6 = vld [vmem:[%s4438_s28 + $0xc8] sm:$0xff]   ;;  %v3565_v10 = vld [vmem:[%s4438_s28 + $0xd0] sm:$0xff]  }
 0x102   : > { %v3558_v3 = vld [vmem:[%s4438_s28] sm:$0xff]   ;;  %3100 = vmatprep.subr.bf16.mxu1 %v3557_v2  ;;  %v3562_v7 = vld [vmem:[%s4438_s28 + $0x8] sm:$0xff]   ;;  %v3566_v11 = vld [vmem:[%s4438_s28 + $0x10] sm:$0xff]  }
 0x103   : > { %v3559_v4 = vld [vmem:[%s4438_s28 + $0x80] sm:$0xff]   ;;  %2989 = vmatpush3.bf16.msra.mxu0 %v3558_v3  ;;  %v3563_v8 = vld [vmem:[%s4438_s28 + $0x88] sm:$0xff]   ;;  %v3567_v12 = vld [vmem:[%s4438_s28 + $0x90] sm:$0xff]  }
 0x104   : > { %3101 = vmatpush3.bf16.msra.mxu1 %v3559_v4  ;;  %2990 = vmatprep.subr.bf16.mxu0 %v3560_v5  ;;  %v3568_v13 = vld [vmem:[%s4438_s28 + $0x58] sm:$0xff]   ;;  %v3572_v17 = vld [vmem:[%s4438_s28 + $0x60] sm:$0xff]   ;;  %v3576_v21 = vld [vmem:[%s4438_s28 + $0x68] sm:$0xff]  }
 0x105   : > { %3102 = vmatprep.subr.bf16.mxu1 %v3561_v6  ;;  %v3569_v14 = vld [vmem:[%s4438_s28 + $0xd8] sm:$0xff]   ;;  %v3573_v18 = vld [vmem:[%s4438_s28 + $0xe0] sm:$0xff]   ;;  %v3577_v22 = vld [vmem:[%s4438_s28 + $0xe8] sm:$0xff]  }
 0x106   : > { %v3570_v15 = vld [vmem:[%s4438_s28 + $0x18] sm:$0xff]   ;;  %v3574_v19 = vld [vmem:[%s4438_s28 + $0x20] sm:$0xff]   ;;  %v3578_v23 = vld [vmem:[%s4438_s28 + $0x28] sm:$0xff]   ;;  %p2898_p5 = scmp.ne.s32.totalorder %s5327_s7, 1 }
 0x107   : > { %2991 = vmatpush3.bf16.msra.mxu0 %v3562_v7  ;;  %v3571_v16 = vld [vmem:[%s4438_s28 + $0x98] sm:$0xff]   ;;  %v3575_v20 = vld [vmem:[%s4438_s28 + $0xa0] sm:$0xff]   ;;  %v3579_v24 = vld [vmem:[%s4438_s28 + $0xa8] sm:$0xff]  }
 0x108   : > { %3103 = vmatpush3.bf16.msra.mxu1 %v3563_v8  ;;  %2992 = vmatprep.subr.bf16.mxu0 %v3564_v9  ;;  %v3580_v25 = vld [vmem:[%s4438_s28 + $0x70] sm:$0xff]   ;;  %v3584_v29 = vld [vmem:[%s4438_s28 + $0x78] sm:$0xff]   ;;  %v439_v33 = vld [vmem:[%s4430_s23] sm:$0xff] }
 0x109   : > { %3104 = vmatprep.subr.bf16.mxu1 %v3565_v10  ;;  %v3581_v26 = vld [vmem:[%s4438_s28 + $0xf0] sm:$0xff]   ;;  %v3585_v30 = vld [vmem:[%s4438_s28 + $0xf8] sm:$0xff]   ;;  %v440_v35 = vld [vmem:[%s4430_s23 + $0x8] sm:$0xff]  ;;  %v1529_v56 = vunpack.c.l.bf16 %v439_v33  ;;  %v1530_v57 = vunpack.c.h.bf16 %v439_v33 }
 0x10a   : > { %v3582_v27 = vld [vmem:[%s4438_s28 + $0x30] sm:$0xff]   ;;  %v3586_v31 = vld [vmem:[%s4438_s28 + $0x38] sm:$0xff]   ;;  %v443_v39 = vld [vmem:[%s4430_s23 + $0x20] sm:$0xff]  ;;  %v1531_v62 = vunpack.c.l.bf16 %v440_v35  ;;  %v1532_v1 = vunpack.c.h.bf16 %v440_v35 }
 0x10b   : > { %2993 = vmatpush3.bf16.msra.mxu0 %v3566_v11  ;;  %v3583_v28 = vld [vmem:[%s4438_s28 + $0xb0] sm:$0xff]   ;;  %v3587_v32 = vld [vmem:[%s4438_s28 + $0xb8] sm:$0xff]   ;;  %v444_v44 = vld [vmem:[%s4430_s23 + $0x28] sm:$0xff]  ;;  %v1537_v47 = vunpack.c.l.bf16 %v443_v39  ;;  %v1538_v48 = vunpack.c.h.bf16 %v443_v39  ;;  %v1657_v2 = vadd.f32 %v1530_v57, %v1529_v56 }
 0x10c   : > { %3105 = vmatpush3.bf16.msra.mxu1 %v3567_v12  ;;  %2994 = vmatprep.subr.bf16.mxu0 %v3568_v13  ;;  %v4592_v34 = vld [vmem:[%s4430_s23 + $0x10] sm:$0xff]  ;;  %v4597_v37 = vld [vmem:[%s4430_s23 + $0x18] sm:$0xff]  ;;  %v1539_v49 = vunpack.c.l.bf16 %v444_v44  ;;  %v4613_v50 = vld [vmem:[%s4430_s23 + $0x40] sm:$0xff]  ;;  %v1540_v54 = vunpack.c.h.bf16 %v444_v44 }
 0x10d   : > { %3106 = vmatprep.subr.bf16.mxu1 %v3569_v14  ;;  %v2803_v36 = vcombine.high %v439_v33, %v4592_v34  ;;  %v2802_v38 = vcombine.low %v439_v33, %v4592_v34  ;;  %v4602_v40 = vld [vmem:[%s4430_s23 + $0x30] sm:$0xff]  ;;  %v2805_v41 = vcombine.high %v440_v35, %v4597_v37  ;;  %v2804_v42 = vcombine.low %v440_v35, %v4597_v37  ;;  %v4609_v45 = vld [vmem:[%s4430_s23 + $0x38] sm:$0xff]  ;;  %v4619_v52 = vld [vmem:[%s4430_s23 + $0x48] sm:$0xff] }
 0x10e   : > { %v2807_v43 = vcombine.high %v443_v39, %v4602_v40  ;;  %v2809_v46 = vcombine.high %v444_v44, %v4609_v45  ;;  %v4616_v51 = vld [vmem:[%s4430_s23 + $0x50] sm:$0xff]  ;;  %v4622_v53 = vld [vmem:[%s4430_s23 + $0x58] sm:$0xff]  ;;  %v1667_v55 = vadd.f32 %v1538_v48, %v1537_v47  ;;  %v2806_v58 = vcombine.low %v443_v39, %v4602_v40  ;;  %v4631_v3 = vld [vmem:[%s4430_s23 + $0x60] sm:$0xff] }
 0x10f   : > { %2995 = vmatpush3.bf16.msra.mxu0 %v3570_v15  ;;  %1143 = vmatprep.mubr.bf16.mxu0 %v2803_v36  ;;  %v2808_v59 = vcombine.low %v444_v44, %v4609_v45  ;;  %v2811_v60 = vcombine.high %v4613_v50, %v4616_v51  ;;  %v2813_v63 = vcombine.high %v4619_v52, %v4622_v53  ;;  %v4634_v4 = vld [vmem:[%s4430_s23 + $0x70] sm:$0xff]  ;;  %v4637_v5 = vld [vmem:[%s4430_s23 + $0x68] sm:$0xff]  ;;  %v4640_v6 = vld [vmem:[%s4430_s23 + $0x78] sm:$0xff]  ;;  %v1534_v57 = vunpack.c.h.bf16 %v4592_v34 }
 0x110   : > { %3107 = vmatpush3.bf16.msra.mxu1 %v3571_v16  ;;  %2996 = vmatprep.subr.bf16.mxu0 %v3572_v17  ;;  %v1668_v61 = vadd.f32 %v1667_v55, %v1539_v49  ;;  %v4643_v7 = vld [vmem:[%s4430_s23 + $0x80] sm:$0xff]  ;;  %v4646_v8 = vld [vmem:[%s4430_s23 + $0x90] sm:$0xff]  ;;  %v1658_v9 = vadd.f32 %v1657_v2, %v1531_v62  ;;  %v4649_v10 = vld [vmem:[%s4430_s23 + $0x88] sm:$0xff]  ;;  %v2810_v13 = vcombine.low %v4613_v50, %v4616_v51  ;;  %v1551_v2 = vunpack.c.l.bf16 %v4622_v53 }
 0x111   : > { %3108 = vmatprep.subr.bf16.mxu1 %v3573_v18  ;;  %1304 = vmatprep.mubr.bf16.mxu1 %v2805_v41  ;;  %v4652_v11 = vld [vmem:[%s4430_s23 + $0x98] sm:$0xff]  ;;  %v4655_v12 = vld [vmem:[%s4430_s23 + $0xa0] sm:$0xff]  ;;  %v4660_v14 = vld [vmem:[%s4430_s23 + $0xb0] sm:$0xff]  ;;  %v1541_v18 = vunpack.c.l.bf16 %v4602_v40 }
 0x112   : > { %v1669_v0 = vadd.f32 %v1668_v61, %v1540_v54  ;;  %v4663_v15 = vld [vmem:[%s4430_s23 + $0xa8] sm:$0xff]  ;;  %v4666_v16 = vld [vmem:[%s4430_s23 + $0xb8] sm:$0xff]  ;;  %v1659_v17 = vadd.f32 %v1658_v9, %v1532_v1  ;;  %v2820_v33 = vcombine.low %v4649_v10, %v4652_v11  ;;  %v2823_v35 = vcombine.high %v4655_v12, %v4660_v14  ;;  %v4709_v39 = vld [vmem:[%s4430_s23 + $0xf0] sm:$0xff] }
 0x113   : > { %2997 = vmatpush3.bf16.msra.mxu0 %v3574_v19  ;;  %v1542_v19 = vunpack.c.h.bf16 %v4602_v40  ;;  %v2825_v36 = vcombine.high %v4663_v15, %v4666_v16  ;;  %v2822_v40 = vcombine.low %v4655_v12, %v4660_v14  ;;  %v4714_v41 = vld [vmem:[%s4430_s23 + $0xe8] sm:$0xff]  ;;  %v2824_v47 = vcombine.low %v4663_v15, %v4666_v16 }
 0x114   : > { %3109 = vmatpush3.bf16.msra.mxu1 %v3575_v20  ;;  %2998 = vmatprep.subr.bf16.mxu0 %v3576_v21  ;;  %v2812_v20 = vcombine.low %v4619_v52, %v4622_v53  ;;  %v2815_v21 = vcombine.high %v4631_v3, %v4634_v4  ;;  %v1536_v61 = vunpack.c.h.bf16 %v4597_v37  ;;  %v1550_v1 = vunpack.c.h.bf16 %v4616_v51 }
 0x115   : > { %3110 = vmatprep.subr.bf16.mxu1 %v3577_v22  ;;  %1670 = vadd.xlane.f32.xlu1 %v1669_v0  ;;  %v2817_v22 = vcombine.high %v4637_v5, %v4640_v6  ;;  %v1672_v44 = vadd.f32 %v1542_v19, %v1541_v18  ;;  %v1549_v0 = vunpack.c.l.bf16 %v4616_v51  ;;  %v1545_v9 = vunpack.c.l.bf16 %v4613_v50 }
 0x116   : > { %1660 = vadd.xlane.f32.xlu0 %v1659_v17  ;;  %v1547_v19 = vunpack.c.l.bf16 %v4619_v52  ;;  %v1558_v51 = vunpack.c.h.bf16 %v4634_v4 }
 0x117   : > { %2999 = vmatpush3.bf16.msra.mxu0 %v3578_v23  ;;  %v2814_v23 = vcombine.low %v4631_v3, %v4634_v4  ;;  %v1682_v18 = vadd.f32 %v1550_v1, %v1549_v0 }
 0x118   : > { %3111 = vmatpush3.bf16.msra.mxu1 %v3579_v24  ;;  %3000 = vmatprep.subr.bf16.mxu0 %v3580_v25  ;;  %v4679_v24 = vld [vmem:[%s4430_s23 + $0xc0] sm:$0xff]  ;;  %v2816_v25 = vcombine.low %v4637_v5, %v4640_v6 }
 0x119   : > { %3112 = vmatprep.subr.bf16.mxu1 %v3581_v26  ;;  %v2819_v26 = vcombine.high %v4643_v7, %v4646_v8 }
 0x11b   : > { %3001 = vmatpush3.bf16.msra.mxu0 %v3582_v27  ;;  %v2818_v27 = vcombine.low %v4643_v7, %v4646_v8 }
 0x11c   : > { %3113 = vmatpush3.bf16.msra.mxu1 %v3583_v28  ;;  %3002 = vmatprep.subr.bf16.mxu0 %v3584_v29  ;;  %v4688_v28 = vld [vmem:[%s4430_s23 + $0xd0] sm:$0xff]  ;;  %v4691_v29 = vld [vmem:[%s4430_s23 + $0xc8] sm:$0xff] }
 0x11d   : > { %3114 = vmatprep.subr.bf16.mxu1 %v3585_v30  ;;  %v4694_v30 = vld [vmem:[%s4430_s23 + $0xd8] sm:$0xff]  ;;  %v2827_v48 = vcombine.high %v4679_v24, %v4688_v28  ;;  %v2826_v54 = vcombine.low %v4679_v24, %v4688_v28 }
 0x11e   : > { %v2829_v49 = vcombine.high %v4691_v29, %v4694_v30 }
 0x11f   : > { %3003 = vmatpush3.bf16.msra.mxu0 %v3586_v31  ;;  %v1543_v31 = vunpack.c.l.bf16 %v4609_v45 }
 0x120   : > { %3115 = vmatpush3.bf16.msra.mxu1 %v3587_v32  ;;  %v2821_v32 = vcombine.high %v4649_v10, %v4652_v11 }
 0x121   : > { %v1673_v56 = vadd.f32 %v1672_v44, %v1543_v31 }
 0x122   : > { %1144 = vmatmul.mubr.bf16.vlgmr.msra.gmra.mrb[0].mxu0 %v2802_v38  ;;  %v4706_v38 = vld [vmem:[%s4430_s23 + $0xe0] sm:$0xff] }
 0x123   : > { %1305 = vmatmul.mubr.bf16.vlgmr.msra.gmra.mrb[0].mxu1 %v2804_v42  ;;  %1151 = vmatprep.mubr.bf16.mxu0 %v2807_v43  ;;  %v4717_v42 = vld [vmem:[%s4430_s23 + $0xf8] sm:$0xff]  ;;  %v1544_v43 = vunpack.c.h.bf16 %v4609_v45  ;;  %v2828_v45 = vcombine.low %v4691_v29, %v4694_v30  ;;  %v2831_v55 = vcombine.high %v4706_v38, %v4709_v39 }
 0x124   : > { %1312 = vmatprep.mubr.bf16.mxu1 %v2809_v46  ;;  %v1533_v46 = vunpack.c.l.bf16 %v4592_v34  ;;  %v1552_v34 = vunpack.c.h.bf16 %v4622_v53  ;;  %v1683_v53 = vadd.f32 %v1682_v18, %v1551_v2  ;;  %v1563_v2 = vunpack.c.l.bf16 %v4649_v10 }
 0x125   : > { %v1674_v62 = vadd.f32 %v1673_v56, %v1544_v43  ;;  %v1560_v43 = vunpack.c.h.bf16 %v4640_v6  ;;  %v1554_v56 = vunpack.c.h.bf16 %v4631_v3 }
 0x127   : > { %1675 = vadd.xlane.f32.xlu1 %v1674_v62 }
 0x12a   : > { %1152 = vmatmul.mubr.bf16.gmra.mrb[4].mxu0 %v2806_v58  ;;  %v2833_v58 = vcombine.high %v4714_v41, %v4717_v42 }
 0x12b   : > { %1313 = vmatmul.mubr.bf16.gmra.mrb[4].mxu1 %v2808_v59  ;;  %1159 = vmatprep.mubr.bf16.mxu0 %v2811_v60  ;;  %v2830_v59 = vcombine.low %v4706_v38, %v4709_v39  ;;  %v1535_v60 = vunpack.c.l.bf16 %v4597_v37  ;;  %v1548_v37 = vunpack.c.h.bf16 %v4619_v52  ;;  %v1555_v52 = vunpack.c.l.bf16 %v4637_v5 }
 0x12c   : > { %1320 = vmatprep.mubr.bf16.mxu1 %v2813_v63  ;;  %v1662_v63 = vadd.f32 %v1534_v57, %v1533_v46  ;;  %v1684_v57 = vadd.f32 %v1683_v53, %v1552_v34  ;;  %v2832_v53 = vcombine.low %v4714_v41, %v4717_v42 }
 0x12e   : > { %v1663_v17 = vadd.f32 %v1662_v63, %v1535_v60  ;;  %v1565_v60 = vunpack.c.l.bf16 %v4646_v8  ;;  %v1567_v63 = vunpack.c.l.bf16 %v4652_v11  ;;  %1685 = vadd.xlane.f32.xlu1 %v1684_v57  ;;  %v1584_v57 = vunpack.c.h.bf16 %v4694_v30 }
 0x130   : > { %v1664_v31 = vadd.f32 %v1663_v17, %v1536_v61  ;;  %v1566_v61 = vunpack.c.h.bf16 %v4646_v8  ;;  %v1574_v17 = vunpack.c.h.bf16 %v4660_v14 }
 0x132   : > { %1160 = vmatmul.mubr.bf16.gmra.mrb[8].mxu0 %v2810_v13  ;;  %v1546_v13 = vunpack.c.h.bf16 %v4613_v50  ;;  %v1553_v50 = vunpack.c.l.bf16 %v4631_v3  ;;  %1665 = vadd.xlane.f32.xlu0 %v1664_v31  ;;  %v1568_v3 = vunpack.c.h.bf16 %v4652_v11  ;;  %v1702_v0 = vadd.f32 %v1566_v61, %v1565_v60 }
 0x133   : > { %1321 = vmatmul.mubr.bf16.gmra.mrb[8].mxu1 %v2812_v20  ;;  %1167 = vmatprep.mubr.bf16.mxu0 %v2815_v21  ;;  %v1557_v21 = vunpack.c.l.bf16 %v4634_v4  ;;  %v1556_v4 = vunpack.c.h.bf16 %v4637_v5  ;;  %v1570_v31 = vunpack.c.h.bf16 %v4655_v12  ;;  %v1578_v11 = vunpack.c.h.bf16 %v4679_v24 }
 0x134   : > { %1328 = vmatprep.mubr.bf16.mxu1 %v2817_v22  ;;  %v1677_v20 = vadd.f32 %v1546_v13, %v1545_v9  ;;  %v1559_v22 = vunpack.c.l.bf16 %v4640_v6  ;;  %v1703_v34 = vadd.f32 %v1702_v0, %v1567_v63  ;;  %v1573_v13 = vunpack.c.l.bf16 %v4660_v14  ;;  %v4799_v0 = vld [vmem:[%s4430_s23 + $0x110] sm:$0xff] }
 0x135   : > { %v1692_v46 = vadd.f32 %v1558_v51, %v1557_v21  ;;  %v1591_v63 = vunpack.c.l.bf16 %v4717_v42 }
 0x136   : > { %v1678_v44 = vadd.f32 %v1677_v20, %v1547_v19  ;;  %v1575_v19 = vunpack.c.l.bf16 %v4666_v16  ;;  %v1569_v20 = vunpack.c.l.bf16 %v4655_v12  ;;  %v1704_v21 = vadd.f32 %v1703_v34, %v1568_v3  ;;  %v4824_v12 = vld [vmem:[%s4430_s23 + $0x108] sm:$0xff] }
 0x137   : > { %v1693_v62 = vadd.f32 %v1692_v46, %v1559_v22  ;;  %v1712_v22 = vadd.f32 %v1574_v17, %v1573_v13  ;;  %v1585_v3 = vunpack.c.l.bf16 %v4706_v38  ;;  %v1587_v34 = vunpack.c.l.bf16 %v4714_v41  ;;  %v4813_v17 = vld [vmem:[%s4430_s23 + $0x100] sm:$0xff] }
 0x138   : > { %v1679_v6 = vadd.f32 %v1678_v44, %v1548_v37  ;;  %v1576_v37 = vunpack.c.h.bf16 %v4666_v16  ;;  %v1582_v44 = vunpack.c.h.bf16 %v4688_v28  ;;  %v1707_v8 = vadd.f32 %v1570_v31, %v1569_v20  ;;  %v4837_v31 = vld [vmem:[%s4430_s23 + $0x120] sm:$0xff] }
 0x139   : > { %v1694_v5 = vadd.f32 %v1693_v62, %v1560_v43  ;;  %v1571_v43 = vunpack.c.l.bf16 %v4663_v15  ;;  %v1713_v46 = vadd.f32 %v1712_v22, %v1575_v19  ;;  %v1598_v13 = vunpack.c.h.bf16 %v4799_v0  ;;  %v4832_v22 = vld [vmem:[%s4430_s23 + $0x130] sm:$0xff] }
 0x13a   : > { %1168 = vmatmul.mubr.bf16.gmra.mrb[12].mxu0 %v2814_v23  ;;  %v1687_v23 = vadd.f32 %v1554_v56, %v1553_v50  ;;  %1680 = vadd.xlane.f32.xlu0 %v1679_v6  ;;  %v1581_v50 = vunpack.c.l.bf16 %v4688_v28  ;;  %v1590_v6 = vunpack.c.h.bf16 %v4709_v39  ;;  %v1588_v19 = vunpack.c.h.bf16 %v4714_v41 }
 0x13b   : > { %1329 = vmatmul.mubr.bf16.gmra.mrb[12].mxu1 %v2816_v25  ;;  %1175 = vmatprep.mubr.bf16.mxu0 %v2819_v26  ;;  %v1561_v25 = vunpack.c.l.bf16 %v4643_v7  ;;  %v1562_v26 = vunpack.c.h.bf16 %v4643_v7  ;;  %v1572_v7 = vunpack.c.h.bf16 %v4663_v15 }
 0x13c   : > { %1336 = vmatprep.mubr.bf16.mxu1 %v2821_v32  ;;  %v1688_v1 = vadd.f32 %v1687_v23, %v1555_v52  ;;  %v1564_v32 = vunpack.c.h.bf16 %v4649_v10  ;;  %1695 = vadd.xlane.f32.xlu1 %v1694_v5  ;;  %v1722_v52 = vadd.f32 %v1582_v44, %v1581_v50  ;;  %v1577_v10 = vunpack.c.l.bf16 %v4679_v24  ;;  %v4883_v24 = vld [vmem:[%s4430_s23 + $0x170] sm:$0xff] }
 0x13d   : > { %v1697_v9 = vadd.f32 %v1562_v26, %v1561_v25  ;;  %v1580_v23 = vunpack.c.h.bf16 %v4691_v29  ;;  %v1592_v26 = vunpack.c.h.bf16 %v4717_v42 }
 0x13e   : > { %v1689_v18 = vadd.f32 %v1688_v1, %v1556_v4  ;;  %v1579_v4 = vunpack.c.l.bf16 %v4691_v29  ;;  %v1717_v61 = vadd.f32 %v1578_v11, %v1577_v10  ;;  %v1586_v1 = vunpack.c.h.bf16 %v4706_v38  ;;  %v4853_v10 = vld [vmem:[%s4430_s23 + $0x150] sm:$0xff]  ;;  %v4894_v29 = vld [vmem:[%s4430_s23 + $0x178] sm:$0xff]  ;;  %v4944_v38 = vld [vmem:[%s4430_s23 + $0x1a0] sm:$0xff] }
 0x13f   : > { %v1698_v51 = vadd.f32 %v1697_v9, %v1563_v2  ;;  %v4804_v2 = vld [vmem:[%s4430_s23 + $0x118] sm:$0xff]  ;;  %v1597_v9 = vunpack.c.l.bf16 %v4799_v0 }
 0x140   : > { %1690 = vadd.xlane.f32.xlu0 %v1689_v18  ;;  %1705 = vadd.xlane.f32.xlu1 %v1704_v21  ;;  %v1718_v25 = vadd.f32 %v1717_v61, %v1579_v4  ;;  %v1599_v20 = vunpack.c.l.bf16 %v4804_v2  ;;  %v1593_v21 = vunpack.c.l.bf16 %v4813_v17  ;;  %v4857_v4 = vld [vmem:[%s4430_s23 + $0x158] sm:$0xff] }
 0x141   : > { %v1699_v56 = vadd.f32 %v1698_v51, %v1564_v32  ;;  %v1594_v51 = vunpack.c.h.bf16 %v4813_v17 }
 0x142   : > { %1176 = vmatmul.mubr.bf16.gmra.mrb[16].mxu0 %v2818_v27  ;;  %v1583_v27 = vunpack.c.l.bf16 %v4694_v30  ;;  %v1719_v14 = vadd.f32 %v1718_v25, %v1580_v23  ;;  %v1615_v25 = vunpack.c.l.bf16 %v4857_v4 }
 0x143   : > { %1337 = vmatmul.mubr.bf16.gmra.mrb[16].mxu1 %v2820_v33  ;;  %1183 = vmatprep.mubr.bf16.mxu0 %v2823_v35  ;;  %v1714_v33 = vadd.f32 %v1713_v46, %v1576_v37  ;;  %v1708_v35 = vadd.f32 %v1707_v8, %v1571_v43  ;;  %v1727_v37 = vadd.f32 %v1586_v1, %v1585_v3  ;;  %v4840_v43 = vld [vmem:[%s4430_s23 + $0x138] sm:$0xff]  ;;  %v1606_v46 = vunpack.c.h.bf16 %v4832_v22 }
 0x144   : > { %1344 = vmatprep.mubr.bf16.mxu1 %v2825_v36  ;;  %v1723_v60 = vadd.f32 %v1722_v52, %v1583_v27  ;;  %v1589_v36 = vunpack.c.l.bf16 %v4709_v39  ;;  %1700 = vadd.xlane.f32.xlu0 %v1699_v56  ;;  %v1737_v44 = vadd.f32 %v1594_v51, %v1593_v21  ;;  %v1596_v8 = vunpack.c.h.bf16 %v4824_v12  ;;  %v4850_v52 = vld [vmem:[%s4430_s23 + $0x128] sm:$0xff] }
 0x145   : > { %v1709_v62 = vadd.f32 %v1708_v35, %v1572_v7  ;;  %1715 = vadd.xlane.f32.xlu1 %v1714_v33  ;;  %v1728_v16 = vadd.f32 %v1727_v37, %v1587_v34  ;;  %v2835_v7 = vcombine.high %v4813_v17, %v4799_v0  ;;  %v1607_v27 = vunpack.c.l.bf16 %v4840_v43 }
 0x146   : > { %v1732_v5 = vadd.f32 %v1590_v6, %v1589_v36  ;;  %v1724_v32 = vadd.f32 %v1723_v60, %v1584_v57  ;;  %v1601_v56 = vunpack.c.l.bf16 %v4837_v31  ;;  %v1602_v57 = vunpack.c.h.bf16 %v4837_v31 }
 0x147   : > { %v1729_v11 = vadd.f32 %v1728_v16, %v1588_v19  ;;  %v1608_v60 = vunpack.c.h.bf16 %v4840_v43  ;;  %v1603_v61 = vunpack.c.l.bf16 %v4850_v52  ;;  %v1613_v36 = vunpack.c.l.bf16 %v4853_v10 }
 0x148   : > { %v1733_v18 = vadd.f32 %v1732_v5, %v1591_v63  ;;  %1710 = vadd.xlane.f32.xlu0 %v1709_v62  ;;  %v1614_v6 = vunpack.c.h.bf16 %v4853_v10  ;;  %v4864_v62 = vld [vmem:[%s4430_s23 + $0x140] sm:$0xff]  ;;  %v1747_v3 = vadd.f32 %v1602_v57, %v1601_v56  ;;  %v1604_v5 = vunpack.c.h.bf16 %v4850_v52 }
 0x149   : > { %1725 = vadd.xlane.f32.xlu1 %v1724_v32  ;;  %v1609_v32 = vunpack.c.l.bf16 %v4864_v62  ;;  %v1610_v34 = vunpack.c.h.bf16 %v4864_v62  ;;  %v1622_v19 = vunpack.c.h.bf16 %v4883_v24  ;;  %v2837_v37 = vcombine.high %v4824_v12, %v4804_v2 }
 0x14a   : > { %1184 = vmatmul.mubr.bf16.gmra.mrb[20].mxu0 %v2822_v40  ;;  %v1742_v40 = vadd.f32 %v1598_v13, %v1597_v9  ;;  %v1734_v15 = vadd.f32 %v1733_v18, %v1592_v26  ;;  %v4871_v26 = vld [vmem:[%s4430_s23 + $0x148] sm:$0xff]  ;;  %v1762_v1 = vadd.f32 %v1614_v6, %v1613_v36  ;;  %v1616_v9 = vunpack.c.h.bf16 %v4857_v4  ;;  %v4891_v18 = vld [vmem:[%s4430_s23 + $0x160] sm:$0xff] }
 0x14b   : > { %1345 = vmatmul.mubr.bf16.gmra.mrb[20].mxu1 %v2824_v47  ;;  %1191 = vmatprep.mubr.bf16.mxu0 %v2827_v48  ;;  %v1600_v47 = vunpack.c.h.bf16 %v4804_v2  ;;  %v1595_v48 = vunpack.c.l.bf16 %v4824_v12  ;;  %v1611_v13 = vunpack.c.l.bf16 %v4871_v26  ;;  %v1612_v21 = vunpack.c.h.bf16 %v4871_v26 }
 0x14c   : > { %1352 = vmatprep.mubr.bf16.mxu1 %v2829_v49  ;;  %v1743_v50 = vadd.f32 %v1742_v40, %v1599_v20  ;;  %v1605_v49 = vunpack.c.l.bf16 %v4832_v22  ;;  %1720 = vadd.xlane.f32.xlu0 %v1719_v14  ;;  %v1763_v30 = vadd.f32 %v1762_v1, %v1615_v25  ;;  %v1617_v14 = vunpack.c.l.bf16 %v4891_v18  ;;  %v4903_v40 = vld [vmem:[%s4430_s23 + $0x190] sm:$0xff] }
 0x14d   : > { %v1738_v33 = vadd.f32 %v1737_v44, %v1595_v48  ;;  %1735 = vadd.xlane.f32.xlu1 %v1734_v15  ;;  %v1618_v16 = vunpack.c.h.bf16 %v4891_v18  ;;  %v1629_v44 = vunpack.c.l.bf16 %v4903_v40  ;;  %v2834_v36 = vcombine.low %v4813_v17, %v4799_v0  ;;  %v4955_v17 = vld [vmem:[%s4430_s23 + $0x1d0] sm:$0xff] }
 0x14e   : > { %v1752_v35 = vadd.f32 %v1606_v46, %v1605_v49  ;;  %v1744_v23 = vadd.f32 %v1743_v50, %v1600_v47  ;;  %v4908_v47 = vld [vmem:[%s4430_s23 + $0x168] sm:$0xff]  ;;  %v1624_v50 = vunpack.c.h.bf16 %v4894_v29  ;;  %v1630_v49 = vunpack.c.h.bf16 %v4903_v40  ;;  %v4914_v46 = vld [vmem:[%s4430_s23 + $0x180] sm:$0xff] }
 0x14f   : > { %v1739_v28 = vadd.f32 %v1738_v33, %v1596_v8  ;;  %v4917_v8 = vld [vmem:[%s4430_s23 + $0x198] sm:$0xff]  ;;  %v1767_v33 = vadd.f32 %v1618_v16, %v1617_v14  ;;  %v2836_v6 = vcombine.low %v4824_v12, %v4804_v2  ;;  %v1620_v25 = vunpack.c.h.bf16 %v4908_v47  ;;  %v4980_v16 = vld [vmem:[%s4430_s23 + $0x1f0] sm:$0xff] }
 0x150   : > { %v1753_v63 = vadd.f32 %v1752_v35, %v1607_v27  ;;  %1730 = vadd.xlane.f32.xlu0 %v1729_v11  ;;  %v1764_v27 = vadd.f32 %v1763_v30, %v1616_v9  ;;  %v1619_v11 = vunpack.c.l.bf16 %v4908_v47  ;;  %v1631_v35 = vunpack.c.l.bf16 %v4917_v8  ;;  %v4964_v9 = vld [vmem:[%s4430_s23 + $0x1a8] sm:$0xff] }
 0x151   : > { %1745 = vadd.xlane.f32.xlu1 %v1744_v23  ;;  %v1782_v57 = vadd.f32 %v1630_v49, %v1629_v44  ;;  %v4931_v23 = vld [vmem:[%s4430_s23 + $0x188] sm:$0xff]  ;;  %v1633_v0 = vunpack.c.l.bf16 %v4944_v38  ;;  %v1646_v30 = vunpack.c.h.bf16 %v4955_v17 }
 0x152   : > { %1192 = vmatmul.mubr.bf16.gmra.mrb[24].mxu0 %v2826_v54  ;;  %v1748_v54 = vadd.f32 %v1747_v3, %v1603_v61  ;;  %v1754_v20 = vadd.f32 %v1753_v63, %v1608_v60  ;;  %v1625_v60 = vunpack.c.l.bf16 %v4914_v46  ;;  %v1626_v61 = vunpack.c.h.bf16 %v4914_v46  ;;  %v4934_v63 = vld [vmem:[%s4430_s23 + $0x1b0] sm:$0xff] }
 0x153   : > { %1353 = vmatmul.mubr.bf16.gmra.mrb[24].mxu1 %v2828_v45  ;;  %1199 = vmatprep.mubr.bf16.mxu0 %v2831_v55  ;;  %v1757_v45 = vadd.f32 %v1610_v34, %v1609_v32  ;;  %v1621_v55 = vunpack.c.l.bf16 %v4883_v24  ;;  %v1627_v39 = vunpack.c.l.bf16 %v4931_v23  ;;  %v1637_v2 = vunpack.c.l.bf16 %v4934_v63 }
 0x154   : > { %1360 = vmatprep.mubr.bf16.mxu1 %v2833_v58  ;;  %v1623_v58 = vunpack.c.l.bf16 %v4894_v29  ;;  %v1749_v48 = vadd.f32 %v1748_v54, %v1604_v5  ;;  %1740 = vadd.xlane.f32.xlu0 %v1739_v28  ;;  %v1638_v12 = vunpack.c.h.bf16 %v4934_v63  ;;  %v4950_v5 = vld [vmem:[%s4430_s23 + $0x1b8] sm:$0xff]  ;;  %v1768_v42 = vadd.f32 %v1767_v33, %v1619_v11  ;;  %v4986_v11 = vld [vmem:[%s4430_s23 + $0x1c8] sm:$0xff]  ;;  %v4989_v33 = vld [vmem:[%s4430_s23 + $0x1e0] sm:$0xff] }
 0x155   : > { %v1758_v51 = vadd.f32 %v1757_v45, %v1611_v13  ;;  %v1772_v15 = vadd.f32 %v1622_v19, %v1621_v55  ;;  %1755 = vadd.xlane.f32.xlu1 %v1754_v20  ;;  %v1639_v1 = vunpack.c.l.bf16 %v4950_v5  ;;  %v1634_v34 = vunpack.c.h.bf16 %v4944_v38  ;;  %v4969_v45 = vld [vmem:[%s4430_s23 + $0x1c0] sm:$0xff] }
 0x156   : > { %v1792_v32 = vadd.f32 %v1638_v12, %v1637_v2  ;;  %v2839_v28 = vcombine.high %v4837_v31, %v4832_v22  ;;  %v2841_v54 = vcombine.high %v4850_v52, %v4840_v43  ;;  %v1645_v13 = vunpack.c.l.bf16 %v4955_v17 }
 0x157   : > { %v1773_v56 = vadd.f32 %v1772_v15, %v1623_v58  ;;  %v1759_v3 = vadd.f32 %v1758_v51, %v1612_v21  ;;  %v1628_v55 = vunpack.c.h.bf16 %v4931_v23  ;;  %v1787_v20 = vadd.f32 %v1634_v34, %v1633_v0  ;;  %v4974_v58 = vld [vmem:[%s4430_s23 + $0x1d8] sm:$0xff] }
 0x158   : > { %1750 = vadd.xlane.f32.xlu0 %v1749_v48  ;;  %v1769_v14 = vadd.f32 %v1768_v42, %v1620_v25  ;;  %v1640_v21 = vunpack.c.h.bf16 %v4950_v5  ;;  %v1641_v51 = vunpack.c.l.bf16 %v4969_v45  ;;  %v1642_v15 = vunpack.c.h.bf16 %v4969_v45 }
 0x159   : > { %v1774_v41 = vadd.f32 %v1773_v56, %v1624_v50  ;;  %1765 = vadd.xlane.f32.xlu1 %v1764_v27  ;;  %v1793_v50 = vadd.f32 %v1792_v32, %v1639_v1  ;;  %v1647_v44 = vunpack.c.l.bf16 %v4974_v58  ;;  %v1802_v49 = vadd.f32 %v1646_v30, %v1645_v13  ;;  %v5009_v1 = vld [vmem:[%s4430_s23 + $0x1e8] sm:$0xff] }
 0x15a   : > { %1200 = vmatmul.mubr.bf16.gmra.mrb[28].mxu0 %v2830_v59  ;;  %v1777_v59 = vadd.f32 %v1626_v61, %v1625_v60  ;;  %v1653_v27 = vunpack.c.l.bf16 %v4980_v16  ;;  %v1654_v56 = vunpack.c.h.bf16 %v4980_v16  ;;  %v1648_v61 = vunpack.c.h.bf16 %v4974_v58 }
 0x15b   : > { %1361 = vmatmul.mubr.bf16.gmra.mrb[28].mxu1 %v2832_v53  ;;  %1207 = vmatprep.mubr.bf16.mxu0 %v2835_v7  ;;  %v1632_v53 = vunpack.c.h.bf16 %v4917_v8  ;;  %v1783_v7 = vadd.f32 %v1782_v57, %v1631_v35  ;;  %v1636_v57 = vunpack.c.h.bf16 %v4964_v9  ;;  %v1797_v25 = vadd.f32 %v1642_v15, %v1641_v51 }
 0x15c   : > { %1368 = vmatprep.mubr.bf16.mxu1 %v2837_v37  ;;  %v1778_v19 = vadd.f32 %v1777_v59, %v1627_v39  ;;  %v1635_v37 = vunpack.c.l.bf16 %v4964_v9  ;;  %1760 = vadd.xlane.f32.xlu0 %v1759_v3  ;;  %v4994_v3 = vld [vmem:[%s4430_s23 + $0x1f8] sm:$0xff]  ;;  %v1650_v39 = vunpack.c.h.bf16 %v4989_v33  ;;  %v1794_v59 = vadd.f32 %v1793_v50, %v1640_v21 }
 0x15d   : > { %1775 = vadd.xlane.f32.xlu1 %v1774_v41  ;;  %v1784_v48 = vadd.f32 %v1783_v7, %v1632_v53  ;;  %v1803_v2 = vadd.f32 %v1802_v49, %v1647_v44  ;;  %v1655_v12 = vunpack.c.l.bf16 %v4994_v3  ;;  %v1812_v41 = vadd.f32 %v1654_v56, %v1653_v27  ;;  %v1500_v27 = vld [vmem:[#allocation3 + $0x18] sm:$0xff] }
 0x15e   : > { %v1779_v35 = vadd.f32 %v1778_v19, %v1628_v55  ;;  %v1788_v60 = vadd.f32 %v1787_v20, %v1635_v37  ;;  %v2838_v42 = vcombine.low %v4837_v31, %v4832_v22  ;;  %v2840_v53 = vcombine.low %v4850_v52, %v4840_v43 }
 0x15f   : > { %v2843_v0 = vcombine.high %v4864_v62, %v4853_v10  ;;  %v2845_v7 = vcombine.high %v4871_v26, %v4857_v4  ;;  %v1644_v32 = vunpack.c.h.bf16 %v4986_v11  ;;  %v1804_v22 = vadd.f32 %v1803_v2, %v1648_v61  ;;  %v1503_v2 = vld [vmem:[#allocation3 + $0x30] sm:$0xff] }
 0x160   : > { %1770 = vadd.xlane.f32.xlu0 %v1769_v14  ;;  %v1789_v34 = vadd.f32 %v1788_v60, %v1636_v57  ;;  %v1656_v31 = vunpack.c.h.bf16 %v4994_v3  ;;  %v1813_v43 = vadd.f32 %v1812_v41, %v1655_v12  ;;  %v1652_v30 = vunpack.c.h.bf16 %v5009_v1  ;;  %v1506_v12 = vld [vmem:[#allocation3 + $0x48] sm:$0xff] }
 0x161   : > { %1785 = vadd.xlane.f32.xlu1 %v1784_v48  ;;  %v2842_v37 = vcombine.low %v4864_v62, %v4853_v10  ;;  %v2844_v20 = vcombine.low %v4871_v26, %v4857_v4  ;;  %v2847_v14 = vcombine.high %v4891_v18, %v4883_v24  ;;  %v2849_v21 = vcombine.high %v4908_v47, %v4894_v29 }
 0x162   : > { %1208 = vmatmul.mubr.bf16.gmra.mrb[32].mxu0 %v2834_v36  ;;  %v1643_v36 = vunpack.c.l.bf16 %v4986_v11  ;;  %v1814_v19 = vadd.f32 %v1813_v43, %v1656_v31  ;;  %v2846_v10 = vcombine.low %v4891_v18, %v4883_v24  ;;  %v2848_v4 = vcombine.low %v4908_v47, %v4894_v29 }
 0x163   : > { %1369 = vmatmul.mubr.bf16.gmra.mrb[32].mxu1 %v2836_v6  ;;  %1215 = vmatprep.mubr.bf16.mxu0 %v2839_v28  ;;  %v1649_v6 = vunpack.c.l.bf16 %v4989_v33  ;;  %v2851_v62 = vcombine.high %v4914_v46, %v4903_v40  ;;  %v2853_v26 = vcombine.high %v4931_v23, %v4917_v8  ;;  %v2850_v15 = vcombine.low %v4914_v46, %v4903_v40 }
 0x164   : > { %1376 = vmatprep.mubr.bf16.mxu1 %v2841_v54  ;;  %1780 = vadd.xlane.f32.xlu0 %v1779_v35  ;;  %v1798_v28 = vadd.f32 %v1797_v25, %v1643_v36  ;;  %v1651_v54 = vunpack.c.l.bf16 %v5009_v1  ;;  %v2852_v48 = vcombine.low %v4931_v23, %v4917_v8  ;;  %v2855_v24 = vcombine.high %v4944_v38, %v4934_v63  ;;  %v1504_v36 = vld [vmem:[#allocation3 + $0x38] sm:$0xff] }
 0x165   : > { %v1807_v13 = vadd.f32 %v1650_v39, %v1649_v6  ;;  %1795 = vadd.xlane.f32.xlu1 %v1794_v59  ;;  %v2857_v18 = vcombine.high %v4964_v9, %v4950_v5  ;;  %v2854_v29 = vcombine.low %v4944_v38, %v4934_v63  ;;  %v2856_v47 = vcombine.low %v4964_v9, %v4950_v5 }
 0x166   : > { %v1799_v52 = vadd.f32 %v1798_v28, %v1644_v32  ;;  %v2859_v40 = vcombine.high %v4969_v45, %v4955_v17  ;;  %v2861_v46 = vcombine.high %v4986_v11, %v4974_v58  ;;  %v2858_v8 = vcombine.low %v4969_v45, %v4955_v17  ;;  %v1499_v17 = vld [vmem:[#allocation3 + $0x10] sm:$0xff] }
 0x167   : > { %v1808_v55 = vadd.f32 %v1807_v13, %v1651_v54  ;;  %v2860_v23 = vcombine.low %v4986_v11, %v4974_v58  ;;  %v2863_v63 = vcombine.high %v4989_v33, %v4980_v16  ;;  %v2865_v38 = vcombine.high %v5009_v1, %v4994_v3  ;;  %v1497_v58 = vld [vmem:[#allocation3] sm:$0xff]  ;;  %v1507_v13 = vld [vmem:[#allocation3 + $0x50] sm:$0xff] }
 0x168   : > { %1790 = vadd.xlane.f32.xlu0 %v1789_v34  ;;  %v2862_v5 = vcombine.low %v4989_v33, %v4980_v16  ;;  %v2864_v9 = vcombine.low %v5009_v1, %v4994_v3  ;;  %v1498_v16 = vld [vmem:[#allocation3 + $0x8] sm:$0xff]  ;;  %v1501_v3 = vld [vmem:[#allocation3 + $0x20] sm:$0xff]  ;;  %v1508_v1 = vld [vmem:[#allocation3 + $0x58] sm:$0xff] }
 0x169   : > { %1805 = vadd.xlane.f32.xlu1 %v1804_v22  ;;  %v1809_v51 = vadd.f32 %v1808_v55, %v1652_v30  ;;  %v1502_v33 = vld [vmem:[#allocation3 + $0x28] sm:$0xff]  ;;  %v1509_v55 = vld [vmem:[#allocation3 + $0x60] sm:$0xff] }
 0x16a   : > { %1216 = vmatmul.mubr.bf16.gmra.mrb[36].mxu0 %v2838_v42  ;;  %v1510_v22 = vld [vmem:[#allocation3 + $0x68] sm:$0xff] }
 0x16b   : > { %1377 = vmatmul.mubr.bf16.gmra.mrb[36].mxu1 %v2840_v53  ;;  %1223 = vmatprep.mubr.bf16.mxu0 %v2843_v0 }
 0x16c   : > { %1384 = vmatprep.mubr.bf16.mxu1 %v2845_v7  ;;  %1800 = vadd.xlane.f32.xlu0 %v1799_v52  ;;  %v1505_v7 = vld [vmem:[#allocation3 + $0x40] sm:$0xff] }
 0x16d   : > { %1815 = vadd.xlane.f32.xlu1 %v1814_v19  ;;  %v1512_v19 = vld [vmem:[#allocation3 + $0x78] sm:$0xff] }
 0x170   : > { %1810 = vadd.xlane.f32.xlu0 %v1809_v51  ;;  %v1511_v51 = vld [vmem:[#allocation3 + $0x70] sm:$0xff] }
 0x172   : > { %1224 = vmatmul.mubr.bf16.gmra.mrb[40].mxu0 %v2842_v37 }
 0x173   : > { %1385 = vmatmul.mubr.bf16.gmra.mrb[40].mxu1 %v2844_v20  ;;  %1231 = vmatprep.mubr.bf16.mxu0 %v2847_v14 }
 0x174   : > { %1392 = vmatprep.mubr.bf16.mxu1 %v2849_v21 }
 0x17a   : > { %1232 = vmatmul.mubr.bf16.gmra.mrb[44].mxu0 %v2846_v10  ;;  %v1514_v10 = vld [vmem:[#allocation3 + $0x88] sm:$0xff] }
 0x17b   : > { %1393 = vmatmul.mubr.bf16.gmra.mrb[44].mxu1 %v2848_v4  ;;  %1239 = vmatprep.mubr.bf16.mxu0 %v2851_v62 }
 0x17c   : > { %1400 = vmatprep.mubr.bf16.mxu1 %v2853_v26 }
 0x182   : > { %1240 = vmatmul.mubr.bf16.gmra.mrb[48].mxu0 %v2850_v15 }
 0x183   : > { %1401 = vmatmul.mubr.bf16.gmra.mrb[48].mxu1 %v2852_v48  ;;  %1247 = vmatprep.mubr.bf16.mxu0 %v2855_v24  ;;  %v1513_v48 = vld [vmem:[#allocation3 + $0x80] sm:$0xff]  ;;  %v1516_v24 = vld [vmem:[#allocation3 + $0x98] sm:$0xff] }
 0x184   : > { %1408 = vmatprep.mubr.bf16.mxu1 %v2857_v18 }
 0x18a   : > { %1248 = vmatmul.mubr.bf16.gmra.mrb[52].mxu0 %v2854_v29 }
 0x18b   : > { %1409 = vmatmul.mubr.bf16.gmra.mrb[52].mxu1 %v2856_v47  ;;  %1255 = vmatprep.mubr.bf16.mxu0 %v2859_v40 }
 0x18c   : > { %1416 = vmatprep.mubr.bf16.mxu1 %v2861_v46  ;;  %v1515_v46 = vld [vmem:[#allocation3 + $0x90] sm:$0xff] }
 0x192   : > { %1256 = vmatmul.mubr.bf16.gmra.mrb[56].mxu0 %v2858_v8  ;;  %v1518_v8 = vld [vmem:[#allocation3 + $0xa8] sm:$0xff] }
 0x193   : > { %1417 = vmatmul.mubr.bf16.gmra.mrb[56].mxu1 %v2860_v23  ;;  %1263 = vmatprep.mubr.bf16.mxu0 %v2863_v63 }
 0x194   : > { %1424 = vmatprep.mubr.bf16.mxu1 %v2865_v38 }
 0x19a   : > { %1264 = vmatmul.mubr.bf16.gmra.mrb[60].mxu0 %v2862_v5 }
 0x19b   : > { %1425 = vmatmul.mubr.bf16.gmra.mrb[60].mxu1 %v2864_v9  ;;  %v1517_v9 = vld [vmem:[#allocation3 + $0xa0] sm:$0xff] }
 0x1a2   : > { %v1671_v45 = vpop.xlane.xlu1 %1670 }
 0x1a3   : > { %v1819_v50 = vadd.f32 %v1671_v45, %v1499_v17  ;;  %v1661_v44 = vpop.xlane.xlu0 %1660  ;;  %v1520_v17 = vld [vmem:[#allocation3 + $0xb8] sm:$0xff] }
 0x1a4   : > { %v1817_v49 = vadd.f32 %v1661_v44, %v1497_v58 }
 0x1a5   : > { %1852 = vst.msk [vmem:[#allocation3 + $0x10] sm:$0xff] %vm1849_vm1, %v1819_v50 }
 0x1a6   : > { %1850 = vst.msk [vmem:[#allocation3] sm:$0xff] %vm1849_vm1, %v1817_v49  ;;  %v1519_v49 = vld [vmem:[#allocation3 + $0xb0] sm:$0xff] }
 0x1b4   : > { %v1676_v56 = vpop.xlane.xlu1 %1675 }
 0x1b5   : > { %v1820_v11 = vadd.f32 %v1676_v56, %v1500_v27  ;;  %v1522_v27 = vld [vmem:[#allocation3 + $0xc8] sm:$0xff] }
 0x1b7   : > { %1853 = vst.msk [vmem:[#allocation3 + $0x18] sm:$0xff] %vm1849_vm1, %v1820_v11 }
 0x1bb   : > { %v1686_v60 = vpop.xlane.xlu1 %1685 }
 0x1bc   : > { %v1822_v61 = vadd.f32 %v1686_v60, %v1502_v33 }
 0x1be   : > { %1855 = vst.msk [vmem:[#allocation3 + $0x28] sm:$0xff] %vm1849_vm1, %v1822_v61 }
 0x1bf   : > { %v1666_v35 = vpop.xlane.xlu0 %1665 }
 0x1c0   : > { %v1818_v57 = vadd.f32 %v1666_v35, %v1498_v16  ;;  %v1521_v35 = vld [vmem:[#allocation3 + $0xc0] sm:$0xff] }
 0x1c2   : > { %1851 = vst.msk [vmem:[#allocation3 + $0x8] sm:$0xff] %vm1849_vm1, %v1818_v57 }
 0x1c7   : > { %v1681_v25 = vpop.xlane.xlu0 %1680 }
 0x1c8   : > { %v1821_v6 = vadd.f32 %v1681_v25, %v1501_v3 }
 0x1c9   : > { %v1696_v39 = vpop.xlane.xlu1 %1695 }
 0x1ca   : > { %v1824_v59 = vadd.f32 %v1696_v39, %v1504_v36  ;;  %1854 = vst.msk [vmem:[#allocation3 + $0x20] sm:$0xff] %vm1849_vm1, %v1821_v6 }
 0x1cc   : > { %1857 = vst.msk [vmem:[#allocation3 + $0x38] sm:$0xff] %vm1849_vm1, %v1824_v59  ;;  %v1524_v59 = vld [vmem:[#allocation3 + $0xd8] sm:$0xff] }
 0x1cd   : > { %v1691_v41 = vpop.xlane.xlu0 %1690  ;;  %v1706_v53 = vpop.xlane.xlu1 %1705 }
 0x1ce   : > { %v1823_v42 = vadd.f32 %v1691_v41, %v1503_v2  ;;  %v1826_v0 = vadd.f32 %v1706_v53, %v1506_v12  ;;  %v503_v53 = vld [vmem:[#allocation2] sm:$0xff] }
 0x1d0   : > { %1856 = vst.msk [vmem:[#allocation3 + $0x30] sm:$0xff] %vm1849_vm1, %v1823_v42  ;;  %1859 = vst.msk [vmem:[#allocation3 + $0x48] sm:$0xff] %vm1849_vm1, %v1826_v0  ;;  %v1523_v42 = vld [vmem:[#allocation3 + $0xd0] sm:$0xff] }
 0x1d1   : > { %v1701_v32 = vpop.xlane.xlu0 %1700 }
 0x1d2   : > { %v1825_v34 = vadd.f32 %v1701_v32, %v1505_v7  ;;  %v1716_v28 = vpop.xlane.xlu1 %1715 }
 0x1d3   : > { %v1828_v54 = vadd.f32 %v1716_v28, %v1508_v1 }
 0x1d4   : > { %1858 = vst.msk [vmem:[#allocation3 + $0x40] sm:$0xff] %vm1849_vm1, %v1825_v34 }
 0x1d5   : > { %1861 = vst.msk [vmem:[#allocation3 + $0x58] sm:$0xff] %vm1849_vm1, %v1828_v54  ;;  %v1711_v31 = vpop.xlane.xlu0 %1710 }
 0x1d6   : > { %v1827_v43 = vadd.f32 %v1711_v31, %v1507_v13  ;;  %v1726_v52 = vpop.xlane.xlu1 %1725  ;;  %v504_v13 = vld [vmem:[#allocation2 + $0x8] sm:$0xff] }
 0x1d7   : > { %v1830_v30 = vadd.f32 %v1726_v52, %v1510_v22  ;;  %v1526_v31 = vld [vmem:[#allocation3 + $0xe8] sm:$0xff] }
 0x1d8   : > { %1860 = vst.msk [vmem:[#allocation3 + $0x50] sm:$0xff] %vm1849_vm1, %v1827_v43 }
 0x1d9   : > { %1863 = vst.msk [vmem:[#allocation3 + $0x68] sm:$0xff] %vm1849_vm1, %v1830_v30  ;;  %v1721_v37 = vpop.xlane.xlu0 %1720 }
 0x1da   : > { %v1829_v20 = vadd.f32 %v1721_v37, %v1509_v55  ;;  %v1736_v14 = vpop.xlane.xlu1 %1735 }
 0x1db   : > { %v1832_v21 = vadd.f32 %v1736_v14, %v1512_v19 }
 0x1dc   : > { %1862 = vst.msk [vmem:[#allocation3 + $0x60] sm:$0xff] %vm1849_vm1, %v1829_v20 }
 0x1dd   : > { %1865 = vst.msk [vmem:[#allocation3 + $0x78] sm:$0xff] %vm1849_vm1, %v1832_v21  ;;  %v1731_v4 = vpop.xlane.xlu0 %1730 }
 0x1de   : > { %v1831_v62 = vadd.f32 %v1731_v4, %v1511_v51  ;;  %v1746_v26 = vpop.xlane.xlu1 %1745  ;;  %v1525_v4 = vld [vmem:[#allocation3 + $0xe0] sm:$0xff] }
 0x1df   : > { %v1834_v15 = vadd.f32 %v1746_v26, %v1514_v10 }
 0x1e0   : > { %1864 = vst.msk [vmem:[#allocation3 + $0x70] sm:$0xff] %vm1849_vm1, %v1831_v62 }
 0x1e1   : > { %1867 = vst.msk [vmem:[#allocation3 + $0x88] sm:$0xff] %vm1849_vm1, %v1834_v15  ;;  %v1741_v18 = vpop.xlane.xlu0 %1740 }
 0x1e2   : > { %v1833_v29 = vadd.f32 %v1741_v18, %v1513_v48  ;;  %v1756_v47 = vpop.xlane.xlu1 %1755  ;;  %v1528_v48 = vld [vmem:[#allocation3 + $0xf8] sm:$0xff] }
 0x1e3   : > { %v1836_v40 = vadd.f32 %v1756_v47, %v1516_v24  ;;  %v505_v24 = vld [vmem:[#allocation2 + $0x10] sm:$0xff] }
 0x1e4   : > { %1866 = vst.msk [vmem:[#allocation3 + $0x80] sm:$0xff] %vm1849_vm1, %v1833_v29 }
 0x1e5   : > { %1869 = vst.msk [vmem:[#allocation3 + $0x98] sm:$0xff] %vm1849_vm1, %v1836_v40  ;;  %v1751_v23 = vpop.xlane.xlu0 %1750 }
 0x1e6   : > { %v1835_v63 = vadd.f32 %v1751_v23, %v1515_v46  ;;  %v1766_v38 = vpop.xlane.xlu1 %1765 }
 0x1e7   : > { %v1838_v5 = vadd.f32 %v1766_v38, %v1518_v8 }
 0x1e8   : > { %1868 = vst.msk [vmem:[#allocation3 + $0x90] sm:$0xff] %vm1849_vm1, %v1835_v63  ;;  %v506_v63 = vld [vmem:[#allocation2 + $0x18] sm:$0xff] }
 0x1e9   : > { %1871 = vst.msk [vmem:[#allocation3 + $0xa8] sm:$0xff] %vm1849_vm1, %v1838_v5  ;;  %v1761_v45 = vpop.xlane.xlu0 %1760  ;;  %v1527_v5 = vld [vmem:[#allocation3 + $0xf0] sm:$0xff] }
 0x1ea   : > { %v1837_v58 = vadd.f32 %v1761_v45, %v1517_v9  ;;  %v1776_v50 = vpop.xlane.xlu1 %1775 }
 0x1eb   : > { %v1840_v44 = vadd.f32 %v1776_v50, %v1520_v17 }
 0x1ec   : > { %1870 = vst.msk [vmem:[#allocation3 + $0xa0] sm:$0xff] %vm1849_vm1, %v1837_v58 }
 0x1ed   : > { %1873 = vst.msk [vmem:[#allocation3 + $0xb8] sm:$0xff] %vm1849_vm1, %v1840_v44  ;;  %v1771_v56 = vpop.xlane.xlu0 %1770 }
 0x1ee   : > { %v1839_v11 = vadd.f32 %v1771_v56, %v1519_v49  ;;  %v1786_v16 = vpop.xlane.xlu1 %1785 }
 0x1ef   : > { %v1842_v33 = vadd.f32 %v1786_v16, %v1522_v27 }
 0x1f0   : > { %1872 = vst.msk [vmem:[#allocation3 + $0xb0] sm:$0xff] %vm1849_vm1, %v1839_v11 }
 0x1f1   : > { %1875 = vst.msk [vmem:[#allocation3 + $0xc8] sm:$0xff] %vm1849_vm1, %v1842_v33  ;;  %v1781_v60 = vpop.xlane.xlu0 %1780 }
 0x1f2   : > { %v1841_v36 = vadd.f32 %v1781_v60, %v1521_v35  ;;  %v1796_v1 = vpop.xlane.xlu1 %1795  ;;  %v507_v60 = vld [vmem:[#allocation2 + $0x20] sm:$0xff] }
 0x1f3   : > { %v1844_v28 = vadd.f32 %v1796_v1, %v1524_v59 }
 0x1f4   : > { %1874 = vst.msk [vmem:[#allocation3 + $0xc0] sm:$0xff] %vm1849_vm1, %v1841_v36 }
 0x1f5   : > { %v3004_v57 = vpop.f32.mrb[0].mxu0  ;;  %v1791_v54 = vpop.xlane.xlu0 %1790  ;;  %1877 = vst.msk [vmem:[#allocation3 + $0xd8] sm:$0xff] %vm1849_vm1, %v1844_v28  ;;  %v509_v28 = vld [vmem:[#allocation2 + $0x30] sm:$0xff] }
 0x1f6   : > { %v3116_v61 = vpop.f32.mrb[0].mxu1  ;;  %v3005_v3 = vpop.f32.mrb[1].mxu0  ;;  %v1843_v22 = vadd.f32 %v1791_v54, %v1523_v42 }
 0x1f7   : > { %v3006_v25 = vadd.f32 %v3005_v3, %v3004_v57  ;;  %v3117_v6 = vpop.f32.mrb[1].mxu1  ;;  %v3007_v39 = vpop.f32.mrb[2].mxu0 }
 0x1f8   : > { %v3118_v2 = vadd.f32 %v3117_v6, %v3116_v61  ;;  %v3119_v12 = vpop.f32.mrb[2].mxu1  ;;  %v3008_v41 = vpop.f32.mrb[3].mxu0  ;;  %1876 = vst.msk [vmem:[#allocation3 + $0xd0] sm:$0xff] %vm1849_vm1, %v1843_v22  ;;  %v508_v6 = vld [vmem:[#allocation2 + $0x28] sm:$0xff] }
 0x1f9   : > { %v3009_v0 = vadd.f32 %v3008_v41, %v3007_v39  ;;  %v3120_v7 = vpop.f32.mrb[3].mxu1  ;;  %v1806_v55 = vpop.xlane.xlu1 %1805 }
 0x1fa   : > { %v1307_v32 = vadd.f32 %v3118_v2, %v3006_v25  ;;  %v3121_v34 = vadd.f32 %v3120_v7, %v3119_v12  ;;  %v1846_v14 = vadd.f32 %v1806_v55, %v1526_v31  ;;  %v1801_v47 = vpop.xlane.xlu0 %1800 }
 0x1fb   : > { %v1845_v8 = vadd.f32 %v1801_v47, %v1525_v4 }
 0x1fc   : > { %v1433_v43 = vadd.f32 %v1307_v32, %v503_v53  ;;  %v1310_v52 = vadd.f32 %v3121_v34, %v3009_v0  ;;  %1879 = vst.msk [vmem:[#allocation3 + $0xe8] sm:$0xff] %vm1849_vm1, %v1846_v14 }
 0x1fd   : > { %v3010_v30 = vpop.f32.mrb[4].mxu0  ;;  %v1816_v23 = vpop.xlane.xlu1 %1815  ;;  %1878 = vst.msk [vmem:[#allocation3 + $0xe0] sm:$0xff] %vm1849_vm1, %v1845_v8 }
 0x1fe   : > { %1465 = vst [vmem:[#allocation2] sm:$0xff] %v1433_v43  ;;  %v1434_v19 = vadd.f32 %v1310_v52, %v504_v13  ;;  %v3122_v37 = vpop.f32.mrb[4].mxu1  ;;  %v3011_v20 = vpop.f32.mrb[5].mxu0  ;;  %v1848_v38 = vadd.f32 %v1816_v23, %v1528_v48  ;;  %v510_v43 = vld [vmem:[#allocation2 + $0x38] sm:$0xff] }
 0x1ff   : > { %v3012_v21 = vadd.f32 %v3011_v20, %v3010_v30  ;;  %v3123_v51 = vpop.f32.mrb[5].mxu1  ;;  %v3013_v10 = vpop.f32.mrb[6].mxu0 }
 0x200   : > { %1466 = vst [vmem:[#allocation2 + $0x8] sm:$0xff] %v1434_v19  ;;  %v3124_v62 = vadd.f32 %v3123_v51, %v3122_v37  ;;  %v3125_v26 = vpop.f32.mrb[6].mxu1  ;;  %v3014_v15 = vpop.f32.mrb[7].mxu0  ;;  %1881 = vst.msk [vmem:[#allocation3 + $0xf8] sm:$0xff] %vm1849_vm1, %v1848_v38 }
 0x201   : > { %v3015_v18 = vadd.f32 %v3014_v15, %v3013_v10  ;;  %v3126_v29 = vpop.f32.mrb[7].mxu1  ;;  %v1811_v58 = vpop.xlane.xlu0 %1810 }
 0x202   : > { %v1315_v40 = vadd.f32 %v3124_v62, %v3012_v21  ;;  %v3127_v46 = vadd.f32 %v3126_v29, %v3125_v26  ;;  %v1847_v27 = vadd.f32 %v1811_v58, %v1527_v5  ;;  %v511_v26 = vld [vmem:[#allocation2 + $0x40] sm:$0xff]  ;;  %v512_v29 = vld [vmem:[#allocation2 + $0x48] sm:$0xff] }
 0x204   : > { %v1435_v9 = vadd.f32 %v1315_v40, %v505_v24  ;;  %v1318_v17 = vadd.f32 %v3127_v46, %v3015_v18  ;;  %1880 = vst.msk [vmem:[#allocation3 + $0xf0] sm:$0xff] %vm1849_vm1, %v1847_v27 }
 0x205   : > { %v3016_v45 = vpop.f32.mrb[8].mxu0 }
 0x206   : > { %1467 = vst [vmem:[#allocation2 + $0x10] sm:$0xff] %v1435_v9  ;;  %v1436_v50 = vadd.f32 %v1318_v17, %v506_v63  ;;  %v3128_v44 = vpop.f32.mrb[8].mxu1  ;;  %v3017_v49 = vpop.f32.mrb[9].mxu0 }
 0x207   : > { %v3018_v56 = vadd.f32 %v3017_v49, %v3016_v45  ;;  %v3129_v11 = vpop.f32.mrb[9].mxu1  ;;  %v3019_v16 = vpop.f32.mrb[10].mxu0 }
 0x208   : > { %1468 = vst [vmem:[#allocation2 + $0x18] sm:$0xff] %v1436_v50  ;;  %v3130_v33 = vadd.f32 %v3129_v11, %v3128_v44  ;;  %v3131_v35 = vpop.f32.mrb[10].mxu1  ;;  %v3020_v57 = vpop.f32.mrb[11].mxu0  ;;  %v513_v50 = vld [vmem:[#allocation2 + $0x50] sm:$0xff]  ;;  %v514_v11 = vld [vmem:[#allocation2 + $0x58] sm:$0xff] }
 0x209   : > { %v3021_v61 = vadd.f32 %v3020_v57, %v3019_v16  ;;  %v3132_v3 = vpop.f32.mrb[11].mxu1 }
 0x20a   : > { %v1323_v36 = vadd.f32 %v3130_v33, %v3018_v56  ;;  %v3133_v25 = vadd.f32 %v3132_v3, %v3131_v35 }
 0x20c   : > { %v1437_v39 = vadd.f32 %v1323_v36, %v507_v60  ;;  %v1326_v59 = vadd.f32 %v3133_v25, %v3021_v61 }
 0x20d   : > { %v3022_v2 = vpop.f32.mrb[12].mxu0 }
 0x20e   : > { %1469 = vst [vmem:[#allocation2 + $0x20] sm:$0xff] %v1437_v39  ;;  %v1438_v12 = vadd.f32 %v1326_v59, %v508_v6  ;;  %v3134_v41 = vpop.f32.mrb[12].mxu1  ;;  %v3023_v42 = vpop.f32.mrb[13].mxu0 }
 0x20f   : > { %v3024_v53 = vadd.f32 %v3023_v42, %v3022_v2  ;;  %v3135_v0 = vpop.f32.mrb[13].mxu1  ;;  %v3025_v7 = vpop.f32.mrb[14].mxu0  ;;  %v515_v2 = vld [vmem:[#allocation2 + $0x60] sm:$0xff] }
 0x210   : > { %1470 = vst [vmem:[#allocation2 + $0x28] sm:$0xff] %v1438_v12  ;;  %v3136_v1 = vadd.f32 %v3135_v0, %v3134_v41  ;;  %v3137_v32 = vpop.f32.mrb[14].mxu1  ;;  %v3026_v34 = vpop.f32.mrb[15].mxu0  ;;  %v516_v0 = vld [vmem:[#allocation2 + $0x68] sm:$0xff] }
 0x211   : > { %v3027_v54 = vadd.f32 %v3026_v34, %v3025_v7  ;;  %v3138_v13 = vpop.f32.mrb[15].mxu1 }
 0x212   : > { %v1331_v22 = vadd.f32 %v3136_v1, %v3024_v53  ;;  %v3139_v31 = vadd.f32 %v3138_v13, %v3137_v32 }
 0x214   : > { %v1439_v52 = vadd.f32 %v1331_v22, %v509_v28  ;;  %v1334_v30 = vadd.f32 %v3139_v31, %v3027_v54 }
 0x215   : > { %v3028_v55 = vpop.f32.mrb[16].mxu0 }
 0x216   : > { %1471 = vst [vmem:[#allocation2 + $0x30] sm:$0xff] %v1439_v52  ;;  %v1440_v19 = vadd.f32 %v1334_v30, %v510_v43  ;;  %v3140_v37 = vpop.f32.mrb[16].mxu1  ;;  %v3029_v20 = vpop.f32.mrb[17].mxu0 }
 0x217   : > { %v3030_v14 = vadd.f32 %v3029_v20, %v3028_v55  ;;  %v3141_v21 = vpop.f32.mrb[17].mxu1  ;;  %v3031_v51 = vpop.f32.mrb[18].mxu0  ;;  %v517_v55 = vld [vmem:[#allocation2 + $0x70] sm:$0xff] }
 0x218   : > { %1472 = vst [vmem:[#allocation2 + $0x38] sm:$0xff] %v1440_v19  ;;  %v3142_v10 = vadd.f32 %v3141_v21, %v3140_v37  ;;  %v3143_v4 = vpop.f32.mrb[18].mxu1  ;;  %v3032_v62 = vpop.f32.mrb[19].mxu0  ;;  %v518_v21 = vld [vmem:[#allocation2 + $0x78] sm:$0xff] }
 0x219   : > { %v3033_v15 = vadd.f32 %v3032_v62, %v3031_v51  ;;  %v3144_v48 = vpop.f32.mrb[19].mxu1 }
 0x21a   : > { %v1339_v24 = vadd.f32 %v3142_v10, %v3030_v14  ;;  %v3145_v18 = vadd.f32 %v3144_v48, %v3143_v4 }
 0x21c   : > { %v1441_v47 = vadd.f32 %v1339_v24, %v511_v26  ;;  %v1342_v40 = vadd.f32 %v3145_v18, %v3033_v15 }
 0x21d   : > { %v3034_v46 = vpop.f32.mrb[20].mxu0 }
 0x21e   : > { %1473 = vst [vmem:[#allocation2 + $0x40] sm:$0xff] %v1441_v47  ;;  %v1442_v8 = vadd.f32 %v1342_v40, %v512_v29  ;;  %v3146_v23 = vpop.f32.mrb[20].mxu1  ;;  %v3035_v63 = vpop.f32.mrb[21].mxu0 }
 0x21f   : > { %v3036_v38 = vadd.f32 %v3035_v63, %v3034_v46  ;;  %v3147_v5 = vpop.f32.mrb[21].mxu1  ;;  %v3037_v9 = vpop.f32.mrb[22].mxu0  ;;  %v519_v46 = vld [vmem:[#allocation2 + $0x80] sm:$0xff] }
 0x220   : > { %1474 = vst [vmem:[#allocation2 + $0x48] sm:$0xff] %v1442_v8  ;;  %v3148_v17 = vadd.f32 %v3147_v5, %v3146_v23  ;;  %v3149_v45 = vpop.f32.mrb[22].mxu1  ;;  %v3038_v58 = vpop.f32.mrb[23].mxu0  ;;  %v520_v5 = vld [vmem:[#allocation2 + $0x88] sm:$0xff] }
 0x221   : > { %v3039_v44 = vadd.f32 %v3038_v58, %v3037_v9  ;;  %v3150_v49 = vpop.f32.mrb[23].mxu1 }
 0x222   : > { %v1347_v27 = vadd.f32 %v3148_v17, %v3036_v38  ;;  %v3151_v56 = vadd.f32 %v3150_v49, %v3149_v45 }
 0x224   : > { %v1443_v16 = vadd.f32 %v1347_v27, %v513_v50  ;;  %v1350_v33 = vadd.f32 %v3151_v56, %v3039_v44 }
 0x225   : > { %v3040_v35 = vpop.f32.mrb[24].mxu0 }
 0x226   : > { %1475 = vst [vmem:[#allocation2 + $0x50] sm:$0xff] %v1443_v16  ;;  %v1444_v57 = vadd.f32 %v1350_v33, %v514_v11  ;;  %v3152_v60 = vpop.f32.mrb[24].mxu1  ;;  %v3041_v61 = vpop.f32.mrb[25].mxu0 }
 0x227   : > { %v3042_v3 = vadd.f32 %v3041_v61, %v3040_v35  ;;  %v3153_v36 = vpop.f32.mrb[25].mxu1  ;;  %v3043_v25 = vpop.f32.mrb[26].mxu0  ;;  %v521_v35 = vld [vmem:[#allocation2 + $0x90] sm:$0xff] }
 0x228   : > { %1476 = vst [vmem:[#allocation2 + $0x58] sm:$0xff] %v1444_v57  ;;  %v3154_v6 = vadd.f32 %v3153_v36, %v3152_v60  ;;  %v3155_v39 = vpop.f32.mrb[26].mxu1  ;;  %v3044_v59 = vpop.f32.mrb[27].mxu0  ;;  %v522_v36 = vld [vmem:[#allocation2 + $0x98] sm:$0xff] }
 0x229   : > { %v3045_v12 = vadd.f32 %v3044_v59, %v3043_v25  ;;  %v3156_v41 = vpop.f32.mrb[27].mxu1 }
 0x22a   : > { %v1355_v42 = vadd.f32 %v3154_v6, %v3042_v3  ;;  %v3157_v53 = vadd.f32 %v3156_v41, %v3155_v39 }
 0x22c   : > { %v1445_v7 = vadd.f32 %v1355_v42, %v515_v2  ;;  %v1358_v1 = vadd.f32 %v3157_v53, %v3045_v12 }
 0x22d   : > { %v3046_v32 = vpop.f32.mrb[28].mxu0 }
 0x22e   : > { %1477 = vst [vmem:[#allocation2 + $0x60] sm:$0xff] %v1445_v7  ;;  %v1446_v34 = vadd.f32 %v1358_v1, %v516_v0  ;;  %v3158_v28 = vpop.f32.mrb[28].mxu1  ;;  %v3047_v54 = vpop.f32.mrb[29].mxu0 }
 0x22f   : > { %v3048_v13 = vadd.f32 %v3047_v54, %v3046_v32  ;;  %v3159_v22 = vpop.f32.mrb[29].mxu1  ;;  %v3049_v31 = vpop.f32.mrb[30].mxu0  ;;  %v523_v32 = vld [vmem:[#allocation2 + $0xa0] sm:$0xff] }
 0x230   : > { %1478 = vst [vmem:[#allocation2 + $0x68] sm:$0xff] %v1446_v34  ;;  %v3160_v43 = vadd.f32 %v3159_v22, %v3158_v28  ;;  %v3161_v52 = vpop.f32.mrb[30].mxu1  ;;  %v3050_v30 = vpop.f32.mrb[31].mxu0  ;;  %v524_v22 = vld [vmem:[#allocation2 + $0xa8] sm:$0xff] }
 0x231   : > { %v3051_v19 = vadd.f32 %v3050_v30, %v3049_v31  ;;  %v3162_v37 = vpop.f32.mrb[31].mxu1 }
 0x232   : > { %v1363_v20 = vadd.f32 %v3160_v43, %v3048_v13  ;;  %v3163_v14 = vadd.f32 %v3162_v37, %v3161_v52 }
 0x234   : > { %v1447_v51 = vadd.f32 %v1363_v20, %v517_v55  ;;  %v1366_v10 = vadd.f32 %v3163_v14, %v3051_v19 }
 0x235   : > { %v3052_v4 = vpop.f32.mrb[32].mxu0 }
 0x236   : > { %1479 = vst [vmem:[#allocation2 + $0x70] sm:$0xff] %v1447_v51  ;;  %v1448_v62 = vadd.f32 %v1366_v10, %v518_v21  ;;  %v3164_v26 = vpop.f32.mrb[32].mxu1  ;;  %v3053_v15 = vpop.f32.mrb[33].mxu0 }
 0x237   : > { %v3054_v48 = vadd.f32 %v3053_v15, %v3052_v4  ;;  %v3165_v24 = vpop.f32.mrb[33].mxu1  ;;  %v3055_v18 = vpop.f32.mrb[34].mxu0  ;;  %v525_v4 = vld [vmem:[#allocation2 + $0xb0] sm:$0xff] }
 0x238   : > { %1480 = vst [vmem:[#allocation2 + $0x78] sm:$0xff] %v1448_v62  ;;  %v3166_v29 = vadd.f32 %v3165_v24, %v3164_v26  ;;  %v3167_v47 = vpop.f32.mrb[34].mxu1  ;;  %v3056_v40 = vpop.f32.mrb[35].mxu0  ;;  %v526_v24 = vld [vmem:[#allocation2 + $0xb8] sm:$0xff] }
 0x239   : > { %v3168_v8 = vpop.f32.mrb[35].mxu1  ;;  %v3057_v23 = vadd.f32 %v3056_v40, %v3055_v18 }
 0x23a   : > { %v1371_v63 = vadd.f32 %v3166_v29, %v3054_v48  ;;  %v3169_v38 = vadd.f32 %v3168_v8, %v3167_v47 }
 0x23c   : > { %v1449_v9 = vadd.f32 %v1371_v63, %v519_v46  ;;  %v1374_v17 = vadd.f32 %v3169_v38, %v3057_v23 }
 0x23d   : > { %v3058_v45 = vpop.f32.mrb[36].mxu0 }
 0x23e   : > { %1481 = vst [vmem:[#allocation2 + $0x80] sm:$0xff] %v1449_v9  ;;  %v1450_v58 = vadd.f32 %v1374_v17, %v520_v5  ;;  %v3170_v50 = vpop.f32.mrb[36].mxu1  ;;  %v3059_v44 = vpop.f32.mrb[37].mxu0 }
 0x23f   : > { %v3060_v49 = vadd.f32 %v3059_v44, %v3058_v45  ;;  %v3171_v27 = vpop.f32.mrb[37].mxu1  ;;  %v3061_v56 = vpop.f32.mrb[38].mxu0  ;;  %v527_v45 = vld [vmem:[#allocation2 + $0xc0] sm:$0xff] }
 0x240   : > { %1482 = vst [vmem:[#allocation2 + $0x88] sm:$0xff] %v1450_v58  ;;  %v3172_v11 = vadd.f32 %v3171_v27, %v3170_v50  ;;  %v3173_v16 = vpop.f32.mrb[38].mxu1  ;;  %v3062_v33 = vpop.f32.mrb[39].mxu0  ;;  %v528_v27 = vld [vmem:[#allocation2 + $0xc8] sm:$0xff] }
 0x241   : > { %v3174_v57 = vpop.f32.mrb[39].mxu1  ;;  %v3063_v60 = vadd.f32 %v3062_v33, %v3061_v56 }
 0x242   : > { %v1379_v61 = vadd.f32 %v3172_v11, %v3060_v49  ;;  %v3175_v3 = vadd.f32 %v3174_v57, %v3173_v16 }
 0x244   : > { %v1451_v25 = vadd.f32 %v1379_v61, %v521_v35  ;;  %v1382_v6 = vadd.f32 %v3175_v3, %v3063_v60 }
 0x245   : > { %v3064_v39 = vpop.f32.mrb[40].mxu0 }
 0x246   : > { %1483 = vst [vmem:[#allocation2 + $0x90] sm:$0xff] %v1451_v25  ;;  %v1452_v59 = vadd.f32 %v1382_v6, %v522_v36  ;;  %v3176_v2 = vpop.f32.mrb[40].mxu1  ;;  %v3065_v12 = vpop.f32.mrb[41].mxu0 }
 0x247   : > { %v3066_v41 = vadd.f32 %v3065_v12, %v3064_v39  ;;  %v3177_v42 = vpop.f32.mrb[41].mxu1  ;;  %v3067_v53 = vpop.f32.mrb[42].mxu0  ;;  %v529_v39 = vld [vmem:[#allocation2 + $0xd0] sm:$0xff] }
 0x248   : > { %1484 = vst [vmem:[#allocation2 + $0x98] sm:$0xff] %v1452_v59  ;;  %v3178_v0 = vadd.f32 %v3177_v42, %v3176_v2  ;;  %v3179_v7 = vpop.f32.mrb[42].mxu1  ;;  %v3068_v1 = vpop.f32.mrb[43].mxu0  ;;  %v530_v42 = vld [vmem:[#allocation2 + $0xd8] sm:$0xff] }
 0x249   : > { %v3180_v34 = vpop.f32.mrb[43].mxu1  ;;  %v3069_v28 = vadd.f32 %v3068_v1, %v3067_v53 }
 0x24a   : > { %v1387_v54 = vadd.f32 %v3178_v0, %v3066_v41  ;;  %v3181_v13 = vadd.f32 %v3180_v34, %v3179_v7 }
 0x24c   : > { %v1453_v31 = vadd.f32 %v1387_v54, %v523_v32  ;;  %v1390_v43 = vadd.f32 %v3181_v13, %v3069_v28 }
 0x24d   : > { %v3070_v52 = vpop.f32.mrb[44].mxu0 }
 0x24e   : > { %1485 = vst [vmem:[#allocation2 + $0xa0] sm:$0xff] %v1453_v31  ;;  %v1454_v30 = vadd.f32 %v1390_v43, %v524_v22  ;;  %v3182_v55 = vpop.f32.mrb[44].mxu1  ;;  %v3071_v19 = vpop.f32.mrb[45].mxu0 }
 0x24f   : > { %v3072_v37 = vadd.f32 %v3071_v19, %v3070_v52  ;;  %v3183_v20 = vpop.f32.mrb[45].mxu1  ;;  %v3073_v14 = vpop.f32.mrb[46].mxu0  ;;  %v531_v52 = vld [vmem:[#allocation2 + $0xe0] sm:$0xff] }
 0x250   : > { %1486 = vst [vmem:[#allocation2 + $0xa8] sm:$0xff] %v1454_v30  ;;  %v3184_v21 = vadd.f32 %v3183_v20, %v3182_v55  ;;  %v3185_v51 = vpop.f32.mrb[46].mxu1  ;;  %v3074_v10 = vpop.f32.mrb[47].mxu0  ;;  %v532_v20 = vld [vmem:[#allocation2 + $0xe8] sm:$0xff] }
 0x251   : > { %v3186_v62 = vpop.f32.mrb[47].mxu1  ;;  %v3075_v26 = vadd.f32 %v3074_v10, %v3073_v14 }
 0x252   : > { %v1395_v15 = vadd.f32 %v3184_v21, %v3072_v37  ;;  %v3187_v48 = vadd.f32 %v3186_v62, %v3185_v51 }
 0x254   : > { %v1455_v18 = vadd.f32 %v1395_v15, %v525_v4  ;;  %v1398_v29 = vadd.f32 %v3187_v48, %v3075_v26 }
 0x255   : > { %v3076_v47 = vpop.f32.mrb[48].mxu0 }
 0x256   : > { %1487 = vst [vmem:[#allocation2 + $0xb0] sm:$0xff] %v1455_v18  ;;  %v1456_v40 = vadd.f32 %v1398_v29, %v526_v24  ;;  %v3188_v46 = vpop.f32.mrb[48].mxu1  ;;  %v3077_v8 = vpop.f32.mrb[49].mxu0 }
 0x257   : > { %v3078_v23 = vadd.f32 %v3077_v8, %v3076_v47  ;;  %v3189_v63 = vpop.f32.mrb[49].mxu1  ;;  %v3079_v38 = vpop.f32.mrb[50].mxu0  ;;  %v533_v47 = vld [vmem:[#allocation2 + $0xf0] sm:$0xff] }
 0x258   : > { %1488 = vst [vmem:[#allocation2 + $0xb8] sm:$0xff] %v1456_v40  ;;  %v3190_v5 = vadd.f32 %v3189_v63, %v3188_v46  ;;  %v3191_v9 = vpop.f32.mrb[50].mxu1  ;;  %v3080_v17 = vpop.f32.mrb[51].mxu0  ;;  %v534_v63 = vld [vmem:[#allocation2 + $0xf8] sm:$0xff] }
 0x259   : > { %v3192_v58 = vpop.f32.mrb[51].mxu1  ;;  %v3081_v50 = vadd.f32 %v3080_v17, %v3079_v38  ;;  %v1887_v17 = vld [vmem:[#allocation3 + $0x8] sm:$0xff] (!%p2898_p5) }
 0x25a   : > { %v1403_v44 = vadd.f32 %v3190_v5, %v3078_v23  ;;  %v3193_v49 = vadd.f32 %v3192_v58, %v3191_v9  ;;  %v1903_v58 = vld [vmem:[#allocation3 + $0x88] sm:$0xff] (!%p2898_p5) }
 0x25c   : > { %v1457_v56 = vadd.f32 %v1403_v44, %v527_v45  ;;  %v1406_v11 = vadd.f32 %v3193_v49, %v3081_v50  ;;  %v1886_v45 = vld [vmem:[#allocation3] sm:$0xff] (!%p2898_p5)  ;;  %v4037_v50 = vmov (!%p2898_p5), 0   ;;  %v1919_v44 = vmax.f32 (!%p2898_p5), %v1887_v17, 1.0 }
 0x25d   : > { %v3082_v16 = vpop.f32.mrb[52].mxu0  ;;  %3653 = vset.pattern.permute.xlu1 (!%p2898_p5), %v4037_v50  ;;  %3652 = vset.pattern.permute.xlu0 (!%p2898_p5), %v4037_v50  ;;  %v1918_v49 = vmax.f32 (!%p2898_p5), %v1886_v45, 1.0  ;;  %v2314_v17 = vld [vmem:[#allocation10 + $0x60] sm:$0xff] (!%p2898_p5)  ;;  %v2315_v45 = vld [vmem:[#allocation10 + $0x68] sm:$0xff] (!%p2898_p5) }
 0x25e   : > { %1489 = vst [vmem:[#allocation2 + $0xc0] sm:$0xff] %v1457_v56  ;;  %v1458_v33 = vadd.f32 %v1406_v11, %v528_v27  ;;  %v3194_v35 = vpop.f32.mrb[52].mxu1  ;;  %v3083_v57 = vpop.f32.mrb[53].mxu0  ;;  %v1935_v27 = vmax.f32 (!%p2898_p5), %v1903_v58, 1.0  ;;  %v1902_v56 = vld [vmem:[#allocation3 + $0x80] sm:$0xff] (!%p2898_p5)  ;;  %3654 = vrcp.f32 (!%p2898_p5), %v1919_v44  ;;  %v1911_v50 = vld [vmem:[#allocation3 + $0xc8] sm:$0xff] (!%p2898_p5) }
 0x25f   : > { %v3084_v60 = vadd.f32 %v3083_v57, %v3082_v16  ;;  %v3195_v61 = vpop.f32.mrb[53].mxu1  ;;  %v3085_v3 = vpop.f32.mrb[54].mxu0  ;;  %v1934_v11 = vmax.f32 (!%p2898_p5), %v1902_v56, 1.0  ;;  %v1904_v16 = vld [vmem:[#allocation3 + $0x90] sm:$0xff] (!%p2898_p5)  ;;  %3656 = vrcp.f32 (!%p2898_p5), %v1918_v49  ;;  %v1895_v49 = vld [vmem:[#allocation3 + $0x48] sm:$0xff] (!%p2898_p5)  ;;  %v3364_v56 = vpack.c.bf16 (!%p2898_p5), %v2315_v45, %v2314_v17 }
 0x260   : > { %1490 = vst [vmem:[#allocation2 + $0xc8] sm:$0xff] %v1458_v33  ;;  %v3196_v36 = vadd.f32 %v3195_v61, %v3194_v35  ;;  %v3197_v25 = vpop.f32.mrb[54].mxu1  ;;  %v3086_v6 = vpop.f32.mrb[55].mxu0  ;;  %v1888_v33 = vld [vmem:[#allocation3 + $0x10] sm:$0xff] (!%p2898_p5)  ;;  %3658 = vrcp.f32 (!%p2898_p5), %v1935_v27  ;;  %v1936_v35 = vmax.f32 (!%p2898_p5), %v1904_v16, 1.0  ;;  %v1889_v61 = vld [vmem:[#allocation3 + $0x18] sm:$0xff] (!%p2898_p5) }
 0x261   : > { %v3198_v59 = vpop.f32.mrb[55].mxu1  ;;  %v3087_v2 = vadd.f32 %v3086_v6, %v3085_v3  ;;  %3660 = vrcp.f32 (!%p2898_p5), %v1934_v11  ;;  %v1920_v57 = vmax.f32 (!%p2898_p5), %v1888_v33, 1.0  ;;  %v1890_v6 = vld [vmem:[#allocation3 + $0x20] sm:$0xff] (!%p2898_p5)  ;;  %v1943_v11 = vmax.f32 (!%p2898_p5), %v1911_v50, 1.0  ;;  %v2316_v16 = vld [vmem:[#allocation10 + $0x70] sm:$0xff] (!%p2898_p5)  ;;  %v2317_v33 = vld [vmem:[#allocation10 + $0x78] sm:$0xff] (!%p2898_p5) }
 0x262   : > { %v1411_v12 = vadd.f32 %v3196_v36, %v3084_v60  ;;  %v3199_v41 = vadd.f32 %v3198_v59, %v3197_v25  ;;  %v1905_v60 = vld [vmem:[#allocation3 + $0x98] sm:$0xff] (!%p2898_p5)  ;;  %3662 = vrcp.f32 (!%p2898_p5), %v1936_v35  ;;  %v1921_v36 = vmax.f32 (!%p2898_p5), %v1889_v61, 1.0  ;;  %v1906_v25 = vld [vmem:[#allocation3 + $0xa0] sm:$0xff] (!%p2898_p5)  ;;  %v2303_v59 = vld [vmem:[#allocation10 + $0x8] sm:$0xff] (!%p2898_p5) }
 0x263   : > { %v1937_v3 = vmax.f32 (!%p2898_p5), %v1905_v60, 1.0  ;;  %3664 = vrcp.f32 (!%p2898_p5), %v1920_v57  ;;  %v1927_v35 = vmax.f32 (!%p2898_p5), %v1895_v49, 1.0  ;;  %v1912_v57 = vld [vmem:[#allocation3 + $0xd0] sm:$0xff] (!%p2898_p5)  ;;  %v1998_v49 = vld [vmem:[#allocation2 + $0x80] sm:$0xff] (!%p2898_p5) }
 0x264   : > { %v1459_v53 = vadd.f32 %v1411_v12, %v529_v39  ;;  %v1414_v0 = vadd.f32 %v3199_v41, %v3087_v2  ;;  %v2302_v39 = vld [vmem:[#allocation10] sm:$0xff] (!%p2898_p5)  ;;  %v2304_v2 = vld [vmem:[#allocation10 + $0x10] sm:$0xff] (!%p2898_p5)  ;;  %v2305_v12 = vld [vmem:[#allocation10 + $0x18] sm:$0xff] (!%p2898_p5) }
 0x265   : > { %v3088_v7 = vpop.f32.mrb[56].mxu0  ;;  %v3340_v41 = vpack.c.bf16 (!%p2898_p5), %v2303_v59, %v2302_v39  ;;  %3666 = vrcp.f32 (!%p2898_p5), %v1937_v3  ;;  %v1896_v61 = vld [vmem:[#allocation3 + $0x50] sm:$0xff] (!%p2898_p5)  ;;  %v1913_v39 = vld [vmem:[#allocation3 + $0xd8] sm:$0xff] (!%p2898_p5) }
 0x266   : > { %1491 = vst [vmem:[#allocation2 + $0xd0] sm:$0xff] %v1459_v53  ;;  %v1460_v1 = vadd.f32 %v1414_v0, %v530_v42  ;;  %v3200_v32 = vpop.f32.mrb[56].mxu1  ;;  %v3089_v34 = vpop.f32.mrb[57].mxu0  ;;  %v3344_v42 = vpack.c.bf16 (!%p2898_p5), %v2305_v12, %v2304_v2  ;;  %v1938_v0 = vmax.f32 (!%p2898_p5), %v1906_v25, 1.0  ;;  %3668 = vrcp.f32 (!%p2898_p5), %v1921_v36  ;;  %v1897_v2 = vld [vmem:[#allocation3 + $0x58] sm:$0xff] (!%p2898_p5) }
 0x267   : > { %v3090_v28 = vadd.f32 %v3089_v34, %v3088_v7  ;;  %v3201_v54 = vpop.f32.mrb[57].mxu1  ;;  %v3091_v13 = vpop.f32.mrb[58].mxu0  ;;  %v2306_v7 = vld [vmem:[#allocation10 + $0x20] sm:$0xff] (!%p2898_p5)  ;;  %v1922_v34 = vmax.f32 (!%p2898_p5), %v1890_v6, 1.0  ;;  %3341 = vmatprep.subr.bf16.mxu0 (!%p2898_p5), %v3340_v41  ;;  %3372 = vmatprep.subr.bf16.mxu1 (!%p2898_p5), %v3340_v41  ;;  %v3368_v36 = vpack.c.bf16 (!%p2898_p5), %v2317_v33, %v2316_v16  ;;  %v1944_v25 = vmax.f32 (!%p2898_p5), %v1912_v57, 1.0 }
 0x268   : > { %1492 = vst [vmem:[#allocation2 + $0xd8] sm:$0xff] %v1460_v1  ;;  %v3202_v22 = vadd.f32 %v3201_v54, %v3200_v32  ;;  %v3203_v31 = vpop.f32.mrb[58].mxu1  ;;  %v3092_v43 = vpop.f32.mrb[59].mxu0  ;;  %v2307_v1 = vld [vmem:[#allocation10 + $0x28] sm:$0xff] (!%p2898_p5)  ;;  %3343 = vmatpush3.bf16.msra.mxu0 (!%p2898_p5), %v3340_v41  ;;  %3670 = vrcp.f32 (!%p2898_p5), %v1938_v0  ;;  %3380 = vmatpush3.bf16.msra.mxu1 (!%p2898_p5), %v3340_v41  ;;  %v1928_v6 = vmax.f32 (!%p2898_p5), %v1896_v61, 1.0  ;;  %v1945_v41 = vmax.f32 (!%p2898_p5), %v1913_v39, 1.0 }
 0x269   : > { %v3204_v30 = vpop.f32.mrb[59].mxu1  ;;  %v3093_v55 = vadd.f32 %v3092_v43, %v3091_v13  ;;  %v3655_v53 = vpop.eup (!%p2898_p5), %3654  ;;  %v1891_v13 = vld [vmem:[#allocation3 + $0x28] sm:$0xff] (!%p2898_p5)  ;;  %3345 = vmatprep.subr.bf16.mxu0 (!%p2898_p5), %v3344_v42  ;;  %3672 = vrcp.f32 (!%p2898_p5), %v1922_v34  ;;  %3373 = vmatprep.subr.bf16.mxu1 (!%p2898_p5), %v3344_v42  ;;  %v2000_v61 = vld [vmem:[#allocation2 + $0x90] sm:$0xff] (!%p2898_p5) }
 0x26a   : > { %v1419_v19 = vadd.f32 %v3202_v22, %v3090_v28  ;;  %v3205_v37 = vadd.f32 %v3204_v30, %v3203_v31  ;;  %v3657_v32 = vpop.eup (!%p2898_p5), %3656  ;;  %2117 = vperm.xlu1 (!%p2898_p5), %3653, %v3655_v53   ;;  %v1907_v28 = vld [vmem:[#allocation3 + $0xa8] sm:$0xff] (!%p2898_p5)  ;;  %v3348_v31 = vpack.c.bf16 (!%p2898_p5), %v2307_v1, %v2306_v7  ;;  %v2309_v30 = vld [vmem:[#allocation10 + $0x38] sm:$0xff] (!%p2898_p5)  ;;  %v1914_v53 = vld [vmem:[#allocation3 + $0xe0] sm:$0xff] (!%p2898_p5) }
 0x26b   : > { %v3659_v54 = vpop.eup (!%p2898_p5), %3658  ;;  %2112 = vperm.xlu0 (!%p2898_p5), %3652, %v3657_v32   ;;  %v1939_v43 = vmax.f32 (!%p2898_p5), %v1907_v28, 1.0  ;;  %v1898_v7 = vld [vmem:[#allocation3 + $0x60] sm:$0xff] (!%p2898_p5)  ;;  %v1946_v32 = vmax.f32 (!%p2898_p5), %v1914_v53, 1.0  ;;  %v1915_v28 = vld [vmem:[#allocation3 + $0xe8] sm:$0xff] (!%p2898_p5) }
 0x26c   : > { %v1461_v14 = vadd.f32 %v1419_v19, %v531_v52  ;;  %v1422_v21 = vadd.f32 %v3205_v37, %v3093_v55  ;;  %v3661_v22 = vpop.eup (!%p2898_p5), %3660  ;;  %v2308_v52 = vld [vmem:[#allocation10 + $0x30] sm:$0xff] (!%p2898_p5)  ;;  %v1923_v55 = vmax.f32 (!%p2898_p5), %v1891_v13, 1.0  ;;  %3347 = vmatpush3.bf16.msra.mxu0 (!%p2898_p5), %v3344_v42  ;;  %3381 = vmatpush3.bf16.msra.mxu1 (!%p2898_p5), %v3344_v42  ;;  %v1929_v42 = vmax.f32 (!%p2898_p5), %v1897_v2, 1.0  ;;  %v1899_v13 = vld [vmem:[#allocation3 + $0x68] sm:$0xff] (!%p2898_p5) }
 0x26d   : > { %v3094_v51 = vpop.f32.mrb[60].mxu0  ;;  %v1908_v19 = vld [vmem:[#allocation3 + $0xb0] sm:$0xff] (!%p2898_p5)  ;;  %v3663_v37 = vpop.eup (!%p2898_p5), %3662  ;;  %3349 = vmatprep.subr.bf16.mxu0 (!%p2898_p5), %v3348_v31  ;;  %3674 = vrcp.f32 (!%p2898_p5), %v1939_v43  ;;  %3374 = vmatprep.subr.bf16.mxu1 (!%p2898_p5), %v3348_v31  ;;  %v1930_v34 = vmax.f32 (!%p2898_p5), %v1898_v7, 1.0  ;;  %v1931_v43 = vmax.f32 (!%p2898_p5), %v1899_v13, 1.0  ;;  %v1985_v7 = vld [vmem:[#allocation2 + $0x18] sm:$0xff] (!%p2898_p5) }
 0x26e   : > { %1493 = vst [vmem:[#allocation2 + $0xe0] sm:$0xff] %v1461_v14  ;;  %v1462_v10 = vadd.f32 %v1422_v21, %v532_v20  ;;  %v3206_v4 = vpop.f32.mrb[60].mxu1  ;;  %v3095_v62 = vpop.f32.mrb[61].mxu0  ;;  %2197 = vperm.xlu1 (!%p2898_p5), %3653, %v3659_v54   ;;  %v1892_v20 = vld [vmem:[#allocation3 + $0x30] sm:$0xff] (!%p2898_p5)  ;;  %v3352_v21 = vpack.c.bf16 (!%p2898_p5), %v2309_v30, %v2308_v52  ;;  %3676 = vrcp.f32 (!%p2898_p5), %v1923_v55 }
 0x26f   : > { %v3096_v26 = vadd.f32 %v3095_v62, %v3094_v51  ;;  %v3207_v15 = vpop.f32.mrb[61].mxu1  ;;  %v3097_v48 = vpop.f32.mrb[62].mxu0  ;;  %2192 = vperm.xlu0 (!%p2898_p5), %3652, %v3661_v22   ;;  %v1940_v51 = vmax.f32 (!%p2898_p5), %v1908_v19, 1.0  ;;  %v1924_v62 = vmax.f32 (!%p2898_p5), %v1892_v20, 1.0  ;;  %v1916_v52 = vld [vmem:[#allocation3 + $0xf0] sm:$0xff] (!%p2898_p5) }
 0x270   : > { %1494 = vst [vmem:[#allocation2 + $0xe8] sm:$0xff] %v1462_v10  ;;  %v3208_v24 = vadd.f32 %v3207_v15, %v3206_v4  ;;  %v3209_v18 = vpop.f32.mrb[62].mxu1  ;;  %v3098_v29 = vpop.f32.mrb[63].mxu0  ;;  %v2310_v10 = vld [vmem:[#allocation10 + $0x40] sm:$0xff] (!%p2898_p5)  ;;  %v2311_v4 = vld [vmem:[#allocation10 + $0x48] sm:$0xff] (!%p2898_p5)  ;;  %3351 = vmatpush3.bf16.msra.mxu0 (!%p2898_p5), %v3348_v31  ;;  %3382 = vmatpush3.bf16.msra.mxu1 (!%p2898_p5), %v3348_v31  ;;  %v1947_v31 = vmax.f32 (!%p2898_p5), %v1915_v28, 1.0 }
 0x271   : > { %v3210_v40 = vpop.f32.mrb[63].mxu1  ;;  %v3099_v46 = vadd.f32 %v3098_v29, %v3097_v48  ;;  %v3665_v14 = vpop.eup (!%p2898_p5), %3664  ;;  %v1893_v48 = vld [vmem:[#allocation3 + $0x38] sm:$0xff] (!%p2898_p5)  ;;  %3353 = vmatprep.subr.bf16.mxu0 (!%p2898_p5), %v3352_v21  ;;  %3678 = vrcp.f32 (!%p2898_p5), %v1940_v51  ;;  %3375 = vmatprep.subr.bf16.mxu1 (!%p2898_p5), %v3352_v21  ;;  %v1900_v55 = vld [vmem:[#allocation3 + $0x70] sm:$0xff] (!%p2898_p5) }
 0x272   : > { %v1427_v8 = vadd.f32 %v3208_v24, %v3096_v26  ;;  %v3211_v23 = vadd.f32 %v3210_v40, %v3209_v18  ;;  %1885 = sbr.rel (%p2898_p5) target bundleno = 1027 (0x403), region = 68  ;;  %2202 = vperm.xlu1 (!%p2898_p5), %3653, %v3663_v37   ;;  %v1909_v26 = vld [vmem:[#allocation3 + $0xb8] sm:$0xff] (!%p2898_p5)  ;;  %v3667_v15 = vpop.eup (!%p2898_p5), %3666  ;;  %v3356_v18 = vpack.c.bf16 (!%p2898_p5), %v2311_v4, %v2310_v10  ;;  %3680 = vrcp.f32 (!%p2898_p5), %v1924_v62 }
 0x273   : > { %2122 = vperm.xlu0 (!%p2898_p5), %3652, %v3665_v14   ;;  %v3669_v24 = vpop.eup (!%p2898_p5), %3668  ;;  %v1941_v29 = vmax.f32 (!%p2898_p5), %v1909_v26, 1.0  ;;  %v2313_v40 = vld [vmem:[#allocation10 + $0x58] sm:$0xff] (!%p2898_p5)  ;;  %v1948_v37 = vmax.f32 (!%p2898_p5), %v1916_v52, 1.0  ;;  %v1932_v20 = vmax.f32 (!%p2898_p5), %v1900_v55, 1.0 }
 0x274   : > { %v1463_v38 = vadd.f32 %v1427_v8, %v533_v47  ;;  %v1430_v5 = vadd.f32 %v3211_v23, %v3099_v46  ;;  %v2312_v47 = vld [vmem:[#allocation10 + $0x50] sm:$0xff] (!%p2898_p5)  ;;  %v1925_v46 = vmax.f32 (!%p2898_p5), %v1893_v48, 1.0  ;;  %v1910_v8 = vld [vmem:[#allocation3 + $0xc0] sm:$0xff] (!%p2898_p5)  ;;  %v3671_v23 = vpop.eup (!%p2898_p5), %3670  ;;  %3355 = vmatpush3.bf16.msra.mxu0 (!%p2898_p5), %v3352_v21  ;;  %3383 = vmatpush3.bf16.msra.mxu1 (!%p2898_p5), %v3352_v21  ;;  %v1917_v14 = vld [vmem:[#allocation3 + $0xf8] sm:$0xff] (!%p2898_p5) }
 0x275   : > { %3357 = vmatprep.subr.bf16.mxu0 (!%p2898_p5), %v3356_v18  ;;  %3682 = vrcp.f32 (!%p2898_p5), %v1941_v29  ;;  %3376 = vmatprep.subr.bf16.mxu1 (!%p2898_p5), %v3356_v18  ;;  %v1901_v51 = vld [vmem:[#allocation3 + $0x78] sm:$0xff] (!%p2898_p5)  ;;  %v1949_v4 = vmax.f32 (!%p2898_p5), %v1917_v14, 1.0 }
 0x276   : > { %1495 = vst [vmem:[#allocation2 + $0xf0] sm:$0xff] %v1463_v38  ;;  %v1464_v9 = vadd.f32 %v1430_v5, %v534_v63  ;;  %2207 = vperm.xlu1 (!%p2898_p5), %3653, %v3667_v15   ;;  %v1894_v63 = vld [vmem:[#allocation3 + $0x40] sm:$0xff] (!%p2898_p5)  ;;  %v3673_v38 = vpop.eup (!%p2898_p5), %3672  ;;  %v3360_v5 = vpack.c.bf16 (!%p2898_p5), %v2313_v40, %v2312_v47  ;;  %3684 = vrcp.f32 (!%p2898_p5), %v1925_v46  ;;  %v1933_v62 = vmax.f32 (!%p2898_p5), %v1901_v51, 1.0 }
 0x277   : > { %2127 = vperm.xlu0 (!%p2898_p5), %3652, %v3669_v24   ;;  %v1926_v58 = vmax.f32 (!%p2898_p5), %v1894_v63, 1.0  ;;  %v3675_v44 = vpop.eup (!%p2898_p5), %3674  ;;  %v2910_v46 = vld [vmem:[%s4448_s16] sm:$0xff] (!%p2898_p5)  }
 0x278   : > { %1496 = vst [vmem:[#allocation2 + $0xf8] sm:$0xff] %v1464_v9  ;;  %v1942_v9 = vmax.f32 (!%p2898_p5), %v1910_v8, 1.0  ;;  %3359 = vmatpush3.bf16.msra.mxu0 (!%p2898_p5), %v3356_v18  ;;  %v3677_v27 = vpop.eup (!%p2898_p5), %3676  ;;  %3384 = vmatpush3.bf16.msra.mxu1 (!%p2898_p5), %v3356_v18  ;;  %v2912_v8 = vunpack.c.h.bf16 (!%p2898_p5), %v2910_v46  ;;  %v2911_v63 = vunpack.c.l.bf16 (!%p2898_p5), %v2910_v46 }
 0x279   : > { %3361 = vmatprep.subr.bf16.mxu0 %v3360_v5  ;;  %3377 = vmatprep.subr.bf16.mxu1 %v3360_v5 }
 0x27a   : > { %2212 = vperm.xlu1 %3653, %v3671_v23   ;;  %3686 = vrcp.f32 %v1942_v9  ;;  %v1983_v23 = vld [vmem:[#allocation2 + $0x8] sm:$0xff] }
 0x27b   : > { %2132 = vperm.xlu0 %3652, %v3673_v38   ;;  %3688 = vrcp.f32 %v1926_v58  ;;  %v3679_v60 = vpop.eup %3678  ;;  %v2980_v38 = vld [vmem:[%s4448_s16 + $0x40] sm:$0xff]   ;;  %v2079_v9 = vadd.f32 %v2912_v8, %v1983_v23  ;;  %v1999_v58 = vld [vmem:[#allocation2 + $0x88] sm:$0xff]  ;;  %v2004_v8 = vld [vmem:[#allocation2 + $0xb0] sm:$0xff] }
 0x27c   : > { %3363 = vmatpush3.bf16.msra.mxu0 %v3360_v5  ;;  %v3681_v3 = vpop.eup %3680  ;;  %3690 = vrcp.f32 %v1943_v11  ;;  %3385 = vmatpush3.bf16.msra.mxu1 %v3360_v5  ;;  %v1982_v5 = vld [vmem:[#allocation2] sm:$0xff]  ;;  %v2944_v17 = vunpack.c.h.bf16 %v2980_v38  ;;  %v2943_v50 = vunpack.c.l.bf16 %v2980_v38 }
 0x27d   : > { %3365 = vmatprep.subr.bf16.mxu0 %v3364_v56  ;;  %3692 = vrcp.f32 %v1927_v35  ;;  %3378 = vmatprep.subr.bf16.mxu1 %v3364_v56  ;;  %v2078_v45 = vadd.f32 %v2911_v63, %v1982_v5  ;;  %v1988_v63 = vld [vmem:[#allocation2 + $0x30] sm:$0xff] }
 0x27e   : > { %2217 = vperm.xlu1 %3653, %v3675_v44   ;;  %3694 = vrcp.f32 %v1944_v25  ;;  %v2981_v44 = vld [vmem:[%s4448_s16 + $0x48] sm:$0xff]   ;;  %v2095_v33 = vadd.f32 %v2944_v17, %v1999_v58 }
 0x27f   : > { %2137 = vperm.xlu0 %3652, %v3677_v27   ;;  %v3683_v59 = vpop.eup %3682  ;;  %3696 = vrcp.f32 %v1928_v6  ;;  %v2973_v27 = vld [vmem:[%s4448_s16 + $0x8] sm:$0xff]   ;;  %v2947_v35 = vunpack.c.l.bf16 %v2981_v44  ;;  %v2948_v2 = vunpack.c.h.bf16 %v2981_v44  ;;  %v2005_v44 = vld [vmem:[#allocation2 + $0xb8] sm:$0xff] }
 0x280   : > { %3367 = vmatpush3.bf16.msra.mxu0 %v3364_v56  ;;  %v3685_v12 = vpop.eup %3684  ;;  %3386 = vmatpush3.bf16.msra.mxu1 %v3364_v56  ;;  %3698 = vrcp.f32 %v1945_v41  ;;  %v2916_v53 = vunpack.c.h.bf16 %v2973_v27 }
 0x281   : > { %3369 = vmatprep.subr.bf16.mxu0 %v3368_v36  ;;  %3379 = vmatprep.subr.bf16.mxu1 %v3368_v36  ;;  %3700 = vrcp.f32 %v1929_v42  ;;  %v2001_v42 = vld [vmem:[#allocation2 + $0x98] sm:$0xff] }
 0x282   : > { %2222 = vperm.xlu1 %3653, %v3679_v60   ;;  %3702 = vrcp.f32 %v1946_v32  ;;  %v2094_v60 = vadd.f32 %v2943_v50, %v1998_v49 }
 0x283   : > { %2142 = vperm.xlu0 %3652, %v3681_v3   ;;  %3704 = vrcp.f32 %v1930_v34  ;;  %v2915_v3 = vunpack.c.l.bf16 %v2973_v27  ;;  %v2984_v27 = vld [vmem:[%s4448_s16 + $0x60] sm:$0xff]  }
 0x284   : > { %v3687_v0 = vpop.eup %3686  ;;  %3371 = vmatpush3.bf16.msra.mxu0 %v3368_v36  ;;  %3387 = vmatpush3.bf16.msra.mxu1 %v3368_v36  ;;  %3706 = vrcp.f32 %v1947_v31  ;;  %v1984_v36 = vld [vmem:[#allocation2 + $0x10] sm:$0xff]  ;;  %v2081_v31 = vadd.f32 %v2916_v53, %v1985_v7 }
 0x285   : > { %v3689_v1 = vpop.eup %3688  ;;  %3708 = vrcp.f32 %v1931_v43  ;;  %v2080_v41 = vadd.f32 %v2915_v3, %v1984_v36  ;;  %v2002_v43 = vld [vmem:[#allocation2 + $0xa0] sm:$0xff] }
 0x286   : > { %2227 = vperm.xlu1 %3653, %v3683_v59   ;;  %v3691_v54 = vpop.eup %3690  ;;  %3710 = vrcp.f32 %v1948_v37  ;;  %v2096_v59 = vadd.f32 %v2947_v35, %v2000_v61  ;;  %v2006_v36 = vld [vmem:[#allocation2 + $0xc0] sm:$0xff] }
 0x287   : > { %2147 = vperm.xlu0 %3652, %v3685_v12   ;;  %v3693_v22 = vpop.eup %3692  ;;  %3712 = vrcp.f32 %v1932_v20 }
 0x288   : > { %v3695_v30 = vpop.eup %3694  ;;  %3714 = vrcp.f32 %v1949_v4 }
 0x289   : > { %v3697_v19 = vpop.eup %3696  ;;  %3716 = vrcp.f32 %v1933_v62  ;;  %v2983_v62 = vld [vmem:[%s4448_s16 + $0x58] sm:$0xff]  }
 0x28a   : > { %2232 = vperm.xlu1 %3653, %v3687_v0   ;;  %v3699_v21 = vpop.eup %3698  ;;  %v2982_v0 = vld [vmem:[%s4448_s16 + $0x50] sm:$0xff]  }
 0x28b   : > { %2152 = vperm.xlu0 %3652, %v3689_v1   ;;  %v3701_v10 = vpop.eup %3700  ;;  %v2974_v1 = vld [vmem:[%s4448_s16 + $0x10] sm:$0xff]   ;;  %v2951_v13 = vunpack.c.l.bf16 %v2982_v0  ;;  %v2952_v14 = vunpack.c.h.bf16 %v2982_v0  ;;  %v2007_v0 = vld [vmem:[#allocation2 + $0xc8] sm:$0xff] }
 0x28c   : > { %v3703_v26 = vpop.eup %3702  ;;  %v2919_v52 = vunpack.c.l.bf16 %v2974_v1  ;;  %v2920_v4 = vunpack.c.h.bf16 %v2974_v1  ;;  %v2985_v1 = vld [vmem:[%s4448_s16 + $0x68] sm:$0xff]  }
 0x28d   : > { %v3705_v15 = vpop.eup %3704  ;;  %v2098_v20 = vadd.f32 %v2951_v13, %v2002_v43 }
 0x28e   : > { %2237 = vperm.xlu1 %3653, %v3691_v54   ;;  %v3707_v48 = vpop.eup %3706  ;;  %v2097_v54 = vadd.f32 %v2948_v2, %v2001_v42 }
 0x28f   : > { %2157 = vperm.xlu0 %3652, %v3693_v22   ;;  %v3709_v24 = vpop.eup %3708 }
 0x290   : > { %v3711_v18 = vpop.eup %3710 }
 0x291   : > { %v3713_v29 = vpop.eup %3712 }
 0x292   : > { %2242 = vperm.xlu1 %3653, %v3695_v30   ;;  %v3715_v47 = vpop.eup %3714  ;;  %v1986_v30 = vld [vmem:[#allocation2 + $0x20] sm:$0xff] }
 0x293   : > { %2162 = vperm.xlu0 %3652, %v3697_v19   ;;  %v3717_v40 = vpop.eup %3716  ;;  %v2082_v51 = vadd.f32 %v2919_v52, %v1986_v30  ;;  %v2008_v30 = vld [vmem:[#allocation2 + $0xd0] sm:$0xff] }
 0x296   : > { %2247 = vperm.xlu1 %3653, %v3699_v21  }
 0x297   : > { %2167 = vperm.xlu0 %3652, %v3701_v10   ;;  %v2003_v10 = vld [vmem:[#allocation2 + $0xa8] sm:$0xff] }
 0x29a   : > { %2252 = vperm.xlu1 %3653, %v3703_v26   ;;  %v1987_v26 = vld [vmem:[#allocation2 + $0x28] sm:$0xff] }
 0x29b   : > { %2172 = vperm.xlu0 %3652, %v3705_v15   ;;  %v2975_v15 = vld [vmem:[%s4448_s16 + $0x18] sm:$0xff]   ;;  %v2083_v46 = vadd.f32 %v2920_v4, %v1987_v26 }
 0x29c   : > { %v2923_v23 = vunpack.c.l.bf16 %v2975_v15  ;;  %v2924_v49 = vunpack.c.h.bf16 %v2975_v15  ;;  %v2986_v15 = vld [vmem:[%s4448_s16 + $0x70] sm:$0xff]  }
 0x29e   : > { %2257 = vperm.xlu1 %3653, %v3707_v48   ;;  %v2084_v50 = vadd.f32 %v2923_v23, %v1988_v63  ;;  %v2010_v63 = vld [vmem:[#allocation2 + $0xe0] sm:$0xff] }
 0x29f   : > { %2177 = vperm.xlu0 %3652, %v3709_v24  }
 0x2a2   : > { %2262 = vperm.xlu1 %3653, %v3711_v18  }
 0x2a3   : > { %2182 = vperm.xlu0 %3652, %v3713_v29   ;;  %v2099_v29 = vadd.f32 %v2952_v14, %v2003_v10 }
 0x2a6   : > { %2267 = vperm.xlu1 %3653, %v3715_v47   ;;  %v2955_v47 = vunpack.c.l.bf16 %v2983_v62 }
 0x2a7   : > { %2187 = vperm.xlu0 %3652, %v3717_v40  }
 0x2a8   : > { %v2100_v17 = vadd.f32 %v2955_v47, %v2004_v8 }
 0x2e9   : > { %v2118_v56 = vpop.permute.xlu1 %2117 }
 0x2ea   : > { %v2271_v11 = vmul.f32 %v2118_v56, %v2079_v9  ;;  %v2113_v16 = vpop.permute.xlu0 %2112  ;;  %v1989_v56 = vld [vmem:[#allocation2 + $0x38] sm:$0xff] }
 0x2eb   : > { %v2270_v57 = vmul.f32 %v2113_v16, %v2078_v45  ;;  %v2956_v45 = vunpack.c.h.bf16 %v2983_v62  ;;  %v2085_v3 = vadd.f32 %v2924_v49, %v1989_v56  ;;  %v2009_v62 = vld [vmem:[#allocation2 + $0xd8] sm:$0xff] }
 0x2ed   : > { %3292 = vmatprep.mubr.f32.mxu0 %v2270_v57  ;;  %v2198_v25 = vpop.permute.xlu1 %2197  ;;  %v2101_v57 = vadd.f32 %v2956_v45, %v2005_v44 }
 0x2ee   : > { %v2287_v6 = vmul.f32 %v2198_v25, %v2095_v33  ;;  %3293 = vmatmul.mubr.f32.vlgmr.msra.gmra.mrb[0].mxu0 %v2271_v11  ;;  %v2193_v39 = vpop.permute.xlu0 %2192  ;;  %v2976_v11 = vld [vmem:[%s4448_s16 + $0x20] sm:$0xff]  }
 0x2ef   : > { %v2286_v12 = vmul.f32 %v2193_v39, %v2094_v60  ;;  %v2959_v60 = vunpack.c.l.bf16 %v2984_v27  ;;  %v2927_v25 = vunpack.c.l.bf16 %v2976_v11  ;;  %v2928_v7 = vunpack.c.h.bf16 %v2976_v11  ;;  %v2987_v11 = vld [vmem:[%s4448_s16 + $0x78] sm:$0xff]  }
 0x2f1   : > { %3316 = vmatprep.mubr.f32.mxu1 %v2286_v12  ;;  %v2203_v32 = vpop.permute.xlu1 %2202  ;;  %v2102_v12 = vadd.f32 %v2959_v60, %v2006_v36 }
 0x2f2   : > { %v2288_v34 = vmul.f32 %v2203_v32, %v2096_v59  ;;  %3317 = vmatmul.mubr.f32.vlgmr.msra.gmra.mrb[0].mxu1 %v2287_v6  ;;  %v2123_v28 = vpop.permute.xlu0 %2122  ;;  %v1990_v6 = vld [vmem:[#allocation2 + $0x40] sm:$0xff]  ;;  %v1991_v32 = vld [vmem:[#allocation2 + $0x48] sm:$0xff] }
 0x2f3   : > { %v2272_v22 = vmul.f32 %v2123_v28, %v2080_v41  ;;  %v2960_v41 = vunpack.c.h.bf16 %v2984_v27  ;;  %v2086_v53 = vadd.f32 %v2927_v25, %v1990_v6  ;;  %v2087_v52 = vadd.f32 %v2928_v7, %v1991_v32  ;;  %v2011_v27 = vld [vmem:[#allocation2 + $0xe8] sm:$0xff]  ;;  %v2012_v6 = vld [vmem:[#allocation2 + $0xf0] sm:$0xff] }
 0x2f4   : > { %3319 = vmatprep.mubr.f32.mxu1 %v2288_v34  ;;  %v2977_v34 = vld [vmem:[%s4448_s16 + $0x28] sm:$0xff]  }
 0x2f5   : > { %3295 = vmatprep.mubr.f32.mxu0 %v2272_v22  ;;  %v2208_v55 = vpop.permute.xlu1 %2207  ;;  %v2103_v22 = vadd.f32 %v2960_v41, %v2007_v0  ;;  %v2932_v26 = vunpack.c.h.bf16 %v2977_v34 }
 0x2f6   : > { %v2289_v19 = vmul.f32 %v2208_v55, %v2097_v54  ;;  %v2128_v37 = vpop.permute.xlu0 %2127  ;;  %v2931_v55 = vunpack.c.l.bf16 %v2977_v34  ;;  %v1997_v34 = vld [vmem:[#allocation2 + $0x78] sm:$0xff] }
 0x2f7   : > { %v2273_v21 = vmul.f32 %v2128_v37, %v2081_v31  ;;  %v2963_v31 = vunpack.c.l.bf16 %v2985_v1 }
 0x2f8   : > { %3320 = vmatmul.mubr.f32.gmra.mrb[2].mxu1 %v2289_v19  ;;  %v1992_v19 = vld [vmem:[#allocation2 + $0x50] sm:$0xff] }
 0x2f9   : > { %3296 = vmatmul.mubr.f32.gmra.mrb[2].mxu0 %v2273_v21  ;;  %v2213_v48 = vpop.permute.xlu1 %2212  ;;  %v2104_v21 = vadd.f32 %v2963_v31, %v2008_v30  ;;  %v2088_v4 = vadd.f32 %v2931_v55, %v1992_v19 }
 0x2fa   : > { %v2290_v24 = vmul.f32 %v2213_v48, %v2098_v20  ;;  %v2133_v18 = vpop.permute.xlu0 %2132  ;;  %v1993_v48 = vld [vmem:[#allocation2 + $0x58] sm:$0xff] }
 0x2fb   : > { %v2274_v40 = vmul.f32 %v2133_v18, %v2082_v51  ;;  %v2964_v51 = vunpack.c.h.bf16 %v2985_v1  ;;  %v2089_v23 = vadd.f32 %v2932_v26, %v1993_v48  ;;  %v2013_v1 = vld [vmem:[#allocation2 + $0xf8] sm:$0xff] }
 0x2fc   : > { %3322 = vmatprep.mubr.f32.mxu1 %v2290_v24  ;;  %v2978_v24 = vld [vmem:[%s4448_s16 + $0x30] sm:$0xff]  }
 0x2fd   : > { %3298 = vmatprep.mubr.f32.mxu0 %v2274_v40  ;;  %v2218_v38 = vpop.permute.xlu1 %2217  ;;  %v2105_v40 = vadd.f32 %v2964_v51, %v2009_v62  ;;  %v2936_v56 = vunpack.c.h.bf16 %v2978_v24 }
 0x2fe   : > { %v2291_v5 = vmul.f32 %v2218_v38, %v2099_v29  ;;  %v2138_v9 = vpop.permute.xlu0 %2137  ;;  %v2935_v38 = vunpack.c.l.bf16 %v2978_v24 }
 0x2ff   : > { %v2275_v58 = vmul.f32 %v2138_v9, %v2083_v46  ;;  %v2967_v46 = vunpack.c.l.bf16 %v2986_v15 }
 0x300   : > { %3323 = vmatmul.mubr.f32.gmra.mrb[4].mxu1 %v2291_v5  ;;  %v1994_v5 = vld [vmem:[#allocation2 + $0x60] sm:$0xff] }
 0x301   : > { %3299 = vmatmul.mubr.f32.gmra.mrb[4].mxu0 %v2275_v58  ;;  %v2223_v16 = vpop.permute.xlu1 %2222  ;;  %v2106_v58 = vadd.f32 %v2967_v46, %v2010_v63  ;;  %v2090_v49 = vadd.f32 %v2935_v38, %v1994_v5 }
 0x302   : > { %v2292_v33 = vmul.f32 %v2223_v16, %v2100_v17  ;;  %v2143_v35 = vpop.permute.xlu0 %2142  ;;  %v1995_v16 = vld [vmem:[#allocation2 + $0x68] sm:$0xff] }
 0x303   : > { %v2276_v61 = vmul.f32 %v2143_v35, %v2084_v50  ;;  %v2968_v50 = vunpack.c.h.bf16 %v2986_v15  ;;  %v2091_v25 = vadd.f32 %v2936_v56, %v1995_v16 }
 0x304   : > { %3325 = vmatprep.mubr.f32.mxu1 %v2292_v33  ;;  %v2979_v33 = vld [vmem:[%s4448_s16 + $0x38] sm:$0xff]  }
 0x305   : > { %3301 = vmatprep.mubr.f32.mxu0 %v2276_v61  ;;  %v2228_v39 = vpop.permute.xlu1 %2227  ;;  %v2107_v61 = vadd.f32 %v2968_v50, %v2011_v27  ;;  %v2940_v32 = vunpack.c.h.bf16 %v2979_v33 }
 0x306   : > { %v2293_v59 = vmul.f32 %v2228_v39, %v2101_v57  ;;  %v2148_v2 = vpop.permute.xlu0 %2147  ;;  %v2939_v39 = vunpack.c.l.bf16 %v2979_v33 }
 0x307   : > { %v2277_v42 = vmul.f32 %v2148_v2, %v2085_v3  ;;  %v2971_v3 = vunpack.c.l.bf16 %v2987_v11 }
 0x308   : > { %3326 = vmatmul.mubr.f32.gmra.mrb[6].mxu1 %v2293_v59  ;;  %v1996_v59 = vld [vmem:[#allocation2 + $0x70] sm:$0xff] }
 0x309   : > { %3302 = vmatmul.mubr.f32.gmra.mrb[6].mxu0 %v2277_v42  ;;  %v2233_v28 = vpop.permute.xlu1 %2232  ;;  %v2108_v42 = vadd.f32 %v2971_v3, %v2012_v6  ;;  %v2092_v7 = vadd.f32 %v2939_v39, %v1996_v59 }
 0x30a   : > { %v2294_v54 = vmul.f32 %v2233_v28, %v2102_v12  ;;  %v2153_v13 = vpop.permute.xlu0 %2152 }
 0x30b   : > { %v2278_v43 = vmul.f32 %v2153_v13, %v2086_v53  ;;  %v2972_v53 = vunpack.c.h.bf16 %v2987_v11 }
 0x30c   : > { %3328 = vmatprep.mubr.f32.mxu1 %v2294_v54 }
 0x30d   : > { %3304 = vmatprep.mubr.f32.mxu0 %v2278_v43  ;;  %v2238_v37 = vpop.permute.xlu1 %2237  ;;  %v2093_v43 = vadd.f32 %v2940_v32, %v1997_v34 }
 0x30e   : > { %v2295_v20 = vmul.f32 %v2238_v37, %v2103_v22  ;;  %v2158_v14 = vpop.permute.xlu0 %2157  ;;  %v2109_v22 = vadd.f32 %v2972_v53, %v2013_v1  ;;  %v5108_v37 = vld [vmem:[#allocation12] ss:$0 sm:$0xff] }
 0x30f   : > { %v2279_v10 = vmul.f32 %v2158_v14, %v2087_v52 }
 0x310   : > { %3329 = vmatmul.mubr.f32.gmra.mrb[8].mxu1 %v2295_v20 }
 0x311   : > { %3305 = vmatmul.mubr.f32.gmra.mrb[8].mxu0 %v2279_v10  ;;  %v2243_v18 = vpop.permute.xlu1 %2242 }
 0x312   : > { %v2296_v29 = vmul.f32 %v2243_v18, %v2104_v21  ;;  %v2163_v47 = vpop.permute.xlu0 %2162 }
 0x313   : > { %v2280_v8 = vmul.f32 %v2163_v47, %v2088_v4 }
 0x314   : > { %3331 = vmatprep.mubr.f32.mxu1 %v2296_v29 }
 0x315   : > { %3307 = vmatprep.mubr.f32.mxu0 %v2280_v8  ;;  %v2248_v9 = vpop.permute.xlu1 %2247 }
 0x316   : > { %v2297_v17 = vmul.f32 %v2248_v9, %v2105_v40  ;;  %v2168_v45 = vpop.permute.xlu0 %2167 }
 0x317   : > { %v2281_v44 = vmul.f32 %v2168_v45, %v2089_v23 }
 0x318   : > { %3332 = vmatmul.mubr.f32.gmra.mrb[10].mxu1 %v2297_v17 }
 0x319   : > { %3308 = vmatmul.mubr.f32.gmra.mrb[10].mxu0 %v2281_v44  ;;  %v2253_v35 = vpop.permute.xlu1 %2252 }
 0x31a   : > { %v2298_v57 = vmul.f32 %v2253_v35, %v2106_v58  ;;  %v2173_v60 = vpop.permute.xlu0 %2172 }
 0x31b   : > { %v2282_v36 = vmul.f32 %v2173_v60, %v2090_v49 }
 0x31c   : > { %3334 = vmatprep.mubr.f32.mxu1 %v2298_v57 }
 0x31d   : > { %3310 = vmatprep.mubr.f32.mxu0 %v2282_v36  ;;  %v2258_v2 = vpop.permute.xlu1 %2257 }
 0x31e   : > { %v2299_v12 = vmul.f32 %v2258_v2, %v2107_v61  ;;  %v2178_v41 = vpop.permute.xlu0 %2177 }
 0x31f   : > { %v2283_v0 = vmul.f32 %v2178_v41, %v2091_v25 }
 0x320   : > { %3335 = vmatmul.mubr.f32.gmra.mrb[12].mxu1 %v2299_v12 }
 0x321   : > { %3311 = vmatmul.mubr.f32.gmra.mrb[12].mxu0 %v2283_v0  ;;  %v2263_v28 = vpop.permute.xlu1 %2262 }
 0x322   : > { %v2300_v54 = vmul.f32 %v2263_v28, %v2108_v42  ;;  %v2183_v13 = vpop.permute.xlu0 %2182 }
 0x323   : > { %v2284_v31 = vmul.f32 %v2183_v13, %v2092_v7 }
 0x324   : > { %3337 = vmatprep.mubr.f32.mxu1 %v2300_v54 }
 0x325   : > { %3313 = vmatprep.mubr.f32.mxu0 %v2284_v31  ;;  %v2268_v52 = vpop.permute.xlu1 %2267 }
 0x326   : > { %v2301_v30 = vmul.f32 %v2268_v52, %v2109_v22  ;;  %v2188_v55 = vpop.permute.xlu0 %2187 }
 0x327   : > { %v2285_v19 = vmul.f32 %v2188_v55, %v2093_v43 }
 0x328   : > { %3338 = vmatmul.mubr.f32.gmra.mrb[14].mxu1 %v2301_v30 }
 0x329   : > { %3314 = vmatmul.mubr.f32.gmra.mrb[14].mxu0 %v2285_v19 }
 0x3c1   : > { %v3294_v20 = vpop.f32.mrb[0].mxu0 }
 0x3c2   : > { %v2397_v14 = vadd.f32 %v3294_v20, %v5108_v37  ;;  %v2391_v21 = vpop.f32.mrb[1].mxu0 }
 0x3c3   : > { %v2392_v51 = vadd.f32 %v5108_v37, %v2391_v21 }
 0x3c4   : > { %v2551_v10 = vmax.f32 %v2397_v14, 0.0 }
 0x3c5   : > { %v2550_v4 = vmax.f32 %v2392_v51, 0.0  ;;  %v3318_v62 = vpop.f32.mrb[0].mxu1 }
 0x3c6   : > { %2583 = vst [vmem:[%s4459_s21 + $0x8] sm:$0xff] %v2551_v10  ;;  %v2477_v26 = vadd.f32 %v3318_v62, %v5108_v37  ;;  %v2471_v15 = vpop.f32.mrb[1].mxu1 }
 0x3c7   : > { %2582 = vst [vmem:[%s4459_s21] sm:$0xff] %v2550_v4  ;;  %v2472_v48 = vadd.f32 %v5108_v37, %v2471_v15 }
 0x3c8   : > { %v2567_v24 = vmax.f32 %v2477_v26, 0.0 }
 0x3c9   : > { %v2566_v18 = vmax.f32 %v2472_v48, 0.0 }
 0x3ca   : > { %2599 = vst [vmem:[%s4459_s21 + $0x88] sm:$0xff] %v2567_v24 }
 0x3cb   : > { %2598 = vst [vmem:[%s4459_s21 + $0x80] sm:$0xff] %v2566_v18  ;;  %v3321_v29 = vpop.f32.mrb[2].mxu1 }
 0x3cc   : > { %v3297_v47 = vpop.f32.mrb[2].mxu0  ;;  %v2487_v40 = vadd.f32 %v3321_v29, %v5108_v37  ;;  %v2481_v46 = vpop.f32.mrb[3].mxu1 }
 0x3cd   : > { %v2407_v8 = vadd.f32 %v3297_v47, %v5108_v37  ;;  %v2401_v23 = vpop.f32.mrb[3].mxu0  ;;  %v2482_v63 = vadd.f32 %v5108_v37, %v2481_v46 }
 0x3ce   : > { %v2569_v38 = vmax.f32 %v2487_v40, 0.0  ;;  %v2402_v5 = vadd.f32 %v5108_v37, %v2401_v23 }
 0x3cf   : > { %v2553_v9 = vmax.f32 %v2407_v8, 0.0  ;;  %v2568_v17 = vmax.f32 %v2482_v63, 0.0 }
 0x3d0   : > { %2601 = vst [vmem:[%s4459_s21 + $0x98] sm:$0xff] %v2569_v38  ;;  %v2552_v45 = vmax.f32 %v2402_v5, 0.0 }
 0x3d1   : > { %2585 = vst [vmem:[%s4459_s21 + $0x18] sm:$0xff] %v2553_v9  ;;  %2600 = vst [vmem:[%s4459_s21 + $0x90] sm:$0xff] %v2568_v17 }
 0x3d2   : > { %2584 = vst [vmem:[%s4459_s21 + $0x10] sm:$0xff] %v2552_v45 }
 0x3d3   : > { %v3324_v58 = vpop.f32.mrb[4].mxu1 }
 0x3d4   : > { %v3300_v50 = vpop.f32.mrb[4].mxu0  ;;  %v2497_v44 = vadd.f32 %v3324_v58, %v5108_v37  ;;  %v2491_v49 = vpop.f32.mrb[5].mxu1 }
 0x3d5   : > { %v2417_v27 = vadd.f32 %v3300_v50, %v5108_v37  ;;  %v2411_v56 = vpop.f32.mrb[5].mxu0  ;;  %v2492_v11 = vadd.f32 %v5108_v37, %v2491_v49 }
 0x3d6   : > { %v2571_v16 = vmax.f32 %v2497_v44, 0.0  ;;  %v2412_v33 = vadd.f32 %v5108_v37, %v2411_v56 }
 0x3d7   : > { %v2555_v35 = vmax.f32 %v2417_v27, 0.0  ;;  %v2570_v57 = vmax.f32 %v2492_v11, 0.0 }
 0x3d8   : > { %2603 = vst [vmem:[%s4459_s21 + $0xa8] sm:$0xff] %v2571_v16  ;;  %v2554_v60 = vmax.f32 %v2412_v33, 0.0 }
 0x3d9   : > { %2587 = vst [vmem:[%s4459_s21 + $0x28] sm:$0xff] %v2555_v35  ;;  %2602 = vst [vmem:[%s4459_s21 + $0xa0] sm:$0xff] %v2570_v57 }
 0x3da   : > { %2586 = vst [vmem:[%s4459_s21 + $0x20] sm:$0xff] %v2554_v60 }
 0x3db   : > { %v3327_v61 = vpop.f32.mrb[6].mxu1 }
 0x3dc   : > { %v3303_v3 = vpop.f32.mrb[6].mxu0  ;;  %v2507_v36 = vadd.f32 %v3327_v61, %v5108_v37  ;;  %v2501_v25 = vpop.f32.mrb[7].mxu1 }
 0x3dd   : > { %v2427_v6 = vadd.f32 %v3303_v3, %v5108_v37  ;;  %v2421_v39 = vpop.f32.mrb[7].mxu0  ;;  %v2502_v59 = vadd.f32 %v5108_v37, %v2501_v25 }
 0x3de   : > { %v2573_v2 = vmax.f32 %v2507_v36, 0.0  ;;  %v2422_v12 = vadd.f32 %v5108_v37, %v2421_v39 }
 0x3df   : > { %v2557_v41 = vmax.f32 %v2427_v6, 0.0  ;;  %v2572_v42 = vmax.f32 %v2502_v59, 0.0 }
 0x3e0   : > { %2605 = vst [vmem:[%s4459_s21 + $0xb8] sm:$0xff] %v2573_v2  ;;  %v2556_v53 = vmax.f32 %v2422_v12, 0.0 }
 0x3e1   : > { %2589 = vst [vmem:[%s4459_s21 + $0x38] sm:$0xff] %v2557_v41  ;;  %2604 = vst [vmem:[%s4459_s21 + $0xb0] sm:$0xff] %v2572_v42 }
 0x3e2   : > { %2588 = vst [vmem:[%s4459_s21 + $0x30] sm:$0xff] %v2556_v53 }
 0x3e3   : > { %v3330_v0 = vpop.f32.mrb[8].mxu1 }
 0x3e4   : > { %v3306_v7 = vpop.f32.mrb[8].mxu0  ;;  %v2517_v1 = vadd.f32 %v3330_v0, %v5108_v37  ;;  %v2511_v32 = vpop.f32.mrb[9].mxu1 }
 0x3e5   : > { %v2437_v34 = vadd.f32 %v3306_v7, %v5108_v37  ;;  %v2431_v28 = vpop.f32.mrb[9].mxu0  ;;  %v2512_v54 = vadd.f32 %v5108_v37, %v2511_v32 }
 0x3e6   : > { %v2575_v13 = vmax.f32 %v2517_v1, 0.0  ;;  %v2432_v22 = vadd.f32 %v5108_v37, %v2431_v28 }
 0x3e7   : > { %v2559_v31 = vmax.f32 %v2437_v34, 0.0  ;;  %v2574_v43 = vmax.f32 %v2512_v54, 0.0 }
 0x3e8   : > { %2607 = vst [vmem:[%s4459_s21 + $0xc8] sm:$0xff] %v2575_v13  ;;  %v2558_v52 = vmax.f32 %v2432_v22, 0.0 }
 0x3e9   : > { %2591 = vst [vmem:[%s4459_s21 + $0x48] sm:$0xff] %v2559_v31  ;;  %2606 = vst [vmem:[%s4459_s21 + $0xc0] sm:$0xff] %v2574_v43 }
 0x3ea   : > { %2590 = vst [vmem:[%s4459_s21 + $0x40] sm:$0xff] %v2558_v52 }
 0x3eb   : > { %v3333_v30 = vpop.f32.mrb[10].mxu1 }
 0x3ec   : > { %v3309_v55 = vpop.f32.mrb[10].mxu0  ;;  %v2527_v19 = vadd.f32 %v3333_v30, %v5108_v37  ;;  %v2521_v20 = vpop.f32.mrb[11].mxu1 }
 0x3ed   : > { %v2447_v14 = vadd.f32 %v3309_v55, %v5108_v37  ;;  %v2441_v21 = vpop.f32.mrb[11].mxu0  ;;  %v2522_v51 = vadd.f32 %v5108_v37, %v2521_v20 }
 0x3ee   : > { %v2577_v10 = vmax.f32 %v2527_v19, 0.0  ;;  %v2442_v4 = vadd.f32 %v5108_v37, %v2441_v21 }
 0x3ef   : > { %v2561_v62 = vmax.f32 %v2447_v14, 0.0  ;;  %v2576_v26 = vmax.f32 %v2522_v51, 0.0 }
 0x3f0   : > { %2609 = vst [vmem:[%s4459_s21 + $0xd8] sm:$0xff] %v2577_v10  ;;  %v2560_v15 = vmax.f32 %v2442_v4, 0.0 }
 0x3f1   : > { %2593 = vst [vmem:[%s4459_s21 + $0x58] sm:$0xff] %v2561_v62  ;;  %2608 = vst [vmem:[%s4459_s21 + $0xd0] sm:$0xff] %v2576_v26 }
 0x3f2   : > { %2592 = vst [vmem:[%s4459_s21 + $0x50] sm:$0xff] %v2560_v15 }
 0x3f3   : > { %v3336_v48 = vpop.f32.mrb[12].mxu1 }
 0x3f4   : > { %v3312_v24 = vpop.f32.mrb[12].mxu0  ;;  %v2537_v18 = vadd.f32 %v3336_v48, %v5108_v37  ;;  %v2531_v29 = vpop.f32.mrb[13].mxu1 }
 0x3f5   : > { %v2457_v47 = vadd.f32 %v3312_v24, %v5108_v37  ;;  %v2451_v40 = vpop.f32.mrb[13].mxu0  ;;  %v2532_v46 = vadd.f32 %v5108_v37, %v2531_v29 }
 0x3f6   : > { %v2579_v8 = vmax.f32 %v2537_v18, 0.0  ;;  %v2452_v23 = vadd.f32 %v5108_v37, %v2451_v40 }
 0x3f7   : > { %v2563_v63 = vmax.f32 %v2457_v47, 0.0  ;;  %v2578_v38 = vmax.f32 %v2532_v46, 0.0 }
 0x3f8   : > { %2611 = vst [vmem:[%s4459_s21 + $0xe8] sm:$0xff] %v2579_v8  ;;  %v2562_v5 = vmax.f32 %v2452_v23, 0.0 }
 0x3f9   : > { %2595 = vst [vmem:[%s4459_s21 + $0x68] sm:$0xff] %v2563_v63  ;;  %2610 = vst [vmem:[%s4459_s21 + $0xe0] sm:$0xff] %v2578_v38 }
 0x3fa   : > { %2594 = vst [vmem:[%s4459_s21 + $0x60] sm:$0xff] %v2562_v5 }
 0x3fb   : > { %v3339_v9 = vpop.f32.mrb[14].mxu1 }
 0x3fc   : > { %v3315_v17 = vpop.f32.mrb[14].mxu0  ;;  %v2547_v45 = vadd.f32 %v3339_v9, %v5108_v37  ;;  %v2541_v58 = vpop.f32.mrb[15].mxu1 }
 0x3fd   : > { %v2467_v50 = vadd.f32 %v3315_v17, %v5108_v37  ;;  %v2461_v44 = vpop.f32.mrb[15].mxu0  ;;  %v2542_v49 = vadd.f32 %v5108_v37, %v2541_v58 }
 0x3fe   : > { %v2581_v27 = vmax.f32 %v2547_v45, 0.0  ;;  %v2462_v56 = vadd.f32 %v5108_v37, %v2461_v44 }
 0x3ff   : > { %v2565_v11 = vmax.f32 %v2467_v50, 0.0  ;;  %v2580_v16 = vmax.f32 %v2542_v49, 0.0 }
 0x400   : > { %2613 = vst [vmem:[%s4459_s21 + $0xf8] sm:$0xff] %v2581_v27  ;;  %v2564_v33 = vmax.f32 %v2462_v56, 0.0 }
 0x401   : > { %2597 = vst [vmem:[%s4459_s21 + $0x78] sm:$0xff] %v2565_v11  ;;  %2612 = vst [vmem:[%s4459_s21 + $0xf0] sm:$0xff] %v2580_v16 }
 0x402   : > { %2596 = vst [vmem:[%s4459_s21 + $0x70] sm:$0xff] %v2564_v33 }
 0x403 PF: > { %s5328_s27 = sld [smem:[#allocation22_spill]]  ;;  %s5329_s15 = sld [smem:[#allocation29_spill]] }
 0x404   : > { %s2628_s13 = sshll.u32 %s4459_s21, 4  ;;  %s2615_s8 = scalar_lea.sflag [#allocation6], %s4445_s1  ;;  %s5181_s13 = int_to_ptr.vmem [resolvable:$true] %s2628_s13 }
 0x405   : > { %s3864_s28 = scalar_lea.vmem %s5181_s13, 4096  ;;  %p5330_p8 = scmp.ne.s32.totalorder %s5314_s5, 0 }
 0x406   : > { %p3865_p13 = scmp.ne.s32.totalorder %s5181_s13, %s3864_s28  ;;  %s4038_s3 = smov [#allocation13]  }
 0x407   : > { %s3868_s16 = sshll.u32 %s4038_s3, 4  ;;  %s3869_s16 = int_to_ptr.vmem [resolvable:$false] %s3868_s16 }
 0x408   : > { %p3866_p7 = pnand %p3865_p13, %p5330_p8  ;;  %s3870_s10 = scalar_lea.vmem %s3869_s16, 8192 }
 0x409   : > { %s2908_s23 = sshll.u32 %s5328_s27, 12  ;;  %p3871_p1 = scmp.lt.s32.totalorder %s5181_s13, %s3869_s16 }
 0x40a   : > { %s5178_s17 = scalar_lea.hbm %s5329_s15, %s2908_s23  ;;  %p3867_p3 = pneg %p3866_p7 }
 0x40b   : > { %p3872_p9 = scmp.lt.s32.totalorder %s3870_s10, %s3864_s28 }
 0x40d   : > { %p3873_p6 = por %p3872_p9, %p3871_p1 }
 0x40f   : > { %p3874_p4 = pnand %p3873_p6, %p3867_p3 }
 0x411   : > { %3877 = shalt.err (!%p3874_p4)
}
 0x412   : > { %s3878_s21 = scalar_lea.hbm %s5178_s17, 4096  ;;  %s3882_s27 = scalar_lea.hbm %s5329_s15, 16384 }
 0x413   : > { %p3879_p10 = scmp.ne.s32.totalorder %s5178_s17, %s3878_s21  ;;  %p3883_p0 = scmp.lt.u32.totalorder %s5178_s17, %s5329_s15 }
 0x414   : > { %p3884_p12 = scmp.lt.u32.totalorder %s3882_s27, %s3878_s21  ;;  %p3886_p13 = scmp.lt.u32.totalorder %s3878_s21, %s5178_s17 }
 0x415   : > { %p3880_p11 = pnand %p3879_p10, %p5330_p8 }
 0x416   : > { %p3885_p5 = por %p3884_p12, %p3883_p0 }
 0x417   : > { %p3881_p2 = pneg %p3880_p11 }
 0x418   : > { %p3887_p7 = por %p3886_p13, %p3885_p5 }
 0x41a   : > { %p3888_p3 = pnand %p3887_p7, %p3881_p2 }
 0x41c   : > { %3891 = shalt.err (!%p3888_p3)
}
 0x41d   : > { %s4039_s24 = smov 128   ;;  %s4040_s28 = smov 8  }
 0x41e   : > { %3402 = dma.vmem_to_hbm [thread:$0]  (%p5330_p8), %s5181_s13, 4096, %s5178_s17, %s2615_s8, %s4039_s24, %s4039_s24, %s4040_s28  }
 0x41f PF: > { %p3430_p1 = scmp.ge.s32.totalorder %s4022_s6, 2  ;;  %s2643_s3 = sand.u32 1, %s3970_s18  }
 0x420   : > { %p5331_p9 = scmp.ne.s32.totalorder %s5315_s14, 0  ;;  %s2644_s16 = scalar_lea.sflag [#allocation6], %s2643_s3 }
 0x422   : > { %p3422_p6 = pnand %p3430_p1, %p5331_p9 }
 0x424   : > { %3965 = dma.done.wait (!%p3422_p6), %s2644_s16, 4096  }
 0x425   : > { %3967 = vsyncadd (!%p3422_p6), %s2644_s16, 4294963200  ;;  %s25_s6 = sadd.s32 1, %s4022_s6   ;;  %s5333_s21 = sld [smem:[#allocation19_spill]] }
 0x426   : > { %p5212_p4 = scmp.ge.s32.totalorder %s25_s6, 10   ;;  %s5334_s5 = sld [smem:[#allocation20_spill]] }
 0x427   : > { %s5335_s23 = sld [smem:[#allocation25_spill]]  ;;  %s5336_s14 = sld [smem:[#allocation23_spill]] }
 0x428   : > { %s5337_s1 = sld [smem:[#allocation24_spill]]  ;;  %s5338_s18 = smov %s3974_s19 }
 0x429   : > { %s5339_s19 = smov %s3978_s20  ;;  %s5340_s20 = smov %s4359_s22 }
 0x42a   : > { %s5342_s24 = smov %s3998_s25  ;;  %s5343_s25 = smov %s4002_s26 }
 0x42b   : > { %s5344_s26 = smov %s4296_s11  ;;  %s5345_s27 = smov %s4014_s29 }
 0x42c   : > { %s5341_s22 = smov %s5334_s5  ;;  %s5346_s28 = smov %s4018_s30 }
 0x42d   : > { %s5347_s29 = smov %s5336_s14  ;;  %24 = sbr.rel (!%p5212_p4) target bundleno = 17 (0x11), region = 125 }
 0x42e   : > { %s5348_s30 = smov %s5337_s1 }
 0x434   :  { %2649 = vsyncpa [#allocation5], 1 }
 0x435   :  { %2651 = vsyncpa [#allocation5 + $0x1], 1 }
 0x436   :  { %2652 = vsyncpa [#allocation8], 1 }
 0x437   :  { %2654 = vsyncpa [#allocation8 + $0x1], 1 }
 0x438   :  { %2655 = vsyncpa [#allocation11], 1 }
 0x439   :  { %2656 = vsyncpa [#allocation6], 1 }
 0x43a   :  { %2658 = vsyncpa [#allocation6 + $0x1], 1 }

</bundles_post_ra>
